<compile_context>
chip_gen: v5e
topology: v5e:2x2
jax: 0.10.0
libtpu: 0.0.40
codegen_flags: <defaults>
</compile_context>

<pallas_src>
import functools

import jax
import jax.numpy as jnp
from jax.experimental import pallas as pl
from jax.experimental.pallas import tpu as pltpu


def _cglu_kernel(x_ref, w1_ref, b1_ref, dww_ref, dwb_ref, w2_ref, b2_ref, o_ref,
                 *, H, W, hidden, nb):
    """One grid step over Nb images, each laid out as (C, H*W).

    x_ref:   (Nb, Cin, HW)    lane index within an image = h*W + w
    w1_ref:  (2*hidden, Cin)  fc1 weight (f32),  b1_ref: (2*hidden, 1)
    dww_ref: (hidden, 9)      depthwise taps, column k = 3*ky + kx
    dwb_ref: (hidden, 1)      depthwise bias
    w2_ref:  (Cout, hidden)   fc2 weight,        b2_ref: (Cout, 1)
    o_ref:   (Nb, Cout, HW)   output (lane-dense store)
    """
    HW = H * W

    # Loads and step-invariant values, hoisted out of the per-image loop.
    w1 = w1_ref[...]
    b1 = b1_ref[...]
    w2 = w2_ref[...]
    b2 = b2_ref[...]
    dwb = dwb_ref[...]
    taps = dww_ref[...]                              # (hidden, 9)
    # Lane-splat each per-channel tap ONCE (not inside the image loop).
    tapb = [jnp.broadcast_to(taps[:, k:k + 1], (hidden, HW)) for k in range(9)]

    # Boundary masks on the flattened pixel axis (identical for every image).
    lane = jax.lax.broadcasted_iota(jnp.int32, (1, HW), 1)
    wpos = lane % W
    col_l_ok = wpos >= 1                             # left  neighbour exists (kx=0)
    col_r_ok = wpos < W - 1                          # right neighbour exists (kx=2)
    row_t_ok = lane >= W                             # top   neighbour exists (ky=0)
    row_b_ok = lane < (H - 1) * W                    # bottom neighbour exists (ky=2)

    for n in range(nb):                              # static, unrolled image loop
        x = x_ref[n]                                 # (Cin, HW) f32

        # ---- fc1: 1x1 conv == channel matmul (f32 MXU, f32 accumulation) ----
        h = jnp.dot(w1, x, preferred_element_type=jnp.float32) + b1
        # NOTE: hidden is a multiple of 8, so these sublane slices are
        # tile-aligned (no materialized VMEM copies).
        xa = h[:hidden, :]                           # gate branch
        v = h[hidden:, :]                            # value branch

        # ---- depthwise 3x3 (padding=1): 4 rolls + 4 selects ----
        # Column-shifted, zero-padded-in-w planes.
        u_l = jnp.where(col_l_ok, pltpu.roll(xa, 1, axis=1), 0.0)
        u_c = xa
        u_r = jnp.where(col_r_ok, pltpu.roll(xa, HW - 1, axis=1), 0.0)

        def row_sum(ky):                             # weighted 3-tap row sum
            return (u_l * tapb[3 * ky + 0]
                    + u_c * tapb[3 * ky + 1]
                    + u_r * tapb[3 * ky + 2])

        acc = row_sum(1)
        acc = acc + jnp.where(row_t_ok, pltpu.roll(row_sum(0), W, axis=1), 0.0)
        acc = acc + jnp.where(row_b_ok, pltpu.roll(row_sum(2), HW - W, axis=1), 0.0)
        acc = acc + dwb

        # ---- GLU gate: tanh GELU (EUP slot; ~1e-3 delta vs exact erf) ----
        g = jax.nn.gelu(acc, approximate=True) * v

        # ---- fc2 (1x1 conv) + residual, stored lane-dense ----
        y = jnp.dot(w2, g, preferred_element_type=jnp.float32) + b2
        o_ref[n] = (x + y).astype(o_ref.dtype)


def _tpu_hw_info():
    """Best-effort (physical VMEM bytes, TensorCores sharing the grid)."""
    vmem_bytes = 64 << 20            # conservative default: v7x per-core VMEM
    num_tc = 2                       # conservative default: assume 2 TCs
    try:
        info = pltpu.get_tpu_info()
        vmem_bytes = int(getattr(info, "vmem_capacity_bytes", vmem_bytes))
    except Exception:
        pass
    try:
        kind = jax.devices()[0].device_kind.lower()
        if "lite" in kind or "v5e" in kind or "v6e" in kind:
            num_tc = 1               # v5e / v6e expose a single TensorCore
    except Exception:
        pass
    return vmem_bytes, num_tc


def _step_vmem_bytes(nb, HW, Cin, Cout, hidden):
    """Rough per-grid-step VMEM footprint (double-buffered blocks + live temps)."""
    bpe = 4
    io = 2 * nb * (Cin + Cout) * HW * bpe                    # 2x: double buffering
    inter = (2 * hidden + 12 * hidden + 9 * hidden + Cin + Cout) * HW * bpe
    weights = 2 * (2 * hidden * (Cin + 1) + hidden * 10 + Cout * (hidden + 1)) * bpe
    return io + inter + weights


def _pick_batch_block(N, HW, Cin, Cout, hidden, vmem_bytes, num_tc):
    """Images folded per grid step: fewest steps that fit the VMEM budget while
    (on multi-TC chips) keeping the step count a multiple of the TC count."""
    budget = int(0.4 * vmem_bytes)
    divisors = [d for d in range(N, 0, -1) if N % d == 0]
    # Pass 1: fewest steps with an even split across TensorCores.
    for nb in divisors:
        steps = N // nb
        if num_tc > 1 and steps % num_tc != 0:
            continue
        if _step_vmem_bytes(nb, HW, Cin, Cout, hidden) <= budget:
            return nb
    # Pass 2: drop the TC-parity preference (e.g. N < num_tc or tight VMEM).
    for nb in divisors:
        if _step_vmem_bytes(nb, HW, Cin, Cout, hidden) <= budget:
            return nb
    # TODO(synk): for very large H*W, add a spatial (row) tile with a 1-row halo
    # instead of relying on one image fitting VMEM.
    return 1


@jax.jit
def convolutional_glu(x_nchw, fc1_w, fc1_b, dw_w, dw_b, fc2_w, fc2_b):
    """Forward pass. x_nchw: (N, Cin, H, W). Parameters in PyTorch layouts:
    fc1_w (2*hidden, Cin, 1, 1), fc1_b (2*hidden,), dw_w (hidden, 1, 3, 3),
    dw_b (hidden,), fc2_w (Cout, hidden, 1, 1), fc2_b (Cout,)."""
    N, Cin, H, W = x_nchw.shape
    hidden = dw_w.shape[0]
    Cout = fc2_w.shape[0]
    if Cout != Cin:
        raise ValueError("residual `x_shortcut + x` requires out_features == in_features")
    if fc1_w.shape[0] != 2 * hidden:
        raise ValueError("fc1 must produce 2*hidden channels")
    HW = H * W

    # Kernel-layout parameters, all f32 (matmuls are tiny; keep PyTorch numerics).
    w1 = fc1_w.reshape(2 * hidden, Cin).astype(jnp.float32)
    b1 = fc1_b.reshape(2 * hidden, 1).astype(jnp.float32)
    dww = dw_w.reshape(hidden, 9).astype(jnp.float32)
    dwb = dw_b.reshape(hidden, 1).astype(jnp.float32)
    w2 = fc2_w.reshape(Cout, hidden).astype(jnp.float32)
    b2 = fc2_b.reshape(Cout, 1).astype(jnp.float32)

    # Free row-major reshape -- no HBM transpose on either side of the kernel.
    x3 = x_nchw.reshape(N, Cin, HW)

    vmem_bytes, num_tc = _tpu_hw_info()
    Nb = _pick_batch_block(N, HW, Cin, Cout, hidden, vmem_bytes, num_tc)
    vmem_limit = int(min(0.75 * vmem_bytes,
                         max(4 * _step_vmem_bytes(Nb, HW, Cin, Cout, hidden),
                             32 << 20)))

    out3 = pl.pallas_call(
        functools.partial(_cglu_kernel, H=H, W=W, hidden=hidden, nb=Nb),
        out_shape=jax.ShapeDtypeStruct((N, Cout, HW), x_nchw.dtype),
        grid=(N // Nb,),
        in_specs=[
            pl.BlockSpec((Nb, Cin, HW), lambda i: (i, 0, 0)),   # Nb images / step
            pl.BlockSpec(w1.shape, lambda i: (0, 0)),           # fc1 weight
            pl.BlockSpec(b1.shape, lambda i: (0, 0)),           # fc1 bias
            pl.BlockSpec(dww.shape, lambda i: (0, 0)),          # dw weight (hidden, 9)
            pl.BlockSpec(dwb.shape, lambda i: (0, 0)),          # dw bias
            pl.BlockSpec(w2.shape, lambda i: (0, 0)),           # fc2 weight
            pl.BlockSpec(b2.shape, lambda i: (0, 0)),           # fc2 bias
        ],
        out_specs=pl.BlockSpec((Nb, Cout, HW), lambda i: (i, 0, 0)),
        compiler_params=pltpu.CompilerParams(
            dimension_semantics=("parallel",),
            vmem_limit_bytes=vmem_limit),
    )(x3, w1, b1, dww, dwb, w2, b2)

    return out3.reshape(N, Cout, H, W)


def _reference(x, fc1_w, fc1_b, dw_w, dw_b, fc2_w, fc2_b, *, approximate):
    """Pure-JAX NCHW reference mirroring the PyTorch forward."""
    N, C, H, W = x.shape
    hidden = dw_w.shape[0]
    w1 = fc1_w.reshape(2 * hidden, C)
    w2 = fc2_w.reshape(-1, hidden)
    h = jnp.einsum("nchw,dc->ndhw", x, w1, precision=jax.lax.Precision.HIGHEST)
    h = h + fc1_b[None, :, None, None]
    xa, v = h[:, :hidden], h[:, hidden:]
    xp = jnp.pad(xa, ((0, 0), (0, 0), (1, 1), (1, 1)))
    acc = jnp.zeros_like(xa)
    for ky in range(3):
        for kx in range(3):
            acc = acc + xp[:, :, ky:ky + H, kx:kx + W] * dw_w[:, 0, ky, kx][None, :, None, None]
    acc = acc + dw_b[None, :, None, None]
    g = jax.nn.gelu(acc, approximate=approximate) * v
    y = jnp.einsum("nchw,dc->ndhw", g, w2, precision=jax.lax.Precision.HIGHEST)
    y = y + fc2_b[None, :, None, None]
    return x + y


if __name__ == "__main__":
    # Module config: in_features = 48 -> hidden = int(2*48/3) = 32, out_features = 48.
    N, Cin, H, W = 8, 48, 16, 16
    hidden = int(2 * Cin / 3)        # 32 (multiple of 8 -> tile-aligned slices)
    Cout = Cin

    key = jax.random.PRNGKey(0)
    ks = jax.random.split(key, 7)
    x = jax.random.normal(ks[0], (N, Cin, H, W), jnp.float32)

    # Deterministic synthetic parameters in PyTorch layouts.
    fc1_w = jax.random.normal(ks[1], (2 * hidden, Cin, 1, 1), jnp.float32) * 0.05
    fc1_b = jax.random.normal(ks[2], (2 * hidden,), jnp.float32) * 0.05
    dw_w = jax.random.normal(ks[3], (hidden, 1, 3, 3), jnp.float32) * 0.1
    dw_b = jax.random.normal(ks[4], (hidden,), jnp.float32) * 0.05
    fc2_w = jax.random.normal(ks[5], (Cout, hidden, 1, 1), jnp.float32) * 0.05
    fc2_b = jax.random.normal(ks[6], (Cout,), jnp.float32) * 0.05

    out = jax.block_until_ready(
        convolutional_glu(x, fc1_w, fc1_b, dw_w, dw_b, fc2_w, fc2_b))

    # Tight check vs a reference using the same tanh GELU (validates the
    # roll/mask/layout plumbing and the f32 matmuls) ...
    ref_tanh = _reference(x, fc1_w, fc1_b, dw_w, dw_b, fc2_w, fc2_b, approximate=True)
    err_tight = float(jnp.max(jnp.abs(out - ref_tanh)))
    # ... plus a check vs the exact-erf PyTorch-equivalent forward (the tanh
    # GELU is the only deliberate numerics deviation).
    ref_exact = _reference(x, fc1_w, fc1_b, dw_w, dw_b, fc2_w, fc2_b, approximate=False)
    err_exact = float(jnp.max(jnp.abs(out - ref_exact)))

    if err_tight > 5e-3:
        raise AssertionError(
            f"Pallas kernel vs tanh-GELU reference: max abs err = {err_tight}")
    if err_exact > 3e-2:
        raise AssertionError(
            f"Pallas kernel vs exact-GELU (PyTorch) reference: max abs err = {err_exact}")
    print("KERNEL_OK")
</pallas_src>

<mosaic_0001>
module attributes {stable_mosaic.version = 11 : i64} {
  func.func @_cglu_kernel(%arg0: i32, %arg1: memref<4x48x256xf32, #tpu.memory_space<vmem>>, %arg2: memref<64x48xf32, #tpu.memory_space<vmem>>, %arg3: memref<64x1xf32, #tpu.memory_space<vmem>>, %arg4: memref<32x9xf32, #tpu.memory_space<vmem>>, %arg5: memref<32x1xf32, #tpu.memory_space<vmem>>, %arg6: memref<48x32xf32, #tpu.memory_space<vmem>>, %arg7: memref<48x1xf32, #tpu.memory_space<vmem>>, %arg8: memref<4x48x256xf32, #tpu.memory_space<vmem>>) attributes {dimension_semantics = [#tpu.dimension_semantics<parallel>], iteration_bounds = array<i64: 2>, scalar_prefetch = 0 : i64, scratch_operands = 0 : i64, tpu.core_type = #tpu.core_type<tc>, window_params = [{transform_indices = @transform_0, window_bounds = array<i64: 4, 48, 256>}, {pipeline_mode = #tpu.pipeline_mode<synchronous>, transform_indices = @transform_1, window_bounds = array<i64: 64, 48>}, {pipeline_mode = #tpu.pipeline_mode<synchronous>, transform_indices = @transform_2, window_bounds = array<i64: 64, 1>}, {pipeline_mode = #tpu.pipeline_mode<synchronous>, transform_indices = @transform_3, window_bounds = array<i64: 32, 9>}, {pipeline_mode = #tpu.pipeline_mode<synchronous>, transform_indices = @transform_4, window_bounds = array<i64: 32, 1>}, {pipeline_mode = #tpu.pipeline_mode<synchronous>, transform_indices = @transform_5, window_bounds = array<i64: 48, 32>}, {pipeline_mode = #tpu.pipeline_mode<synchronous>, transform_indices = @transform_6, window_bounds = array<i64: 48, 1>}, {transform_indices = @transform_7, window_bounds = array<i64: 4, 48, 256>}]} {
    %c0 = arith.constant 0 : index
    %c0_0 = arith.constant 0 : index
    %0 = vector.load %arg2[%c0, %c0_0] : memref<64x48xf32, #tpu.memory_space<vmem>>, vector<64x48xf32>
    %c0_1 = arith.constant 0 : index
    %c0_2 = arith.constant 0 : index
    %1 = vector.load %arg3[%c0_1, %c0_2] : memref<64x1xf32, #tpu.memory_space<vmem>>, vector<64x1xf32>
    %c0_3 = arith.constant 0 : index
    %c0_4 = arith.constant 0 : index
    %2 = vector.load %arg6[%c0_3, %c0_4] : memref<48x32xf32, #tpu.memory_space<vmem>>, vector<48x32xf32>
    %c0_5 = arith.constant 0 : index
    %c0_6 = arith.constant 0 : index
    %3 = vector.load %arg7[%c0_5, %c0_6] : memref<48x1xf32, #tpu.memory_space<vmem>>, vector<48x1xf32>
    %c0_7 = arith.constant 0 : index
    %c0_8 = arith.constant 0 : index
    %4 = vector.load %arg5[%c0_7, %c0_8] : memref<32x1xf32, #tpu.memory_space<vmem>>, vector<32x1xf32>
    %c0_9 = arith.constant 0 : index
    %c0_10 = arith.constant 0 : index
    %5 = vector.load %arg4[%c0_9, %c0_10] : memref<32x9xf32, #tpu.memory_space<vmem>>, vector<32x9xf32>
    %6 = vector.extract_strided_slice %5 {offsets = [0, 0], sizes = [32, 1], strides = [1, 1]} : vector<32x9xf32> to vector<32x1xf32>
    %7 = vector.shape_cast %6 : vector<32x1xf32> to vector<32x1xf32>
    %8 = vector.broadcast %7 : vector<32x1xf32> to vector<32x256xf32>
    %9 = vector.extract_strided_slice %5 {offsets = [0, 1], sizes = [32, 1], strides = [1, 1]} : vector<32x9xf32> to vector<32x1xf32>
    %10 = vector.shape_cast %9 : vector<32x1xf32> to vector<32x1xf32>
    %11 = vector.broadcast %10 : vector<32x1xf32> to vector<32x256xf32>
    %12 = vector.extract_strided_slice %5 {offsets = [0, 2], sizes = [32, 1], strides = [1, 1]} : vector<32x9xf32> to vector<32x1xf32>
    %13 = vector.shape_cast %12 : vector<32x1xf32> to vector<32x1xf32>
    %14 = vector.broadcast %13 : vector<32x1xf32> to vector<32x256xf32>
    %15 = vector.extract_strided_slice %5 {offsets = [0, 3], sizes = [32, 1], strides = [1, 1]} : vector<32x9xf32> to vector<32x1xf32>
    %16 = vector.shape_cast %15 : vector<32x1xf32> to vector<32x1xf32>
    %17 = vector.broadcast %16 : vector<32x1xf32> to vector<32x256xf32>
    %18 = vector.extract_strided_slice %5 {offsets = [0, 4], sizes = [32, 1], strides = [1, 1]} : vector<32x9xf32> to vector<32x1xf32>
    %19 = vector.shape_cast %18 : vector<32x1xf32> to vector<32x1xf32>
    %20 = vector.broadcast %19 : vector<32x1xf32> to vector<32x256xf32>
    %21 = vector.extract_strided_slice %5 {offsets = [0, 5], sizes = [32, 1], strides = [1, 1]} : vector<32x9xf32> to vector<32x1xf32>
    %22 = vector.shape_cast %21 : vector<32x1xf32> to vector<32x1xf32>
    %23 = vector.broadcast %22 : vector<32x1xf32> to vector<32x256xf32>
    %24 = vector.extract_strided_slice %5 {offsets = [0, 6], sizes = [32, 1], strides = [1, 1]} : vector<32x9xf32> to vector<32x1xf32>
    %25 = vector.shape_cast %24 : vector<32x1xf32> to vector<32x1xf32>
    %26 = vector.broadcast %25 : vector<32x1xf32> to vector<32x256xf32>
    %27 = vector.extract_strided_slice %5 {offsets = [0, 7], sizes = [32, 1], strides = [1, 1]} : vector<32x9xf32> to vector<32x1xf32>
    %28 = vector.shape_cast %27 : vector<32x1xf32> to vector<32x1xf32>
    %29 = vector.broadcast %28 : vector<32x1xf32> to vector<32x256xf32>
    %30 = vector.extract_strided_slice %5 {offsets = [0, 8], sizes = [32, 1], strides = [1, 1]} : vector<32x9xf32> to vector<32x1xf32>
    %31 = vector.shape_cast %30 : vector<32x1xf32> to vector<32x1xf32>
    %32 = vector.broadcast %31 : vector<32x1xf32> to vector<32x256xf32>
    %33 = tpu.iota {dimensions = array<i32: 1>} : vector<1x256xi32>
    %c16_i32 = arith.constant 16 : i32
    %c0_i32 = arith.constant 0 : i32
    %34 = arith.cmpi eq, %c16_i32, %c0_i32 : i32
    %c1_i32 = arith.constant 1 : i32
    %35 = arith.select %34, %c1_i32, %c16_i32 : i32
    %36 = vector.broadcast %35 : i32 to vector<1x256xi32>
    %37 = arith.remsi %33, %36 : vector<1x256xi32>
    %c0_i32_11 = arith.constant 0 : i32
    %38 = vector.broadcast %c0_i32_11 : i32 to vector<1x256xi32>
    %39 = arith.cmpi ne, %37, %38 : vector<1x256xi32>
    %c0_i32_12 = arith.constant 0 : i32
    %40 = vector.broadcast %c0_i32_12 : i32 to vector<1x256xi32>
    %41 = arith.cmpi slt, %37, %40 : vector<1x256xi32>
    %c0_i32_13 = arith.constant 0 : i32
    %42 = arith.cmpi slt, %35, %c0_i32_13 : i32
    %43 = vector.broadcast %42 : i1 to vector<1x256xi1>
    %44 = vector.broadcast %43 : vector<1x256xi1> to vector<1x256xi1>
    %45 = arith.xori %41, %44 : vector<1x256xi1>
    %46 = arith.andi %45, %39 : vector<1x256xi1>
    %47 = vector.broadcast %35 : i32 to vector<1x256xi32>
    %48 = arith.addi %37, %47 : vector<1x256xi32>
    %49 = arith.select %46, %48, %37 : vector<1x256xi1>, vector<1x256xi32>
    %c1_i32_14 = arith.constant 1 : i32
    %50 = vector.broadcast %c1_i32_14 : i32 to vector<1x256xi32>
    %51 = arith.cmpi sge, %49, %50 : vector<1x256xi32>
    %c15_i32 = arith.constant 15 : i32
    %52 = vector.broadcast %c15_i32 : i32 to vector<1x256xi32>
    %53 = arith.cmpi slt, %49, %52 : vector<1x256xi32>
    %c16_i32_15 = arith.constant 16 : i32
    %54 = vector.broadcast %c16_i32_15 : i32 to vector<1x256xi32>
    %55 = arith.cmpi sge, %33, %54 : vector<1x256xi32>
    %c240_i32 = arith.constant 240 : i32
    %56 = vector.broadcast %c240_i32 : i32 to vector<1x256xi32>
    %57 = arith.cmpi slt, %33, %56 : vector<1x256xi32>
    %c0_16 = arith.constant 0 : index
    %c0_17 = arith.constant 0 : index
    %c0_18 = arith.constant 0 : index
    %58 = vector.load %arg1[%c0_16, %c0_17, %c0_18] : memref<4x48x256xf32, #tpu.memory_space<vmem>>, vector<1x48x256xf32>
    %59 = vector.shape_cast %58 : vector<1x48x256xf32> to vector<48x256xf32>
    %cst = arith.constant dense<0.000000e+00> : vector<64x256xf32>
    %60 = tpu.matmul %0, %59, %cst {dimension_numbers = #tpu.dot_dimension_numbers<[1], [0], [0], [1], [0, 0, 1, 1], [], []>} : vector<64x48xf32>, vector<48x256xf32>, vector<64x256xf32> -> vector<64x256xf32>
    %61 = vector.broadcast %1 : vector<64x1xf32> to vector<64x256xf32>
    %62 = arith.addf %60, %61 : vector<64x256xf32>
    %63 = vector.extract_strided_slice %62 {offsets = [0, 0], sizes = [32, 256], strides = [1, 1]} : vector<64x256xf32> to vector<32x256xf32>
    %64 = vector.extract_strided_slice %62 {offsets = [32, 0], sizes = [32, 256], strides = [1, 1]} : vector<64x256xf32> to vector<32x256xf32>
    %c1_i32_19 = arith.constant 1 : i32
    %65 = tpu.dynamic_rotate %63 by %c1_i32_19 dim 1 : vector<32x256xf32>, i32 -> vector<32x256xf32>
    %cst_20 = arith.constant 0.000000e+00 : f32
    %66 = vector.shape_cast %51 : vector<1x256xi1> to vector<1x256xi1>
    %67 = vector.broadcast %66 : vector<1x256xi1> to vector<32x256xi1>
    %68 = vector.broadcast %cst_20 : f32 to vector<32x256xf32>
    %69 = arith.select %67, %65, %68 : vector<32x256xi1>, vector<32x256xf32>
    %c255_i32 = arith.constant 255 : i32
    %70 = tpu.dynamic_rotate %63 by %c255_i32 dim 1 : vector<32x256xf32>, i32 -> vector<32x256xf32>
    %cst_21 = arith.constant 0.000000e+00 : f32
    %71 = vector.shape_cast %53 : vector<1x256xi1> to vector<1x256xi1>
    %72 = vector.broadcast %71 : vector<1x256xi1> to vector<32x256xi1>
    %73 = vector.broadcast %cst_21 : f32 to vector<32x256xf32>
    %74 = arith.select %72, %70, %73 : vector<32x256xi1>, vector<32x256xf32>
    %75 = arith.mulf %69, %17 : vector<32x256xf32>
    %76 = arith.mulf %63, %20 : vector<32x256xf32>
    %77 = arith.addf %75, %76 : vector<32x256xf32>
    %78 = arith.mulf %74, %23 : vector<32x256xf32>
    %79 = arith.addf %77, %78 : vector<32x256xf32>
    %80 = arith.mulf %69, %8 : vector<32x256xf32>
    %81 = arith.mulf %63, %11 : vector<32x256xf32>
    %82 = arith.addf %80, %81 : vector<32x256xf32>
    %83 = arith.mulf %74, %14 : vector<32x256xf32>
    %84 = arith.addf %82, %83 : vector<32x256xf32>
    %c16_i32_22 = arith.constant 16 : i32
    %85 = tpu.dynamic_rotate %84 by %c16_i32_22 dim 1 : vector<32x256xf32>, i32 -> vector<32x256xf32>
    %cst_23 = arith.constant 0.000000e+00 : f32
    %86 = vector.shape_cast %55 : vector<1x256xi1> to vector<1x256xi1>
    %87 = vector.broadcast %86 : vector<1x256xi1> to vector<32x256xi1>
    %88 = vector.broadcast %cst_23 : f32 to vector<32x256xf32>
    %89 = arith.select %87, %85, %88 : vector<32x256xi1>, vector<32x256xf32>
    %90 = arith.addf %79, %89 : vector<32x256xf32>
    %91 = arith.mulf %69, %26 : vector<32x256xf32>
    %92 = arith.mulf %63, %29 : vector<32x256xf32>
    %93 = arith.addf %91, %92 : vector<32x256xf32>
    %94 = arith.mulf %74, %32 : vector<32x256xf32>
    %95 = arith.addf %93, %94 : vector<32x256xf32>
    %c240_i32_24 = arith.constant 240 : i32
    %96 = tpu.dynamic_rotate %95 by %c240_i32_24 dim 1 : vector<32x256xf32>, i32 -> vector<32x256xf32>
    %cst_25 = arith.constant 0.000000e+00 : f32
    %97 = vector.shape_cast %57 : vector<1x256xi1> to vector<1x256xi1>
    %98 = vector.broadcast %97 : vector<1x256xi1> to vector<32x256xi1>
    %99 = vector.broadcast %cst_25 : f32 to vector<32x256xf32>
    %100 = arith.select %98, %96, %99 : vector<32x256xi1>, vector<32x256xf32>
    %101 = arith.addf %90, %100 : vector<32x256xf32>
    %102 = vector.broadcast %4 : vector<32x1xf32> to vector<32x256xf32>
    %103 = arith.addf %101, %102 : vector<32x256xf32>
    %104 = arith.mulf %103, %103 : vector<32x256xf32>
    %105 = arith.mulf %103, %104 : vector<32x256xf32>
    %cst_26 = arith.constant 4.471500e-02 : f32
    %106 = vector.broadcast %cst_26 : f32 to vector<32x256xf32>
    %107 = arith.mulf %106, %105 : vector<32x256xf32>
    %108 = arith.addf %103, %107 : vector<32x256xf32>
    %cst_27 = arith.constant 0.797884583 : f32
    %109 = vector.broadcast %cst_27 : f32 to vector<32x256xf32>
    %110 = arith.mulf %109, %108 : vector<32x256xf32>
    %111 = math.tanh %110 : vector<32x256xf32>
    %cst_28 = arith.constant 1.000000e+00 : f32
    %112 = vector.broadcast %cst_28 : f32 to vector<32x256xf32>
    %113 = arith.addf %112, %111 : vector<32x256xf32>
    %cst_29 = arith.constant 5.000000e-01 : f32
    %114 = vector.broadcast %cst_29 : f32 to vector<32x256xf32>
    %115 = arith.mulf %114, %113 : vector<32x256xf32>
    %116 = arith.mulf %103, %115 : vector<32x256xf32>
    %117 = arith.mulf %116, %64 : vector<32x256xf32>
    %cst_30 = arith.constant dense<0.000000e+00> : vector<48x256xf32>
    %118 = tpu.matmul %2, %117, %cst_30 {dimension_numbers = #tpu.dot_dimension_numbers<[1], [0], [0], [1], [0, 0, 1, 1], [], []>} : vector<48x32xf32>, vector<32x256xf32>, vector<48x256xf32> -> vector<48x256xf32>
    %119 = vector.broadcast %3 : vector<48x1xf32> to vector<48x256xf32>
    %120 = arith.addf %118, %119 : vector<48x256xf32>
    %121 = arith.addf %59, %120 : vector<48x256xf32>
    %c0_31 = arith.constant 0 : index
    %c0_32 = arith.constant 0 : index
    %c0_33 = arith.constant 0 : index
    %122 = vector.load %arg8[%c0_31, %c0_32, %c0_33] : memref<4x48x256xf32, #tpu.memory_space<vmem>>, vector<1x48x256xf32>
    %123 = vector.shape_cast %122 : vector<1x48x256xf32> to vector<48x256xf32>
    %124 = vector.shape_cast %121 : vector<48x256xf32> to vector<1x48x256xf32>
    tpu.vector_store %arg8[%c0_31, %c0_32, %c0_33], %124 {strides = array<i32>} : memref<4x48x256xf32, #tpu.memory_space<vmem>>, vector<1x48x256xf32>,
    %c1 = arith.constant 1 : index
    %c0_34 = arith.constant 0 : index
    %c0_35 = arith.constant 0 : index
    %125 = vector.load %arg1[%c1, %c0_34, %c0_35] : memref<4x48x256xf32, #tpu.memory_space<vmem>>, vector<1x48x256xf32>
    %126 = vector.shape_cast %125 : vector<1x48x256xf32> to vector<48x256xf32>
    %cst_36 = arith.constant dense<0.000000e+00> : vector<64x256xf32>
    %127 = tpu.matmul %0, %126, %cst_36 {dimension_numbers = #tpu.dot_dimension_numbers<[1], [0], [0], [1], [0, 0, 1, 1], [], []>} : vector<64x48xf32>, vector<48x256xf32>, vector<64x256xf32> -> vector<64x256xf32>
    %128 = vector.broadcast %1 : vector<64x1xf32> to vector<64x256xf32>
    %129 = arith.addf %127, %128 : vector<64x256xf32>
    %130 = vector.extract_strided_slice %129 {offsets = [0, 0], sizes = [32, 256], strides = [1, 1]} : vector<64x256xf32> to vector<32x256xf32>
    %131 = vector.extract_strided_slice %129 {offsets = [32, 0], sizes = [32, 256], strides = [1, 1]} : vector<64x256xf32> to vector<32x256xf32>
    %c1_i32_37 = arith.constant 1 : i32
    %132 = tpu.dynamic_rotate %130 by %c1_i32_37 dim 1 : vector<32x256xf32>, i32 -> vector<32x256xf32>
    %cst_38 = arith.constant 0.000000e+00 : f32
    %133 = vector.shape_cast %51 : vector<1x256xi1> to vector<1x256xi1>
    %134 = vector.broadcast %133 : vector<1x256xi1> to vector<32x256xi1>
    %135 = vector.broadcast %cst_38 : f32 to vector<32x256xf32>
    %136 = arith.select %134, %132, %135 : vector<32x256xi1>, vector<32x256xf32>
    %c255_i32_39 = arith.constant 255 : i32
    %137 = tpu.dynamic_rotate %130 by %c255_i32_39 dim 1 : vector<32x256xf32>, i32 -> vector<32x256xf32>
    %cst_40 = arith.constant 0.000000e+00 : f32
    %138 = vector.shape_cast %53 : vector<1x256xi1> to vector<1x256xi1>
    %139 = vector.broadcast %138 : vector<1x256xi1> to vector<32x256xi1>
    %140 = vector.broadcast %cst_40 : f32 to vector<32x256xf32>
    %141 = arith.select %139, %137, %140 : vector<32x256xi1>, vector<32x256xf32>
    %142 = arith.mulf %136, %17 : vector<32x256xf32>
    %143 = arith.mulf %130, %20 : vector<32x256xf32>
    %144 = arith.addf %142, %143 : vector<32x256xf32>
    %145 = arith.mulf %141, %23 : vector<32x256xf32>
    %146 = arith.addf %144, %145 : vector<32x256xf32>
    %147 = arith.mulf %136, %8 : vector<32x256xf32>
    %148 = arith.mulf %130, %11 : vector<32x256xf32>
    %149 = arith.addf %147, %148 : vector<32x256xf32>
    %150 = arith.mulf %141, %14 : vector<32x256xf32>
    %151 = arith.addf %149, %150 : vector<32x256xf32>
    %c16_i32_41 = arith.constant 16 : i32
    %152 = tpu.dynamic_rotate %151 by %c16_i32_41 dim 1 : vector<32x256xf32>, i32 -> vector<32x256xf32>
    %cst_42 = arith.constant 0.000000e+00 : f32
    %153 = vector.shape_cast %55 : vector<1x256xi1> to vector<1x256xi1>
    %154 = vector.broadcast %153 : vector<1x256xi1> to vector<32x256xi1>
    %155 = vector.broadcast %cst_42 : f32 to vector<32x256xf32>
    %156 = arith.select %154, %152, %155 : vector<32x256xi1>, vector<32x256xf32>
    %157 = arith.addf %146, %156 : vector<32x256xf32>
    %158 = arith.mulf %136, %26 : vector<32x256xf32>
    %159 = arith.mulf %130, %29 : vector<32x256xf32>
    %160 = arith.addf %158, %159 : vector<32x256xf32>
    %161 = arith.mulf %141, %32 : vector<32x256xf32>
    %162 = arith.addf %160, %161 : vector<32x256xf32>
    %c240_i32_43 = arith.constant 240 : i32
    %163 = tpu.dynamic_rotate %162 by %c240_i32_43 dim 1 : vector<32x256xf32>, i32 -> vector<32x256xf32>
    %cst_44 = arith.constant 0.000000e+00 : f32
    %164 = vector.shape_cast %57 : vector<1x256xi1> to vector<1x256xi1>
    %165 = vector.broadcast %164 : vector<1x256xi1> to vector<32x256xi1>
    %166 = vector.broadcast %cst_44 : f32 to vector<32x256xf32>
    %167 = arith.select %165, %163, %166 : vector<32x256xi1>, vector<32x256xf32>
    %168 = arith.addf %157, %167 : vector<32x256xf32>
    %169 = vector.broadcast %4 : vector<32x1xf32> to vector<32x256xf32>
    %170 = arith.addf %168, %169 : vector<32x256xf32>
    %171 = arith.mulf %170, %170 : vector<32x256xf32>
    %172 = arith.mulf %170, %171 : vector<32x256xf32>
    %cst_45 = arith.constant 4.471500e-02 : f32
    %173 = vector.broadcast %cst_45 : f32 to vector<32x256xf32>
    %174 = arith.mulf %173, %172 : vector<32x256xf32>
    %175 = arith.addf %170, %174 : vector<32x256xf32>
    %cst_46 = arith.constant 0.797884583 : f32
    %176 = vector.broadcast %cst_46 : f32 to vector<32x256xf32>
    %177 = arith.mulf %176, %175 : vector<32x256xf32>
    %178 = math.tanh %177 : vector<32x256xf32>
    %cst_47 = arith.constant 1.000000e+00 : f32
    %179 = vector.broadcast %cst_47 : f32 to vector<32x256xf32>
    %180 = arith.addf %179, %178 : vector<32x256xf32>
    %cst_48 = arith.constant 5.000000e-01 : f32
    %181 = vector.broadcast %cst_48 : f32 to vector<32x256xf32>
    %182 = arith.mulf %181, %180 : vector<32x256xf32>
    %183 = arith.mulf %170, %182 : vector<32x256xf32>
    %184 = arith.mulf %183, %131 : vector<32x256xf32>
    %cst_49 = arith.constant dense<0.000000e+00> : vector<48x256xf32>
    %185 = tpu.matmul %2, %184, %cst_49 {dimension_numbers = #tpu.dot_dimension_numbers<[1], [0], [0], [1], [0, 0, 1, 1], [], []>} : vector<48x32xf32>, vector<32x256xf32>, vector<48x256xf32> -> vector<48x256xf32>
    %186 = vector.broadcast %3 : vector<48x1xf32> to vector<48x256xf32>
    %187 = arith.addf %185, %186 : vector<48x256xf32>
    %188 = arith.addf %126, %187 : vector<48x256xf32>
    %c1_50 = arith.constant 1 : index
    %c0_51 = arith.constant 0 : index
    %c0_52 = arith.constant 0 : index
    %189 = vector.load %arg8[%c1_50, %c0_51, %c0_52] : memref<4x48x256xf32, #tpu.memory_space<vmem>>, vector<1x48x256xf32>
    %190 = vector.shape_cast %189 : vector<1x48x256xf32> to vector<48x256xf32>
    %191 = vector.shape_cast %188 : vector<48x256xf32> to vector<1x48x256xf32>
    tpu.vector_store %arg8[%c1_50, %c0_51, %c0_52], %191 {strides = array<i32>} : memref<4x48x256xf32, #tpu.memory_space<vmem>>, vector<1x48x256xf32>,
    %c2 = arith.constant 2 : index
    %c0_53 = arith.constant 0 : index
    %c0_54 = arith.constant 0 : index
    %192 = vector.load %arg1[%c2, %c0_53, %c0_54] : memref<4x48x256xf32, #tpu.memory_space<vmem>>, vector<1x48x256xf32>
    %193 = vector.shape_cast %192 : vector<1x48x256xf32> to vector<48x256xf32>
    %cst_55 = arith.constant dense<0.000000e+00> : vector<64x256xf32>
    %194 = tpu.matmul %0, %193, %cst_55 {dimension_numbers = #tpu.dot_dimension_numbers<[1], [0], [0], [1], [0, 0, 1, 1], [], []>} : vector<64x48xf32>, vector<48x256xf32>, vector<64x256xf32> -> vector<64x256xf32>
    %195 = vector.broadcast %1 : vector<64x1xf32> to vector<64x256xf32>
    %196 = arith.addf %194, %195 : vector<64x256xf32>
    %197 = vector.extract_strided_slice %196 {offsets = [0, 0], sizes = [32, 256], strides = [1, 1]} : vector<64x256xf32> to vector<32x256xf32>
    %198 = vector.extract_strided_slice %196 {offsets = [32, 0], sizes = [32, 256], strides = [1, 1]} : vector<64x256xf32> to vector<32x256xf32>
    %c1_i32_56 = arith.constant 1 : i32
    %199 = tpu.dynamic_rotate %197 by %c1_i32_56 dim 1 : vector<32x256xf32>, i32 -> vector<32x256xf32>
    %cst_57 = arith.constant 0.000000e+00 : f32
    %200 = vector.shape_cast %51 : vector<1x256xi1> to vector<1x256xi1>
    %201 = vector.broadcast %200 : vector<1x256xi1> to vector<32x256xi1>
    %202 = vector.broadcast %cst_57 : f32 to vector<32x256xf32>
    %203 = arith.select %201, %199, %202 : vector<32x256xi1>, vector<32x256xf32>
    %c255_i32_58 = arith.constant 255 : i32
    %204 = tpu.dynamic_rotate %197 by %c255_i32_58 dim 1 : vector<32x256xf32>, i32 -> vector<32x256xf32>
    %cst_59 = arith.constant 0.000000e+00 : f32
    %205 = vector.shape_cast %53 : vector<1x256xi1> to vector<1x256xi1>
    %206 = vector.broadcast %205 : vector<1x256xi1> to vector<32x256xi1>
    %207 = vector.broadcast %cst_59 : f32 to vector<32x256xf32>
    %208 = arith.select %206, %204, %207 : vector<32x256xi1>, vector<32x256xf32>
    %209 = arith.mulf %203, %17 : vector<32x256xf32>
    %210 = arith.mulf %197, %20 : vector<32x256xf32>
    %211 = arith.addf %209, %210 : vector<32x256xf32>
    %212 = arith.mulf %208, %23 : vector<32x256xf32>
    %213 = arith.addf %211, %212 : vector<32x256xf32>
    %214 = arith.mulf %203, %8 : vector<32x256xf32>
    %215 = arith.mulf %197, %11 : vector<32x256xf32>
    %216 = arith.addf %214, %215 : vector<32x256xf32>
    %217 = arith.mulf %208, %14 : vector<32x256xf32>
    %218 = arith.addf %216, %217 : vector<32x256xf32>
    %c16_i32_60 = arith.constant 16 : i32
    %219 = tpu.dynamic_rotate %218 by %c16_i32_60 dim 1 : vector<32x256xf32>, i32 -> vector<32x256xf32>
    %cst_61 = arith.constant 0.000000e+00 : f32
    %220 = vector.shape_cast %55 : vector<1x256xi1> to vector<1x256xi1>
    %221 = vector.broadcast %220 : vector<1x256xi1> to vector<32x256xi1>
    %222 = vector.broadcast %cst_61 : f32 to vector<32x256xf32>
    %223 = arith.select %221, %219, %222 : vector<32x256xi1>, vector<32x256xf32>
    %224 = arith.addf %213, %223 : vector<32x256xf32>
    %225 = arith.mulf %203, %26 : vector<32x256xf32>
    %226 = arith.mulf %197, %29 : vector<32x256xf32>
    %227 = arith.addf %225, %226 : vector<32x256xf32>
    %228 = arith.mulf %208, %32 : vector<32x256xf32>
    %229 = arith.addf %227, %228 : vector<32x256xf32>
    %c240_i32_62 = arith.constant 240 : i32
    %230 = tpu.dynamic_rotate %229 by %c240_i32_62 dim 1 : vector<32x256xf32>, i32 -> vector<32x256xf32>
    %cst_63 = arith.constant 0.000000e+00 : f32
    %231 = vector.shape_cast %57 : vector<1x256xi1> to vector<1x256xi1>
    %232 = vector.broadcast %231 : vector<1x256xi1> to vector<32x256xi1>
    %233 = vector.broadcast %cst_63 : f32 to vector<32x256xf32>
    %234 = arith.select %232, %230, %233 : vector<32x256xi1>, vector<32x256xf32>
    %235 = arith.addf %224, %234 : vector<32x256xf32>
    %236 = vector.broadcast %4 : vector<32x1xf32> to vector<32x256xf32>
    %237 = arith.addf %235, %236 : vector<32x256xf32>
    %238 = arith.mulf %237, %237 : vector<32x256xf32>
    %239 = arith.mulf %237, %238 : vector<32x256xf32>
    %cst_64 = arith.constant 4.471500e-02 : f32
    %240 = vector.broadcast %cst_64 : f32 to vector<32x256xf32>
    %241 = arith.mulf %240, %239 : vector<32x256xf32>
    %242 = arith.addf %237, %241 : vector<32x256xf32>
    %cst_65 = arith.constant 0.797884583 : f32
    %243 = vector.broadcast %cst_65 : f32 to vector<32x256xf32>
    %244 = arith.mulf %243, %242 : vector<32x256xf32>
    %245 = math.tanh %244 : vector<32x256xf32>
    %cst_66 = arith.constant 1.000000e+00 : f32
    %246 = vector.broadcast %cst_66 : f32 to vector<32x256xf32>
    %247 = arith.addf %246, %245 : vector<32x256xf32>
    %cst_67 = arith.constant 5.000000e-01 : f32
    %248 = vector.broadcast %cst_67 : f32 to vector<32x256xf32>
    %249 = arith.mulf %248, %247 : vector<32x256xf32>
    %250 = arith.mulf %237, %249 : vector<32x256xf32>
    %251 = arith.mulf %250, %198 : vector<32x256xf32>
    %cst_68 = arith.constant dense<0.000000e+00> : vector<48x256xf32>
    %252 = tpu.matmul %2, %251, %cst_68 {dimension_numbers = #tpu.dot_dimension_numbers<[1], [0], [0], [1], [0, 0, 1, 1], [], []>} : vector<48x32xf32>, vector<32x256xf32>, vector<48x256xf32> -> vector<48x256xf32>
    %253 = vector.broadcast %3 : vector<48x1xf32> to vector<48x256xf32>
    %254 = arith.addf %252, %253 : vector<48x256xf32>
    %255 = arith.addf %193, %254 : vector<48x256xf32>
    %c2_69 = arith.constant 2 : index
    %c0_70 = arith.constant 0 : index
    %c0_71 = arith.constant 0 : index
    %256 = vector.load %arg8[%c2_69, %c0_70, %c0_71] : memref<4x48x256xf32, #tpu.memory_space<vmem>>, vector<1x48x256xf32>
    %257 = vector.shape_cast %256 : vector<1x48x256xf32> to vector<48x256xf32>
    %258 = vector.shape_cast %255 : vector<48x256xf32> to vector<1x48x256xf32>
    tpu.vector_store %arg8[%c2_69, %c0_70, %c0_71], %258 {strides = array<i32>} : memref<4x48x256xf32, #tpu.memory_space<vmem>>, vector<1x48x256xf32>,
    %c3 = arith.constant 3 : index
    %c0_72 = arith.constant 0 : index
    %c0_73 = arith.constant 0 : index
    %259 = vector.load %arg1[%c3, %c0_72, %c0_73] : memref<4x48x256xf32, #tpu.memory_space<vmem>>, vector<1x48x256xf32>
    %260 = vector.shape_cast %259 : vector<1x48x256xf32> to vector<48x256xf32>
    %cst_74 = arith.constant dense<0.000000e+00> : vector<64x256xf32>
    %261 = tpu.matmul %0, %260, %cst_74 {dimension_numbers = #tpu.dot_dimension_numbers<[1], [0], [0], [1], [0, 0, 1, 1], [], []>} : vector<64x48xf32>, vector<48x256xf32>, vector<64x256xf32> -> vector<64x256xf32>
    %262 = vector.broadcast %1 : vector<64x1xf32> to vector<64x256xf32>
    %263 = arith.addf %261, %262 : vector<64x256xf32>
    %264 = vector.extract_strided_slice %263 {offsets = [0, 0], sizes = [32, 256], strides = [1, 1]} : vector<64x256xf32> to vector<32x256xf32>
    %265 = vector.extract_strided_slice %263 {offsets = [32, 0], sizes = [32, 256], strides = [1, 1]} : vector<64x256xf32> to vector<32x256xf32>
    %c1_i32_75 = arith.constant 1 : i32
    %266 = tpu.dynamic_rotate %264 by %c1_i32_75 dim 1 : vector<32x256xf32>, i32 -> vector<32x256xf32>
    %cst_76 = arith.constant 0.000000e+00 : f32
    %267 = vector.shape_cast %51 : vector<1x256xi1> to vector<1x256xi1>
    %268 = vector.broadcast %267 : vector<1x256xi1> to vector<32x256xi1>
    %269 = vector.broadcast %cst_76 : f32 to vector<32x256xf32>
    %270 = arith.select %268, %266, %269 : vector<32x256xi1>, vector<32x256xf32>
    %c255_i32_77 = arith.constant 255 : i32
    %271 = tpu.dynamic_rotate %264 by %c255_i32_77 dim 1 : vector<32x256xf32>, i32 -> vector<32x256xf32>
    %cst_78 = arith.constant 0.000000e+00 : f32
    %272 = vector.shape_cast %53 : vector<1x256xi1> to vector<1x256xi1>
    %273 = vector.broadcast %272 : vector<1x256xi1> to vector<32x256xi1>
    %274 = vector.broadcast %cst_78 : f32 to vector<32x256xf32>
    %275 = arith.select %273, %271, %274 : vector<32x256xi1>, vector<32x256xf32>
    %276 = arith.mulf %270, %17 : vector<32x256xf32>
    %277 = arith.mulf %264, %20 : vector<32x256xf32>
    %278 = arith.addf %276, %277 : vector<32x256xf32>
    %279 = arith.mulf %275, %23 : vector<32x256xf32>
    %280 = arith.addf %278, %279 : vector<32x256xf32>
    %281 = arith.mulf %270, %8 : vector<32x256xf32>
    %282 = arith.mulf %264, %11 : vector<32x256xf32>
    %283 = arith.addf %281, %282 : vector<32x256xf32>
    %284 = arith.mulf %275, %14 : vector<32x256xf32>
    %285 = arith.addf %283, %284 : vector<32x256xf32>
    %c16_i32_79 = arith.constant 16 : i32
    %286 = tpu.dynamic_rotate %285 by %c16_i32_79 dim 1 : vector<32x256xf32>, i32 -> vector<32x256xf32>
    %cst_80 = arith.constant 0.000000e+00 : f32
    %287 = vector.shape_cast %55 : vector<1x256xi1> to vector<1x256xi1>
    %288 = vector.broadcast %287 : vector<1x256xi1> to vector<32x256xi1>
    %289 = vector.broadcast %cst_80 : f32 to vector<32x256xf32>
    %290 = arith.select %288, %286, %289 : vector<32x256xi1>, vector<32x256xf32>
    %291 = arith.addf %280, %290 : vector<32x256xf32>
    %292 = arith.mulf %270, %26 : vector<32x256xf32>
    %293 = arith.mulf %264, %29 : vector<32x256xf32>
    %294 = arith.addf %292, %293 : vector<32x256xf32>
    %295 = arith.mulf %275, %32 : vector<32x256xf32>
    %296 = arith.addf %294, %295 : vector<32x256xf32>
    %c240_i32_81 = arith.constant 240 : i32
    %297 = tpu.dynamic_rotate %296 by %c240_i32_81 dim 1 : vector<32x256xf32>, i32 -> vector<32x256xf32>
    %cst_82 = arith.constant 0.000000e+00 : f32
    %298 = vector.shape_cast %57 : vector<1x256xi1> to vector<1x256xi1>
    %299 = vector.broadcast %298 : vector<1x256xi1> to vector<32x256xi1>
    %300 = vector.broadcast %cst_82 : f32 to vector<32x256xf32>
    %301 = arith.select %299, %297, %300 : vector<32x256xi1>, vector<32x256xf32>
    %302 = arith.addf %291, %301 : vector<32x256xf32>
    %303 = vector.broadcast %4 : vector<32x1xf32> to vector<32x256xf32>
    %304 = arith.addf %302, %303 : vector<32x256xf32>
    %305 = arith.mulf %304, %304 : vector<32x256xf32>
    %306 = arith.mulf %304, %305 : vector<32x256xf32>
    %cst_83 = arith.constant 4.471500e-02 : f32
    %307 = vector.broadcast %cst_83 : f32 to vector<32x256xf32>
    %308 = arith.mulf %307, %306 : vector<32x256xf32>
    %309 = arith.addf %304, %308 : vector<32x256xf32>
    %cst_84 = arith.constant 0.797884583 : f32
    %310 = vector.broadcast %cst_84 : f32 to vector<32x256xf32>
    %311 = arith.mulf %310, %309 : vector<32x256xf32>
    %312 = math.tanh %311 : vector<32x256xf32>
    %cst_85 = arith.constant 1.000000e+00 : f32
    %313 = vector.broadcast %cst_85 : f32 to vector<32x256xf32>
    %314 = arith.addf %313, %312 : vector<32x256xf32>
    %cst_86 = arith.constant 5.000000e-01 : f32
    %315 = vector.broadcast %cst_86 : f32 to vector<32x256xf32>
    %316 = arith.mulf %315, %314 : vector<32x256xf32>
    %317 = arith.mulf %304, %316 : vector<32x256xf32>
    %318 = arith.mulf %317, %265 : vector<32x256xf32>
    %cst_87 = arith.constant dense<0.000000e+00> : vector<48x256xf32>
    %319 = tpu.matmul %2, %318, %cst_87 {dimension_numbers = #tpu.dot_dimension_numbers<[1], [0], [0], [1], [0, 0, 1, 1], [], []>} : vector<48x32xf32>, vector<32x256xf32>, vector<48x256xf32> -> vector<48x256xf32>
    %320 = vector.broadcast %3 : vector<48x1xf32> to vector<48x256xf32>
    %321 = arith.addf %319, %320 : vector<48x256xf32>
    %322 = arith.addf %260, %321 : vector<48x256xf32>
    %c3_88 = arith.constant 3 : index
    %c0_89 = arith.constant 0 : index
    %c0_90 = arith.constant 0 : index
    %323 = vector.load %arg8[%c3_88, %c0_89, %c0_90] : memref<4x48x256xf32, #tpu.memory_space<vmem>>, vector<1x48x256xf32>
    %324 = vector.shape_cast %323 : vector<1x48x256xf32> to vector<48x256xf32>
    %325 = vector.shape_cast %322 : vector<48x256xf32> to vector<1x48x256xf32>
    tpu.vector_store %arg8[%c3_88, %c0_89, %c0_90], %325 {strides = array<i32>} : memref<4x48x256xf32, #tpu.memory_space<vmem>>, vector<1x48x256xf32>,
    return
  }
  func.func @transform_0(%arg0: i32) -> (i32, i32, i32) {
    %c0_i32 = arith.constant 0 : i32
    %c0_i32_0 = arith.constant 0 : i32
    %c0_i32_1 = arith.constant 0 : i32
    return %arg0, %c0_i32, %c0_i32_0 : i32, i32, i32
  }
  func.func @transform_1(%arg0: i32) -> (i32, i32) {
    %c0_i32 = arith.constant 0 : i32
    %c0_i32_0 = arith.constant 0 : i32
    %c0_i32_1 = arith.constant 0 : i32
    return %c0_i32, %c0_i32_0 : i32, i32
  }
  func.func @transform_2(%arg0: i32) -> (i32, i32) {
    %c0_i32 = arith.constant 0 : i32
    %c0_i32_0 = arith.constant 0 : i32
    %c0_i32_1 = arith.constant 0 : i32
    return %c0_i32, %c0_i32_0 : i32, i32
  }
  func.func @transform_3(%arg0: i32) -> (i32, i32) {
    %c0_i32 = arith.constant 0 : i32
    %c0_i32_0 = arith.constant 0 : i32
    %c0_i32_1 = arith.constant 0 : i32
    return %c0_i32, %c0_i32_0 : i32, i32
  }
  func.func @transform_4(%arg0: i32) -> (i32, i32) {
    %c0_i32 = arith.constant 0 : i32
    %c0_i32_0 = arith.constant 0 : i32
    %c0_i32_1 = arith.constant 0 : i32
    return %c0_i32, %c0_i32_0 : i32, i32
  }
  func.func @transform_5(%arg0: i32) -> (i32, i32) {
    %c0_i32 = arith.constant 0 : i32
    %c0_i32_0 = arith.constant 0 : i32
    %c0_i32_1 = arith.constant 0 : i32
    return %c0_i32, %c0_i32_0 : i32, i32
  }
  func.func @transform_6(%arg0: i32) -> (i32, i32) {
    %c0_i32 = arith.constant 0 : i32
    %c0_i32_0 = arith.constant 0 : i32
    %c0_i32_1 = arith.constant 0 : i32
    return %c0_i32, %c0_i32_0 : i32, i32
  }
  func.func @transform_7(%arg0: i32) -> (i32, i32, i32) {
    %c0_i32 = arith.constant 0 : i32
    %c0_i32_0 = arith.constant 0 : i32
    %c0_i32_1 = arith.constant 0 : i32
    return %arg0, %c0_i32, %c0_i32_0 : i32, i32, i32
  }
}

</mosaic_0001>

<bundles_post_ra>
// kernel: convolutional_glu.1
= control target key start
LH: loop header
LB: loop body
LE: loop exit
PB: predicated region body
PF: predicated region fallthrough
CT: control target
= control target key end

     0   :  { %s3334_s24 = smov 0   ;;  %s6061_s0 = inlined_call_operand.vmem [shape: f32[8,48,256], index: 0, kind: input, shape index: {}]   ;;  %s6062_s1 = inlined_call_operand.vmem [shape: f32[64,48], index: 1, kind: input, shape index: {}]   ;;  %s6063_s2 = inlined_call_operand.vmem [shape: f32[64,1], index: 2, kind: input, shape index: {}]   ;;  %s6064_s3 = inlined_call_operand.vmem [shape: f32[32,9], index: 3, kind: input, shape index: {}]   ;;  %s6065_s4 = inlined_call_operand.vmem [shape: f32[32,1], index: 4, kind: input, shape index: {}]   ;;  %s6066_s5 = inlined_call_operand.vmem [shape: f32[48,32], index: 5, kind: input, shape index: {}]   ;;  %s6067_s6 = inlined_call_operand.vmem [shape: f32[48,1], index: 6, kind: input, shape index: {}]   ;;  %s6068_s7 = inlined_call_operand.vmem [shape: f32[8,48,256], index: 7, kind: output, shape index: {}]  }
   0x1 LB: > { %s2884_s25 = sadd.s32 4294967295, %s3279_s24   ;;  %p2888_p0 = scmp.ge.s32.totalorder %s3279_s24, 1  ;;  %s3279_s24 = sphi %s3334_s24, %s17_s24  }
   0x2   : > { %p239_p1 = scmp.lt.s32.totalorder %s3279_s24, 3 }
   0x4   : > { %p240_p2 = pnand %p2888_p0, %p239_p1 }
   0x6   : > { %243 = sbr.rel (%p240_p2) target bundleno = 1859 (0x743), region = 48 }
   0xb   : > { %v3345_v0 = vld [vmem:[%s6064_s3 + $0x18] sm:$0xff]  ;;  %v296_v1 = vld [vmem:[%s6063_s2 + $0x8] sm:$0xff]  ;;  %s2889_s30 = sshll.u32 %s2884_s25, 2  ;;  %v3281_v2 = vmov 6   ;;  %v3282_v3 = vmov 2   ;;  %v3283_v4 = vmov 0  }
   0xc   : > { %3104 = vset.pattern.permute.xlu0 %v3281_v2  ;;  %3103 = vset.pattern.permute.xlu2 %v3282_v3  ;;  %p274_p3 = scmp.lt.s32.totalorder %s2889_s30, 7  ;;  %v295_v7 = vld [vmem:[%s6063_s2] sm:$0xff]  ;;  %v3373_v8 = vld [vmem:[%s6064_s3 + $0x10] sm:$0xff]  ;;  %v3378_v9 = vld [vmem:[%s6064_s3 + $0x8] sm:$0xff]  ;;  %v3284_v12 = vmov 1   ;;  %v3285_v22 = vmov 7  }
   0xd   : > { %3101 = vset.pattern.permute.xlu1 %v3283_v4  ;;  %436 = vperm.xlu0 %3104, %v3345_v0   ;;  %v298_v21 = vld [vmem:[%s6063_s2 + $0x18] sm:$0xff]  ;;  %v287_v23 = vld [vmem:[%s6062_s1] sm:$0xff]  ;;  %vm558_vm0 = vcmask 392192   ;;  %v297_v24 = vld [vmem:[%s6063_s2 + $0x10] sm:$0xff]  ;;  %v3286_v29 = vmov 8   ;;  %v3287_v30 = vmov 4  }
   0xe   : > { %372 = vperm.xlu2 %3103, %v3345_v0   ;;  %525 = vperm.xlu1 %3101, %v296_v1   ;;  %s6506_s30 = smov (!%p274_p3, %s2889_s30), 7  ;;  %v288_v25 = vld [vmem:[%s6062_s1 + $0x8] sm:$0xff]  ;;  %v289_v26 = vld [vmem:[%s6062_s1 + $0x10] sm:$0xff]  ;;  %v290_v27 = vld [vmem:[%s6062_s1 + $0x18] sm:$0xff]  ;;  %v3288_v31 = vmov 5   ;;  %v3289_v32 = vmov 3  }
   0xf   : > { %s3079_s8 = smul.u32 96, %s6506_s30  ;;  %v3436_v28 = vld [vmem:[%s6064_s3] sm:$0xff]  ;;  %s3290_s13 = smov 1   ;;  %vm1087_vm11 = vcmask 261120  }
  0x10   : > { %s3291_s14 = smov 127   ;;  %s3292_s26 = smov 16  }
  0x11   : > { %s3363_s11 = scalar_lea.vmem %s6061_s0, %s3079_s8  ;;  %s3293_s27 = smov 112  }
  0x12   : > { %v516_v5 = vld [vmem:[%s3363_s11 + $0x50] sm:$0xff]  ;;  %v517_v6 = vld [vmem:[%s3363_s11 + $0x58] sm:$0xff]  ;;  %v514_v10 = vld [vmem:[%s3363_s11 + $0x40] sm:$0xff]  ;;  %s5671_s29 = scalar_lea.vmem %s6068_s7, %s3079_s8 }
  0x13   : > { %593 = vmatpush.msra.mxu0 %v516_v5  ;;  %634 = vmatpush.msra.mxu1 %v517_v6  ;;  %v515_v11 = vld [vmem:[%s3363_s11 + $0x48] sm:$0xff]  ;;  %v512_v13 = vld [vmem:[%s3363_s11 + $0x30] sm:$0xff]  ;;  %v513_v14 = vld [vmem:[%s3363_s11 + $0x38] sm:$0xff] }
  0x14   : > { %v510_v15 = vld [vmem:[%s3363_s11 + $0x20] sm:$0xff]  ;;  %v511_v16 = vld [vmem:[%s3363_s11 + $0x28] sm:$0xff]  ;;  %v508_v17 = vld [vmem:[%s3363_s11 + $0x10] sm:$0xff] }
  0x15   : > { %3108 = vset.pattern.permute.xlu0 %v3282_v3  ;;  %594 = vmatpush.msra.mxu0 %v514_v10  ;;  %v509_v18 = vld [vmem:[%s3363_s11 + $0x18] sm:$0xff]  ;;  %v506_v19 = vld [vmem:[%s3363_s11] sm:$0xff]  ;;  %v507_v20 = vld [vmem:[%s3363_s11 + $0x8] sm:$0xff] }
  0x16   : > { %3107 = vset.pattern.permute.xlu2 %v3284_v12  ;;  %520 = vperm.xlu1 %3101, %v295_v7  }
  0x17   : > { %368 = vperm.xlu0 %3108, %v3373_v8   ;;  %348 = vperm.xlu2 %3107, %v3378_v9  }
  0x18   : > { %635 = vmatpush.msra.mxu1 %v515_v11  ;;  %595 = vmatpush.msra.mxu0 %v512_v13 }
  0x1a   : > { %636 = vmatpush.msra.mxu1 %v513_v14  ;;  %596 = vmatpush.msra.mxu0 %v510_v15 }
  0x1c   : > { %637 = vmatpush.msra.mxu1 %v511_v16  ;;  %597 = vmatpush.msra.mxu0 %v508_v17 }
  0x1e   : > { %638 = vmatpush.msra.mxu1 %v509_v18  ;;  %3102 = vset.pattern.permute.xlu1 %v3284_v12  ;;  %v318_v18 = vld [vmem:[%s6065_s4 + $0x18] sm:$0xff] }
  0x1f   : > { %3109 = vset.pattern.permute.xlu0 %v3283_v4  ;;  %3111 = vset.pattern.permute.xlu2 %v3285_v22 }
  0x20   : > { %356 = vperm.xlu1 %3102, %v3345_v0   ;;  %598 = vmatpush.msra.mxu0 %v506_v19 }
  0x21   : > { %639 = vmatpush.msra.mxu1 %v507_v20  ;;  %448 = vperm.xlu2 %3111, %v3373_v8  }
  0x22   : > { %535 = vperm.xlu0 %3109, %v298_v21   ;;  %2893 = vmatmul.msk.f32.vlgmr.msra.gmra.mxu0 %vm558_vm0, %v287_v23  ;;  %v3599_v21 = vld [vmem:[%s6062_s1 + $0x20] sm:$0xff] }
  0x23   : > { %2901 = vmatmul.msk.f32.vlgmr.msra.gmra.mxu1 %vm558_vm0, %v287_v23  ;;  %6268 = vst [vmem:[#allocation36_spill] sm:$0xff] %v3599_v21  ;;  %v3610_v23 = vld [vmem:[%s6062_s1 + $0x28] sm:$0xff] }
  0x24   : > { %6270 = vst [vmem:[#allocation38_spill] sm:$0xff] %v3610_v23 }
  0x28   : > { %352 = vperm.xlu1 %3102, %v3373_v8  }
  0x29   : > { %3114 = vset.pattern.permute.xlu2 %v3282_v3 }
  0x2a   : > { %530 = vperm.xlu0 %3109, %v297_v24   ;;  %2894 = vmatmul.msk.f32.gmra.mxu0 %vm558_vm0, %v288_v25 }
  0x2b   : > { %2902 = vmatmul.msk.f32.gmra.mxu1 %vm558_vm0, %v288_v25  ;;  %364 = vperm.xlu2 %3114, %v3378_v9   ;;  %v471_v25 = vlaneseq }
  0x30   : > { %3105 = vset.pattern.permute.xlu1 %v3285_v22 }
  0x31   : > { %452 = vperm.xlu1 %3105, %v3345_v0  }
  0x32   : > { %340 = vperm.xlu0 %3109, %v3345_v0   ;;  %2895 = vmatmul.msk.f32.gmra.mxu0 %vm558_vm0, %v289_v26 }
  0x33   : > { %2903 = vmatmul.msk.f32.gmra.mxu1 %vm558_vm0, %v289_v26  ;;  %3116 = vset.pattern.permute.xlu2 %v3285_v22 }
  0x34   : > { %444 = vperm.xlu2 %3116, %v3378_v9  }
  0x39   : > { %3106 = vset.pattern.permute.xlu1 %v3283_v4 }
  0x3a   : > { %335 = vperm.xlu0 %3109, %v3373_v8   ;;  %330 = vperm.xlu1 %3106, %v3378_v9  }
  0x3b   : > { %2896 = vmatmul.msk.f32.gmra.mxu0 %vm558_vm0, %v290_v27  ;;  %2904 = vmatmul.msk.f32.gmra.mxu1 %vm558_vm0, %v290_v27  ;;  %v3618_v27 = vand.u32 127, %v471_v25 }
  0x3c   : > { %3119 = vset.pattern.permute.xlu2 %v3281_v2 }
  0x3d   : > { %424 = vperm.xlu2 %3119, %v3436_v28   ;;  %vm681_vm1 = vcmp.lt.s32.totalorder %v3618_v27, 1  ;;  %vm718_vm2 = vcmp.lt.s32.totalorder %v3618_v27, 127  ;;  %vm920_vm7 = vcmp.lt.s32.totalorder %v3618_v27, 112  ;;  %vm835_vm8 = vcmp.lt.s32.totalorder %v3618_v27, 16 }
  0x3e   : > { %vm502_vm10 = vcmp.ge.s32.totalorder %v3618_v27, 16 }
  0x42   : > { %325 = vperm.xlu0 %3109, %v3436_v28   ;;  %3110 = vset.pattern.permute.xlu1 %v3281_v2 }
  0x43   : > { %432 = vperm.xlu1 %3110, %v3373_v8   ;;  %2897 = vmatmul.msk.f32.gmra.mxu0 %vm558_vm0, %v3599_v21 }
  0x44   : > { %2905 = vmatmul.msk.f32.gmra.mxu1 %vm558_vm0, %v3599_v21 }
  0x45   : > { %3122 = vset.pattern.permute.xlu2 %v3286_v29 }
  0x46   : > { %456 = vperm.xlu2 %3122, %v3436_v28  }
  0x4a   : > { %3117 = vset.pattern.permute.xlu0 %v3286_v29 }
  0x4b   : > { %464 = vperm.xlu0 %3117, %v3373_v8   ;;  %3112 = vset.pattern.permute.xlu1 %v3286_v29 }
  0x4c   : > { %468 = vperm.xlu1 %3112, %v3345_v0   ;;  %2898 = vmatmul.msk.f32.gmra.mxu0 %vm558_vm0, %v3610_v23 }
  0x4d   : > { %2906 = vmatmul.msk.f32.gmra.mxu1 %vm558_vm0, %v3610_v23 }
  0x4e   : > { %3124 = vset.pattern.permute.xlu2 %v3287_v30 }
  0x4f   : > { %404 = vperm.xlu2 %3124, %v3345_v0  }
  0x53   : > { %3120 = vset.pattern.permute.xlu0 %v3285_v22 }
  0x54   : > { %440 = vperm.xlu0 %3120, %v3436_v28   ;;  %3113 = vset.pattern.permute.xlu1 %v3284_v12 }
  0x55   : > { %344 = vperm.xlu1 %3113, %v3436_v28  }
  0x57   : > { %3127 = vset.pattern.permute.xlu2 %v3288_v31 }
  0x58   : > { %420 = vperm.xlu2 %3127, %v3345_v0  }
  0x5c   : > { %3125 = vset.pattern.permute.xlu0 %v3289_v32 }
  0x5d   : > { %3115 = vset.pattern.permute.xlu1 %v3281_v2  ;;  %384 = vperm.xlu0 %3125, %v3373_v8  }
  0x5e   : > { %428 = vperm.xlu1 %3115, %v3378_v9  }
  0x60   : > { %3129 = vset.pattern.permute.xlu2 %v3287_v30 }
  0x61   : > { %396 = vperm.xlu2 %3129, %v3378_v9  }
  0x65   : > { %3130 = vset.pattern.permute.xlu0 %v3288_v31 }
  0x66   : > { %3118 = vset.pattern.permute.xlu1 %v3282_v3  ;;  %416 = vperm.xlu0 %3130, %v3373_v8  }
  0x67   : > { %360 = vperm.xlu1 %3118, %v3436_v28  }
  0x68   : > { %v3467_v35 = vpop.permute.xlu2 %372 }
  0x69   : > { %392 = vperm.xlu2 %3129, %v3436_v28   ;;  %6236 = vst [vmem:[#allocation4_spill] sm:$0xff] %v3467_v35 }
  0x6f   : > { %3121 = vset.pattern.permute.xlu1 %v3286_v29 }
  0x70   : > { %460 = vperm.xlu1 %3121, %v3378_v9  }
  0x71   : > { %3131 = vset.pattern.permute.xlu2 %v3288_v31  ;;  %v3474_v38 = vpop.permute.xlu2 %348 }
  0x72   : > { %6239 = vst [vmem:[#allocation7_spill] sm:$0xff] %v3474_v38 }
  0x78   : > { %3123 = vset.pattern.permute.xlu1 %v3289_v32 }
  0x79   : > { %388 = vperm.xlu1 %3123, %v3345_v0  }
  0x7b   : > { %v3495_v46 = vpop.permute.xlu2 %448 }
  0x7c   : > { %6244 = vst [vmem:[#allocation12_spill] sm:$0xff] %v3495_v46 }
  0x7f   : > { %v3469_v36 = vpop.permute.xlu0 %436 }
  0x80   : > { %v3461_v33 = vpop.permute.xlu1 %525  ;;  %6237 = vst [vmem:[#allocation5_spill] sm:$0xff] %v3469_v36 }
  0x81   : > { %6234 = vst [vmem:[#allocation2_spill] sm:$0xff] %v3461_v33  ;;  %3126 = vset.pattern.permute.xlu1 %v3287_v30  ;;  %v3632_v30 = vadd.s32 128, %v3618_v27 }
  0x82   : > { %400 = vperm.xlu1 %3126, %v3373_v8  }
  0x83   : > { %6274 = vst [vmem:[#allocation42_spill] sm:$0xff] %v3632_v30 }
  0x85   : > { %v3508_v52 = vpop.permute.xlu2 %364 }
  0x86   : > { %6247 = vst [vmem:[#allocation15_spill] sm:$0xff] %v3508_v52 }
  0x88   : > { %v3464_v34 = vpop.permute.xlu1 %520 }
  0x89   : > { %6235 = vst [vmem:[#allocation3_spill] sm:$0xff] %v3464_v34  ;;  %v3476_v39 = vpop.permute.xlu0 %368 }
  0x8a   : > { %3128 = vset.pattern.permute.xlu1 %v3289_v32  ;;  %6240 = vst [vmem:[#allocation8_spill] sm:$0xff] %v3476_v39 }
  0x8b   : > { %380 = vperm.xlu1 %3128, %v3378_v9  }
  0x8e   : > { %v3529_v61 = vpop.permute.xlu2 %444 }
  0x8f   : > { %6250 = vst [vmem:[#allocation18_spill] sm:$0xff] %v3529_v61 }
  0x92   : > { %v3471_v37 = vpop.permute.xlu1 %356 }
  0x93   : > { %6238 = vst [vmem:[#allocation6_spill] sm:$0xff] %v3471_v37  ;;  %376 = vperm.xlu1 %3128, %v3436_v28  }
  0x94   : > { %v3497_v47 = vpop.permute.xlu0 %535 }
  0x95   : > { %6245 = vst [vmem:[#allocation13_spill] sm:$0xff] %v3497_v47 }
  0x97   : > { %v3543_v0 = vpop.permute.xlu2 %424 }
  0x98   : > { %6252 = vst [vmem:[#allocation20_spill] sm:$0xff] %v3543_v0 }
  0x9a   : > { %v3478_v40 = vpop.permute.xlu1 %352 }
  0x9b   : > { %6241 = vst [vmem:[#allocation9_spill] sm:$0xff] %v3478_v40  ;;  %3134 = vset.pattern.permute.xlu1 %v3283_v4 }
  0x9c   : > { %v3510_v53 = vpop.permute.xlu0 %530 }
  0x9d   : > { %6248 = vst [vmem:[#allocation16_spill] sm:$0xff] %v3510_v53 }
  0x9f   : > { %v600_v41 = vpop.f32.mrf.mxu0 }
  0xa0   : > { %v641_v42 = vpop.f32.mrf.mxu1  ;;  %v3482_v43 = vadd.f32 %v600_v41, %v3464_v34  ;;  %v3552_v2 = vpop.permute.xlu2 %456  ;;  %v478_v41 = vand.u32 15, %v3618_v27  ;;  %v3232_v27 = vld [vmem:[%s3363_s11 + $0x60] sm:$0xff] }
  0xa1   : > { %v3485_v44 = vadd.f32 %v641_v42, %v3464_v34  ;;  %v485_v42 = vand.u32 15, %v3632_v30 }
  0xa2   : > { %702 = vrot.lane.b32.xlu1 %v3482_v43, %s3291_s14  ;;  %665 = vrot.lane.b32.xlu2 %v3482_v43, %s3290_s13  ;;  %vm3649_vm3 = vcmp.ge.s32.totalorder %v478_v41, 1  ;;  %vm3657_vm5 = vcmp.lt.s32.totalorder %v478_v41, 15 }
  0xa3   : > { %6242 = vst [vmem:[#allocation10_spill] sm:$0xff] %v3485_v44  ;;  %673 = vrot.lane.b32.xlu0 %v3485_v44, %s3290_s13  ;;  %v3491_v45 = vpop.permute.xlu1 %452  ;;  %vm3653_vm4 = vcmp.ge.s32.totalorder %v485_v42, 1  ;;  %vm3661_vm6 = vcmp.lt.s32.totalorder %v485_v42, 15 }
  0xa4   : > { %6243 = vst [vmem:[#allocation11_spill] sm:$0xff] %v3491_v45  ;;  %v3556_v5 = vpop.permute.xlu0 %340 }
  0xa5   : > { %6255 = vst [vmem:[#allocation23_spill] sm:$0xff] %v3556_v5 }
  0xa7   : > { %v603_v48 = vpop.f32.mrf.mxu0 }
  0xa8   : > { %v644_v49 = vpop.f32.mrf.mxu1  ;;  %v3513_v56 = vadd.f32 %v603_v48, %v3461_v33  ;;  %v3641_v48 = vld [vmem:[%s6062_s1 + $0x38] sm:$0xff] }
  0xa9   : > { %v3500_v50 = vadd.f32 %v644_v49, %v3461_v33  ;;  %v3560_v7 = vpop.permute.xlu2 %404  ;;  %6276 = vst [vmem:[#allocation44_spill] sm:$0xff] %v3641_v48 }
  0xaa   : > { %710 = vrot.lane.b32.xlu2 %v3485_v44, %s3291_s14  ;;  %6256 = vst [vmem:[#allocation24_spill] sm:$0xff] %v3560_v7 }
  0xab   : > { %675 = vrot.lane.b32.xlu1 %v3500_v50, %s3290_s13 }
  0xac   : > { %v3506_v51 = vpop.permute.xlu1 %330  ;;  %v3569_v10 = vpop.permute.xlu0 %335 }
  0xad   : > { %6246 = vst [vmem:[#allocation14_spill] sm:$0xff] %v3506_v51 }
  0xae   : > { %6258 = vst [vmem:[#allocation26_spill] sm:$0xff] %v3569_v10 }
  0xaf   : > { %v606_v54 = vpop.f32.mrf.mxu0 }
  0xb0   : > { %v647_v55 = vpop.f32.mrf.mxu1  ;;  %v3540_v63 = vadd.f32 %v606_v54, %v3510_v53  ;;  %v6279_v54 = vmov 0 }
  0xb1   : > { %v3516_v57 = vadd.f32 %v647_v55, %v3510_v53  ;;  %v6280_v54 = vsel %vm3653_vm4, 4294967295, %v6279_v54 }
  0xb2   : > { %667 = vrot.lane.b32.xlu2 %v3513_v56, %s3290_s13  ;;  %v3571_v11 = vpop.permute.xlu2 %420  ;;  %6281 = vst [vmem:[#allocation45_spill] sm:$0xff] %v6280_v54 }
  0xb3   : > { %677 = vrot.lane.b32.xlu0 %v3516_v57, %s3290_s13  ;;  %704 = vrot.lane.b32.xlu1 %v3513_v56, %s3291_s14  ;;  %6259 = vst [vmem:[#allocation27_spill] sm:$0xff] %v3571_v11 }
  0xb4   : > { %v3577_v13 = vpop.permute.xlu0 %325 }
  0xb5   : > { %v3524_v58 = vpop.permute.xlu1 %432  ;;  %6261 = vst [vmem:[#allocation29_spill] sm:$0xff] %v3577_v13 }
  0xb6   : > { %6249 = vst [vmem:[#allocation17_spill] sm:$0xff] %v3524_v58 }
  0xb8   : > { %v609_v59 = vpop.f32.mrf.mxu0  ;;  %v650_v6 = vpop.f32.mrf.mxu1 }
  0xb9   : > { %v3527_v60 = vadd.f32 %v609_v59, %v3497_v47  ;;  %v3563_v8 = vadd.f32 %v650_v6, %v3497_v47  ;;  %v6284_v59 = vmov 0 }
  0xba   : > { %712 = vrot.lane.b32.xlu2 %v3500_v50, %s3291_s14  ;;  %v6285_v59 = vsel %vm3661_vm6, 4294967295, %v6284_v59 }
  0xbb   : > { %714 = vrot.lane.b32.xlu0 %v3516_v57, %s3291_s14  ;;  %708 = vrot.lane.b32.xlu1 %v3527_v60, %s3291_s14  ;;  %v3579_v14 = vpop.permute.xlu2 %396  ;;  %6286 = vst [vmem:[#allocation46_spill] sm:$0xff] %v6285_v59 }
  0xbc   : > { %6262 = vst [vmem:[#allocation30_spill] sm:$0xff] %v3579_v14 }
  0xbd   : > { %v3582_v15 = vpop.permute.xlu0 %464 }
  0xbe   : > { %v3537_v62 = vpop.permute.xlu1 %468  ;;  %6263 = vst [vmem:[#allocation31_spill] sm:$0xff] %v3582_v15 }
  0xbf   : > { %6251 = vst [vmem:[#allocation19_spill] sm:$0xff] %v3537_v62 }
  0xc2   : > { %669 = vrot.lane.b32.xlu2 %v3540_v63, %s3290_s13 }
  0xc3   : > { %412 = vperm.xlu0 %3130, %v3378_v9   ;;  %v3587_v17 = vpop.permute.xlu2 %392 }
  0xc4   : > { %6265 = vst [vmem:[#allocation33_spill] sm:$0xff] %v3587_v17 }
  0xc6   : > { %v3592_v19 = vpop.permute.xlu0 %440 }
  0xc7   : > { %v3547_v1 = vpop.permute.xlu1 %344  ;;  %6266 = vst [vmem:[#allocation34_spill] sm:$0xff] %v3592_v19 }
  0xc8   : > { %6253 = vst [vmem:[#allocation21_spill] sm:$0xff] %v3547_v1  ;;  %v788_v47 = vmul.f32 %v3485_v44, %v3547_v1  ;;  %v787_v21 = vmul.f32 %v3482_v43, %v3547_v1 }
  0xca   : > { %706 = vrot.lane.b32.xlu2 %v3540_v63, %s3291_s14 }
  0xcb   : > { %3133 = vset.pattern.permute.xlu0 %v3283_v4 }
  0xcf   : > { %v3605_v22 = vpop.permute.xlu0 %384 }
  0xd0   : > { %v3554_v3 = vpop.permute.xlu1 %428  ;;  %6269 = vst [vmem:[#allocation37_spill] sm:$0xff] %v3605_v22 }
  0xd1   : > { %6254 = vst [vmem:[#allocation22_spill] sm:$0xff] %v3554_v3 }
  0xd2   : > { %671 = vrot.lane.b32.xlu2 %v3527_v60, %s3290_s13 }
  0xd8   : > { %v3625_v29 = vpop.permute.xlu0 %416 }
  0xd9   : > { %v3565_v9 = vpop.permute.xlu1 %360  ;;  %6273 = vst [vmem:[#allocation41_spill] sm:$0xff] %v3625_v29 }
  0xda   : > { %6257 = vst [vmem:[#allocation25_spill] sm:$0xff] %v3565_v9  ;;  %679 = vrot.lane.b32.xlu2 %v3563_v8, %s3290_s13 }
  0xe2   : > { %716 = vrot.lane.b32.xlu2 %v3563_v8, %s3291_s14  ;;  %v3575_v12 = vpop.permute.xlu1 %460 }
  0xe3   : > { %6260 = vst [vmem:[#allocation28_spill] sm:$0xff] %v3575_v12 }
  0xea   : > { %408 = vperm.xlu2 %3131, %v3436_v28   ;;  %v3623_v28 = vld [vmem:[%s6062_s1 + $0x30] sm:$0xff] }
  0xeb   : > { %v3584_v16 = vpop.permute.xlu1 %388  ;;  %6272 = vst [vmem:[#allocation40_spill] sm:$0xff] %v3623_v28  ;;  %2899 = vmatmul.msk.f32.gmra.mxu0 %vm558_vm0, %v3623_v28  ;;  %2907 = vmatmul.msk.f32.gmra.mxu1 %vm558_vm0, %v3623_v28 }
  0xec   : > { %6264 = vst [vmem:[#allocation32_spill] sm:$0xff] %v3584_v16 }
  0xf2   : > { %3132 = vset.pattern.permute.xlu2 %v3283_v4 }
  0xf3   : > { %966 = vperm.xlu2 %3132, %v318_v18   ;;  %2900 = vmatmul.msk.f32.gmra.mxu0 %vm558_vm0, %v3641_v48  ;;  %v747_v18 = vmul.f32 %v3482_v43, %v3587_v17 }
  0xf4   : > { %v3594_v20 = vpop.permute.xlu1 %400  ;;  %2908 = vmatmul.msk.f32.gmra.mxu1 %vm558_vm0, %v3641_v48 }
  0xf5   : > { %6267 = vst [vmem:[#allocation35_spill] sm:$0xff] %v3594_v20 }
  0xfc   : > { %v666_v4 = vpop.permute.xlu2 %665 }
  0xfd   : > { %v3612_v24 = vpop.permute.xlu1 %380 }
  0xfe   : > { %6271 = vst [vmem:[#allocation39_spill] sm:$0xff] %v3612_v24 }
 0x104   : > { %v711_v26 = vpop.permute.xlu2 %710 }
 0x105   : > { %v3634_v31 = vpop.permute.xlu1 %376 }
 0x106   : > { %6275 = vst [vmem:[#allocation43_spill] sm:$0xff] %v3634_v31 }
 0x10c   : > { %v668_v32 = vpop.permute.xlu2 %667 }
 0x114   : > { %v703_v25 = vpop.permute.xlu1 %702  ;;  %v713_v34 = vpop.permute.xlu2 %712 }
 0x115   : > { %v674_v6 = vpop.permute.xlu0 %673  ;;  %v719_v42 = vsel %vm718_vm2, %v703_v25, %v711_v26  ;;  %v723_v33 = vsel %vm718_vm2, %v711_v26, %v703_v25 }
 0x116   : > { %v682_v53 = vsel %vm681_vm1, %v666_v4, %v674_v6  ;;  %v686_v41 = vsel %vm681_vm1, %v674_v6, %v666_v4  ;;  %v3685_v23 = vsel %vm3657_vm5, %v719_v42, 0.0  ;;  %v3689_v4 = vsel %vm3661_vm6, %v723_v33, 0.0 }
 0x117   : > { %v694_v48 = vsel %vm3649_vm3, %v686_v41, 0.0  ;;  %v3681_v28 = vsel %vm3653_vm4, %v682_v53, 0.0  ;;  %v872_v42 = vmul.f32 %v3482_v43, %v3592_v19  ;;  %v748_v33 = vmul.f32 %v3485_v44, %v3587_v17 }
 0x118   : > { %6287 = vst [vmem:[#allocation47_spill] sm:$0xff] %v3681_v28  ;;  %v739_v6 = vmul.f32 %v694_v48, %v3634_v31  ;;  %v740_v26 = vmul.f32 %v3681_v28, %v3634_v31  ;;  %v779_v25 = vmul.f32 %v694_v48, %v3577_v13  ;;  %v780_v41 = vmul.f32 %v3681_v28, %v3577_v13 }
 0x119   : > { %v864_v53 = vmul.f32 %v694_v48, %v3543_v0  ;;  %v803_v31 = vmul.f32 %v3685_v23, %v3565_v9  ;;  %v804_v62 = vmul.f32 %v3689_v4, %v3565_v9  ;;  %v888_v48 = vmul.f32 %v3685_v23, %v3552_v2 }
 0x11a   : > { %v3704_v30 = vadd.f32 %v747_v18, %v739_v6  ;;  %v796_v13 = vadd.f32 %v788_v47, %v780_v41  ;;  %v795_v19 = vadd.f32 %v787_v21, %v779_v25  ;;  %v3712_v0 = vadd.f32 %v748_v33, %v740_v26 }
 0x11b   : > { %v880_v28 = vadd.f32 %v872_v42, %v864_v53  ;;  %v789_v25 = vmul.f32 %v3513_v56, %v3474_v38 }
 0x11c   : > { %v812_v43 = vadd.f32 %v804_v62, %v796_v13  ;;  %v811_v17 = vadd.f32 %v803_v31, %v795_v19  ;;  %v670_v44 = vpop.permute.xlu2 %669  ;;  %v749_v62 = vmul.f32 %v3513_v56, %v3579_v14  ;;  %v750_v19 = vmul.f32 %v3500_v50, %v3579_v14 }
 0x11d   : > { %v676_v1 = vpop.permute.xlu1 %675  ;;  %v896_v35 = vadd.f32 %v888_v48, %v880_v28 }
 0x11e   : > { %v683_v18 = vsel %vm681_vm1, %v668_v32, %v676_v1  ;;  %v687_v6 = vsel %vm681_vm1, %v676_v1, %v668_v32  ;;  %827 = vrot.lane.b32.xlu2 %v812_v43, %s3292_s26  ;;  %819 = vrot.lane.b32.xlu1 %v811_v17, %s3292_s26 }
 0x11f   : > { %v696_v47 = vsel %vm3649_vm3, %v687_v6, 0.0  ;;  %v697_v21 = vsel %vm3653_vm4, %v683_v18, 0.0  ;;  %904 = vrot.lane.b32.xlu0 %v896_v35, %s3293_s27 }
 0x120   : > { %v741_v1 = vmul.f32 %v696_v47, %v3612_v24  ;;  %v742_v13 = vmul.f32 %v697_v21, %v3612_v24  ;;  %v781_v32 = vmul.f32 %v696_v47, %v3506_v51  ;;  %v782_v35 = vmul.f32 %v697_v21, %v3506_v51 }
 0x121   : > { %v792_v51 = vmul.f32 %v3516_v57, %v3478_v40 }
 0x122   : > { %v3731_v28 = vadd.f32 %v749_v62, %v741_v1  ;;  %v3733_v31 = vadd.f32 %v750_v19, %v742_v13  ;;  %v790_v62 = vmul.f32 %v3500_v50, %v3474_v38  ;;  %v797_v13 = vadd.f32 %v789_v25, %v781_v32 }
 0x123   : > { %v875_v32 = vmul.f32 %v3500_v50, %v3529_v61  ;;  %v867_v25 = vmul.f32 %v697_v21, %v3554_v3 }
 0x124   : > { %v707_v48 = vpop.permute.xlu2 %706  ;;  %v798_v19 = vadd.f32 %v790_v62, %v782_v35  ;;  %v866_v35 = vmul.f32 %v696_v47, %v3554_v3  ;;  %v752_v62 = vmul.f32 %v3516_v57, %v3594_v20 }
 0x125   : > { %v678_v26 = vpop.permute.xlu0 %677  ;;  %v705_v17 = vpop.permute.xlu1 %704 }
 0x126   : > { %v684_v41 = vsel %vm681_vm1, %v670_v44, %v678_v26  ;;  %v688_v53 = vsel %vm681_vm1, %v678_v26, %v670_v44  ;;  %v720_v42 = vsel %vm718_vm2, %v705_v17, %v713_v34  ;;  %v724_v33 = vsel %vm718_vm2, %v713_v34, %v705_v17 }
 0x127   : > { %v698_v43 = vsel %vm3649_vm3, %v688_v53, 0.0  ;;  %v733_v18 = vsel %vm3657_vm5, %v720_v42, 0.0  ;;  %v734_v6 = vsel %vm3661_vm6, %v724_v33, 0.0  ;;  %v699_v44 = vsel %vm3653_vm4, %v684_v41, 0.0 }
 0x128   : > { %v805_v1 = vmul.f32 %v733_v18, %v3508_v52  ;;  %v806_v34 = vmul.f32 %v734_v6, %v3508_v52  ;;  %v743_v26 = vmul.f32 %v698_v43, %v3605_v22  ;;  %v784_v17 = vmul.f32 %v699_v44, %v3569_v10 }
 0x129   : > { %v874_v33 = vmul.f32 %v3513_v56, %v3529_v61  ;;  %v744_v38 = vmul.f32 %v699_v44, %v3605_v22  ;;  %v751_v41 = vmul.f32 %v3540_v63, %v3594_v20  ;;  %v891_v21 = vmul.f32 %v734_v6, %v3575_v12 }
 0x12a   : > { %v813_v53 = vadd.f32 %v805_v1, %v797_v13  ;;  %v814_v42 = vadd.f32 %v806_v34, %v798_v19  ;;  %v890_v34 = vmul.f32 %v733_v18, %v3575_v12  ;;  %v883_v61 = vadd.f32 %v875_v32, %v867_v25 }
 0x12b   : > { %v759_v1 = vadd.f32 %v751_v41, %v743_v26  ;;  %v760_v20 = vadd.f32 %v752_v62, %v744_v38  ;;  %v882_v52 = vadd.f32 %v874_v33, %v866_v35  ;;  %v877_v38 = vmul.f32 %v3516_v57, %v3495_v46 }
 0x12c   : > { %821 = vrot.lane.b32.xlu0 %v813_v53, %s3292_s26  ;;  %829 = vrot.lane.b32.xlu1 %v814_v42, %s3292_s26  ;;  %v672_v47 = vpop.permute.xlu2 %671  ;;  %v800_v42 = vadd.f32 %v792_v51, %v784_v17  ;;  %v899_v9 = vadd.f32 %v891_v21, %v883_v61  ;;  %v753_v51 = vmul.f32 %v3527_v60, %v3560_v7 }
 0x12d   : > { %v715_v56 = vpop.permute.xlu0 %714  ;;  %v876_v17 = vmul.f32 %v3540_v63, %v3495_v46  ;;  %v783_v33 = vmul.f32 %v698_v43, %v3569_v10  ;;  %v754_v61 = vmul.f32 %v3563_v8, %v3560_v7 }
 0x12e   : > { %v721_v13 = vsel %vm718_vm2, %v707_v48, %v715_v56  ;;  %v725_v50 = vsel %vm718_vm2, %v715_v56, %v707_v48  ;;  %v868_v48 = vmul.f32 %v698_v43, %v3524_v58 }
 0x12f   : > { %v735_v19 = vsel %vm3657_vm5, %v721_v13, 0.0  ;;  %v736_v53 = vsel %vm3661_vm6, %v725_v50, 0.0  ;;  %v898_v13 = vadd.f32 %v890_v34, %v882_v52 }
 0x130   : > { %v767_v26 = vmul.f32 %v735_v19, %v3625_v29  ;;  %v768_v41 = vmul.f32 %v736_v53, %v3625_v29  ;;  %v808_v22 = vmul.f32 %v736_v53, %v3476_v39  ;;  %v892_v32 = vmul.f32 %v735_v19, %v3582_v15 }
 0x131   : > { %v884_v57 = vadd.f32 %v876_v17, %v868_v48  ;;  %v807_v43 = vmul.f32 %v735_v19, %v3476_v39 }
 0x132   : > { %v816_v56 = vadd.f32 %v808_v22, %v800_v42  ;;  %v3790_v12 = vadd.f32 %v767_v26, %v759_v1  ;;  %v3792_v3 = vadd.f32 %v768_v41, %v760_v20  ;;  %v791_v22 = vmul.f32 %v3540_v63, %v3478_v40 }
 0x133   : > { %v869_v20 = vmul.f32 %v699_v44, %v3524_v58  ;;  %v893_v44 = vmul.f32 %v736_v53, %v3582_v15  ;;  %v900_v42 = vadd.f32 %v892_v32, %v884_v57 }
 0x134   : > { %831 = vrot.lane.b32.xlu2 %v816_v56, %s3292_s26  ;;  %906 = vrot.lane.b32.xlu0 %v898_v13, %s3293_s27  ;;  %v680_v35 = vpop.permute.xlu2 %679  ;;  %v799_v53 = vadd.f32 %v791_v22, %v783_v33 }
 0x135   : > { %914 = vrot.lane.b32.xlu1 %v899_v9, %s3293_s27  ;;  %v3807_v52 = vpop.permute.xlu0 %412  ;;  %v685_v9 = vsel %vm681_vm1, %v672_v47, %v680_v35  ;;  %v689_v62 = vsel %vm681_vm1, %v680_v35, %v672_v47  ;;  %v885_v19 = vadd.f32 %v877_v38, %v869_v20  ;;  %v793_v38 = vmul.f32 %v3527_v60, %v3471_v37 }
 0x136   : > { %6288 = vst [vmem:[#allocation48_spill] sm:$0xff] %v3807_v52  ;;  %v765_v25 = vmul.f32 %v733_v18, %v3807_v52  ;;  %v766_v63 = vmul.f32 %v734_v6, %v3807_v52  ;;  %v700_v1 = vsel %vm3649_vm3, %v689_v62, 0.0  ;;  %v701_v34 = vsel %vm3653_vm4, %v685_v9, 0.0  ;;  %v6290_v62 = vld [vmem:[#allocation19_spill] sm:$0xff] }
 0x137   : > { %v745_v50 = vmul.f32 %v700_v1, %v3584_v16  ;;  %v746_v21 = vmul.f32 %v701_v34, %v3584_v16  ;;  %v901_v26 = vadd.f32 %v893_v44, %v885_v19  ;;  %v815_v41 = vadd.f32 %v807_v43, %v799_v53  ;;  %v6289_v43 = vld [vmem:[#allocation4_spill] sm:$0xff] }
 0x138   : > { %v3825_v18 = vadd.f32 %v765_v25, %v3731_v28  ;;  %v3828_v6 = vadd.f32 %v766_v63, %v3733_v31  ;;  %v785_v56 = vmul.f32 %v700_v1, %v3556_v5  ;;  %v786_v13 = vmul.f32 %v701_v34, %v3556_v5  ;;  %v709_v28 = vpop.permute.xlu1 %708 }
 0x139   : > { %v761_v47 = vadd.f32 %v753_v51, %v745_v50  ;;  %v762_v48 = vadd.f32 %v754_v61, %v746_v21  ;;  %v870_v31 = vmul.f32 %v700_v1, %v3469_v36  ;;  %v794_v51 = vmul.f32 %v3563_v8, %v3471_v37 }
 0x13a   : > { %v878_v20 = vmul.f32 %v3527_v60, %v3491_v45  ;;  %v801_v57 = vadd.f32 %v793_v38, %v785_v56  ;;  %v6293_v38 = vld [vmem:[#allocation47_spill] sm:$0xff] }
 0x13b   : > { %v802_v35 = vadd.f32 %v794_v51, %v786_v13  ;;  %v879_v13 = vmul.f32 %v3563_v8, %v3491_v45  ;;  %v6292_v51 = vld [vmem:[#allocation20_spill] sm:$0xff] }
 0x13c   : > { %908 = vrot.lane.b32.xlu2 %v900_v42, %s3293_s27  ;;  %916 = vrot.lane.b32.xlu0 %v901_v26, %s3293_s27  ;;  %v717_v17 = vpop.permute.xlu2 %716  ;;  %v886_v50 = vadd.f32 %v878_v20, %v870_v31  ;;  %v871_v26 = vmul.f32 %v701_v34, %v3469_v36  ;;  %v865_v8 = vmul.f32 %v6293_v38, %v6292_v51 }
 0x13d   : > { %823 = vrot.lane.b32.xlu1 %v815_v41, %s3292_s26  ;;  %v722_v22 = vsel %vm718_vm2, %v709_v28, %v717_v17  ;;  %v726_v33 = vsel %vm718_vm2, %v717_v17, %v709_v28  ;;  %v317_v17 = vld [vmem:[%s6065_s4 + $0x10] sm:$0xff] }
 0x13e   : > { %v737_v61 = vsel %vm3657_vm5, %v722_v22, 0.0  ;;  %v738_v32 = vsel %vm3661_vm6, %v726_v33, 0.0  ;;  %v887_v34 = vadd.f32 %v879_v13, %v871_v26  ;;  %v6295_v33 = vld [vmem:[#allocation10_spill] sm:$0xff] }
 0x13f   : > { %v769_v25 = vmul.f32 %v737_v61, %v3571_v11  ;;  %v770_v63 = vmul.f32 %v738_v32, %v3571_v11  ;;  %v809_v44 = vmul.f32 %v737_v61, %v6289_v43  ;;  %v810_v9 = vmul.f32 %v738_v32, %v6289_v43 }
 0x140   : > { %v894_v1 = vmul.f32 %v737_v61, %v6290_v62  ;;  %v895_v56 = vmul.f32 %v738_v32, %v6290_v62  ;;  %v889_v61 = vmul.f32 %v3689_v4, %v3552_v2  ;;  %v302_v32 = vld [vmem:[%s6063_s2 + $0x38] sm:$0xff] }
 0x141   : > { %v818_v60 = vadd.f32 %v810_v9, %v802_v35  ;;  %v817_v21 = vadd.f32 %v809_v44, %v801_v57  ;;  %v3857_v19 = vadd.f32 %v769_v25, %v761_v47  ;;  %v3859_v53 = vadd.f32 %v770_v63, %v762_v48  ;;  %v299_v57 = vld [vmem:[%s6063_s2 + $0x20] sm:$0xff]  ;;  %v300_v25 = vld [vmem:[%s6063_s2 + $0x28] sm:$0xff]  ;;  %v301_v63 = vld [vmem:[%s6063_s2 + $0x30] sm:$0xff] }
 0x142   : > { %v902_v42 = vadd.f32 %v894_v1, %v886_v50  ;;  %v903_v22 = vadd.f32 %v895_v56, %v887_v34  ;;  %v6297_v34 = vld [vmem:[#allocation42_spill] sm:$0xff] }
 0x143   : > { %vm505_vm9 = vcmp.lt.s32.totalorder %v6297_v34, 240 }
 0x144   : > { %833 = vrot.lane.b32.xlu2 %v818_v60, %s3292_s26  ;;  %910 = vrot.lane.b32.xlu0 %v902_v42, %s3293_s27  ;;  %v3865_v41 = vpop.permute.xlu2 %408 }
 0x145   : > { %825 = vrot.lane.b32.xlu1 %v817_v21, %s3292_s26  ;;  %6291 = vst [vmem:[#allocation49_spill] sm:$0xff] %v3865_v41  ;;  %v763_v47 = vmul.f32 %v3685_v23, %v3865_v41  ;;  %v764_v48 = vmul.f32 %v3689_v4, %v3865_v41  ;;  %v316_v23 = vld [vmem:[%s6065_s4 + $0x8] sm:$0xff]  ;;  %v315_v4 = vld [vmem:[%s6065_s4] sm:$0xff] }
 0x147   : > { %v3875_v28 = vadd.f32 %v764_v48, %v3712_v0  ;;  %v3878_v31 = vadd.f32 %v763_v47, %v3704_v30  ;;  %v6294_v0 = vld [vmem:[#allocation34_spill] sm:$0xff] }
 0x148   : > { %v873_v20 = vmul.f32 %v6295_v33, %v6294_v0 }
 0x14a   : > { %v881_v30 = vadd.f32 %v873_v20, %v865_v8 }
 0x14c   : > { %961 = vperm.xlu2 %3132, %v317_v17   ;;  %956 = vperm.xlu0 %3133, %v316_v23   ;;  %v897_v35 = vadd.f32 %v889_v61, %v881_v30 }
 0x14d   : > { %918 = vrot.lane.b32.xlu1 %v903_v22, %s3293_s27  ;;  %v3909_v44 = vpop.permute.xlu2 %966 }
 0x14e   : > { %6296 = vst [vmem:[#allocation20_spill] sm:$0xff] %v3909_v44 }
 0x154   : > { %555 = vperm.xlu2 %3132, %v302_v32   ;;  %540 = vperm.xlu0 %3133, %v299_v57  }
 0x155   : > { %912 = vrot.lane.b32.xlu1 %v897_v35, %s3293_s27 }
 0x15c   : > { %545 = vperm.xlu2 %3132, %v300_v25  }
 0x15d   : > { %951 = vperm.xlu1 %3134, %v315_v4  }
 0x165   : > { %550 = vperm.xlu1 %3134, %v301_v63   ;;  %v3942_v63 = vpop.f32.mrf.mxu0 }
 0x178   : > { %v3911_v9 = vpop.permute.xlu2 %827 }
 0x18e   : > { %v832_v1 = vpop.permute.xlu2 %831 }
 0x190   : > { %v3915_v60 = vpop.permute.xlu1 %819 }
 0x191   : > { %v3913_v50 = vpop.permute.xlu0 %904 }
 0x196   : > { %v909_v26 = vpop.permute.xlu2 %908 }
 0x19e   : > { %v822_v21 = vpop.permute.xlu0 %821  ;;  %v830_v42 = vpop.permute.xlu1 %829 }
 0x19f   : > { %v834_v47 = vpop.permute.xlu2 %833  ;;  %v841_v25 = vsel %vm835_vm8, %v830_v42, %v822_v21 }
 0x1a6   : > { %v907_v56 = vpop.permute.xlu0 %906 }
 0x1a7   : > { %v915_v13 = vpop.permute.xlu1 %914  ;;  %v3935_v35 = vpop.permute.xlu2 %961 }
 0x1a8   : > { %6298 = vst [vmem:[#allocation47_spill] sm:$0xff] %v3935_v35 }
 0x1ae   : > { %v917_v48 = vpop.permute.xlu0 %916 }
 0x1af   : > { %v927_v17 = vsel %vm920_vm7, %v917_v48, %v909_v26  ;;  %v824_v38 = vpop.permute.xlu1 %823  ;;  %v923_v61 = vsel %vm920_vm7, %v909_v26, %v917_v48  ;;  %v850_v26 = vsel %vm502_vm10, %v841_v25, 0.0 }
 0x1b0   : > { %v938_v8 = vsel %vm505_vm9, %v927_v17, 0.0  ;;  %v838_v23 = vsel %vm835_vm8, %v824_v38, %v832_v1  ;;  %v842_v22 = vsel %vm835_vm8, %v832_v1, %v824_v38  ;;  %v3953_v38 = vpop.f32.mrf.mxu1 }
 0x1b1   : > { %v852_v33 = vsel %vm502_vm10, %v842_v22, 0.0  ;;  %v861_v20 = vadd.f32 %v838_v23, %v3792_v3  ;;  %v837_v22 = vsel %vm835_vm8, %v822_v21, %v830_v42 }
 0x1b2   : > { %v860_v30 = vadd.f32 %v852_v33, %v3790_v12  ;;  %v859_v21 = vadd.f32 %v837_v22, %v3828_v6 }
 0x1b3   : > { %v946_v32 = vadd.f32 %v938_v8, %v861_v20  ;;  %v926_v8 = vsel %vm920_vm7, %v915_v13, %v907_v56  ;;  %v858_v20 = vadd.f32 %v850_v26, %v3825_v18 }
 0x1b4   : > { %v945_v57 = vadd.f32 %v923_v61, %v860_v30  ;;  %v922_v30 = vsel %vm920_vm7, %v907_v56, %v915_v13  ;;  %v936_v61 = vsel %vm505_vm9, %v926_v8, 0.0  ;;  %v3977_v8 = vpop.f32.mrf.mxu0 }
 0x1b5   : > { %v3940_v4 = vadd.f32 %v3935_v35, %v946_v32  ;;  %v943_v42 = vadd.f32 %v922_v30, %v858_v20 }
 0x1b6   : > { %v3945_v1 = vadd.f32 %v3935_v35, %v945_v57  ;;  %v911_v3 = vpop.permute.xlu0 %910  ;;  %v944_v35 = vadd.f32 %v936_v61, %v859_v21 }
 0x1b7   : > { %v826_v12 = vpop.permute.xlu1 %825  ;;  %v982_v17 = vmul.f32 %v3940_v4, %v3940_v4 }
 0x1b8   : > { %v981_v48 = vmul.f32 %v3945_v1, %v3945_v1  ;;  %v843_v23 = vsel %vm835_vm8, %v834_v47, %v826_v12  ;;  %v839_v32 = vsel %vm835_vm8, %v826_v12, %v834_v47  ;;  %v3994_v30 = vpop.f32.mrf.mxu1 }
 0x1b9   : > { %v854_v57 = vsel %vm502_vm10, %v843_v23, 0.0  ;;  %v990_v25 = vmul.f32 %v982_v17, %v3940_v4  ;;  %v863_v56 = vadd.f32 %v839_v32, %v3859_v53 }
 0x1ba   : > { %v989_v33 = vmul.f32 %v981_v48, %v3945_v1  ;;  %v862_v18 = vadd.f32 %v854_v57, %v3857_v19 }
 0x1bb   : > { %v998_v17 = vmul.f32 0.044715, %v990_v25 }
 0x1bc   : > { %v997_v48 = vmul.f32 0.044715, %v989_v33 }
 0x1be   : > { %v3975_v13 = vpop.permute.xlu0 %956  ;;  %v1005_v33 = vadd.f32 %v997_v48, %v3945_v1 }
 0x1bf   : > { %6299 = vst [vmem:[#allocation34_spill] sm:$0xff] %v3975_v13  ;;  %v919_v26 = vpop.permute.xlu1 %918  ;;  %v3984_v6 = vadd.f32 %v3975_v13, %v943_v42  ;;  %v3989_v53 = vadd.f32 %v3975_v13, %v944_v35  ;;  %v1006_v35 = vadd.f32 %v998_v17, %v3940_v4  ;;  %v840_v42 = vsel %vm835_vm8, %v3911_v9, %v3915_v60 }
 0x1c0   : > { %v924_v47 = vsel %vm920_vm7, %v911_v3, %v919_v26  ;;  %v928_v12 = vsel %vm920_vm7, %v919_v26, %v911_v3  ;;  %v836_v26 = vsel %vm835_vm8, %v3915_v60, %v3911_v9 }
 0x1c1   : > { %v940_v19 = vsel %vm505_vm9, %v928_v12, 0.0  ;;  %v947_v23 = vadd.f32 %v924_v47, %v862_v18  ;;  %v979_v20 = vmul.f32 %v3984_v6, %v3984_v6  ;;  %v980_v61 = vmul.f32 %v3989_v53, %v3989_v53 }
 0x1c2   : > { %v948_v22 = vadd.f32 %v940_v19, %v863_v56  ;;  %v1013_v18 = vmul.f32 0.7978846, %v1005_v33  ;;  %v848_v33 = vsel %vm502_vm10, %v840_v42, 0.0 }
 0x1c3   : > { %v3997_v3 = vadd.f32 %v3909_v44, %v947_v23  ;;  %v987_v57 = vmul.f32 %v979_v20, %v3984_v6  ;;  %v988_v21 = vmul.f32 %v980_v61, %v3989_v53  ;;  %v857_v61 = vadd.f32 %v836_v26, %v3875_v28 }
 0x1c4   : > { %v4002_v32 = vadd.f32 %v3909_v44, %v948_v22  ;;  %v1014_v22 = vmul.f32 0.7978846, %v1006_v35  ;;  %3135 = vtanh.f32 %v1013_v18  ;;  %v856_v42 = vadd.f32 %v848_v33, %v3878_v31  ;;  %v659_v18 = vpop.f32.mrf.mxu1 }
 0x1c5   : > { %v983_v25 = vmul.f32 %v3997_v3, %v3997_v3  ;;  %v995_v56 = vmul.f32 0.044715, %v987_v57  ;;  %v996_v17 = vmul.f32 0.044715, %v988_v21  ;;  %v618_v57 = vpop.f32.mrf.mxu0 }
 0x1c6   : > { %v984_v48 = vmul.f32 %v4002_v32, %v4002_v32  ;;  %3137 = vtanh.f32 %v1014_v22 }
 0x1c7   : > { %v913_v47 = vpop.permute.xlu1 %912  ;;  %v991_v12 = vmul.f32 %v983_v25, %v3997_v3  ;;  %v1003_v9 = vadd.f32 %v995_v56, %v3984_v6  ;;  %v1004_v21 = vadd.f32 %v996_v17, %v3989_v53 }
 0x1c8   : > { %v925_v19 = vsel %vm920_vm7, %v913_v47, %v3913_v50  ;;  %v992_v23 = vmul.f32 %v984_v48, %v4002_v32  ;;  %v921_v60 = vsel %vm920_vm7, %v3913_v50, %v913_v47 }
 0x1c9   : > { %v999_v20 = vmul.f32 0.044715, %v991_v12  ;;  %v934_v25 = vsel %vm505_vm9, %v925_v19, 0.0  ;;  %v1011_v48 = vmul.f32 0.7978846, %v1003_v9  ;;  %v941_v12 = vadd.f32 %v921_v60, %v856_v42 }
 0x1ca   : > { %v1000_v44 = vmul.f32 0.044715, %v992_v23  ;;  %v1012_v56 = vmul.f32 0.7978846, %v1004_v21  ;;  %v942_v23 = vadd.f32 %v934_v25, %v857_v61  ;;  %v3136_v47 = vpop.eup %3135 }
 0x1cb   : > { %v1007_v35 = vadd.f32 %v999_v20, %v3997_v3  ;;  %3139 = vtanh.f32 %v1011_v48  ;;  %v1029_v9 = vadd.f32 1.0, %v3136_v47 }
 0x1cc   : > { %v1008_v28 = vadd.f32 %v1000_v44, %v4002_v32  ;;  %v4045_v44 = vpop.permute.xlu2 %555  ;;  %v3138_v19 = vpop.eup %3137 }
 0x1cd   : > { %v1015_v26 = vmul.f32 0.7978846, %v1007_v35  ;;  %6301 = vst [vmem:[#allocation50_spill] sm:$0xff] %v4045_v44  ;;  %v621_v61 = vpop.f32.mrf.mxu0  ;;  %v1030_v35 = vadd.f32 1.0, %v3138_v19  ;;  %v1037_v47 = vmul.f32 0.5, %v1029_v9 }
 0x1ce   : > { %v1016_v13 = vmul.f32 0.7978846, %v1008_v28 }
 0x1cf   : > { %v4037_v50 = vpop.permute.xlu1 %951  ;;  %3141 = vtanh.f32 %v1015_v26 }
 0x1d0   : > { %6300 = vst [vmem:[#allocation10_spill] sm:$0xff] %v4037_v50  ;;  %3143 = vtanh.f32 %v1016_v13  ;;  %v4040_v17 = vadd.f32 %v4037_v50, %v941_v12  ;;  %v4043_v31 = vadd.f32 %v4037_v50, %v942_v23  ;;  %v662_v12 = vpop.f32.mrf.mxu1  ;;  %v622_v50 = vadd.f32 %v621_v61, %v4045_v44 }
 0x1d1   : > { %3145 = vtanh.f32 %v1012_v56  ;;  %v3140_v20 = vpop.eup %3139 }
 0x1d2   : > { %v977_v22 = vmul.f32 %v4040_v17, %v4040_v17  ;;  %v978_v33 = vmul.f32 %v4043_v31, %v4043_v31  ;;  %v1027_v21 = vadd.f32 1.0, %v3140_v20 }
 0x1d4   : > { %v985_v13 = vmul.f32 %v977_v22, %v4040_v17  ;;  %v986_v60 = vmul.f32 %v978_v33, %v4043_v31  ;;  %v1035_v45 = vmul.f32 0.5, %v1027_v21  ;;  %v1038_v33 = vmul.f32 0.5, %v1030_v35  ;;  %v4061_v11 = vpop.permute.xlu2 %545 }
 0x1d5   : > { %v3142_v25 = vpop.eup %3141  ;;  %6303 = vst [vmem:[#allocation52_spill] sm:$0xff] %v4061_v11 }
 0x1d6   : > { %v3144_v42 = vpop.eup %3143  ;;  %v1031_v28 = vadd.f32 1.0, %v3142_v25  ;;  %v993_v48 = vmul.f32 0.044715, %v985_v13  ;;  %v994_v26 = vmul.f32 0.044715, %v986_v60  ;;  %v663_v60 = vadd.f32 %v662_v12, %v4045_v44  ;;  %v6341_v44 = vld [vmem:[#allocation21_spill] sm:$0xff] }
 0x1d7   : > { %v3146_v56 = vpop.eup %3145  ;;  %v4053_v23 = vpop.permute.xlu1 %550  ;;  %v1032_v34 = vadd.f32 1.0, %v3144_v42  ;;  %v1045_v42 = vmul.f32 %v1037_v47, %v3945_v1 }
 0x1d8   : > { %6302 = vst [vmem:[#allocation51_spill] sm:$0xff] %v4053_v23  ;;  %v1039_v62 = vmul.f32 0.5, %v1031_v28  ;;  %v1028_v22 = vadd.f32 1.0, %v3146_v56  ;;  %v1001_v19 = vadd.f32 %v993_v48, %v4040_v17  ;;  %v1002_v20 = vadd.f32 %v994_v26, %v4043_v31 }
 0x1d9   : > { %v1040_v36 = vmul.f32 0.5, %v1032_v34  ;;  %v619_v25 = vadd.f32 %v618_v57, %v4053_v23  ;;  %v660_v9 = vadd.f32 %v659_v18, %v4053_v23  ;;  %v1043_v28 = vmul.f32 %v1035_v45, %v3984_v6 }
 0x1da   : > { %v1047_v13 = vmul.f32 %v1039_v62, %v3997_v3  ;;  %v1036_v43 = vmul.f32 0.5, %v1028_v22  ;;  %v1009_v21 = vmul.f32 0.7978846, %v1001_v19  ;;  %v1010_v34 = vmul.f32 0.7978846, %v1002_v20  ;;  %v304_v20 = vld [vmem:[%s6066_s5 + $0x8] sm:$0xff] }
 0x1db   : > { %v1048_v61 = vmul.f32 %v1040_v36, %v4002_v32  ;;  %v1046_v62 = vmul.f32 %v1038_v33, %v3940_v4  ;;  %v1053_v57 = vmul.f32 %v1045_v42, %v619_v25  ;;  %v616_v36 = vadd.f32 %v3977_v8, %v4061_v11  ;;  %v303_v33 = vld [vmem:[%s6066_s5] sm:$0xff] }
 0x1dc   : > { %v1055_v35 = vmul.f32 %v1047_v13, %v622_v50  ;;  %v1044_v3 = vmul.f32 %v1036_v43, %v3989_v53  ;;  %3147 = vtanh.f32 %v1009_v21  ;;  %v657_v18 = vadd.f32 %v3994_v30, %v4061_v11  ;;  %v4073_v53 = vpop.permute.xlu0 %540  ;;  %v2927_v13 = vld [vmem:[%s3363_s11 + $0x90] sm:$0xff]  ;;  %v2925_v25 = vld [vmem:[%s3363_s11 + $0x80] sm:$0xff]  ;;  %v2924_v21 = vld [vmem:[%s3363_s11 + $0x78] sm:$0xff] }
 0x1dd   : > { %v1056_v48 = vmul.f32 %v1048_v61, %v663_v60  ;;  %3149 = vtanh.f32 %v1010_v34  ;;  %v1054_v32 = vmul.f32 %v1046_v62, %v660_v9  ;;  %v1051_v1 = vmul.f32 %v1043_v28, %v616_v36  ;;  %6304 = vst [vmem:[#allocation53_spill] sm:$0xff] %v4073_v53  ;;  %v2928_v60 = vld [vmem:[%s3363_s11 + $0x98] sm:$0xff]  ;;  %v2926_v61 = vld [vmem:[%s3363_s11 + $0x88] sm:$0xff]  ;;  %v2923_v9 = vld [vmem:[%s3363_s11 + $0x70] sm:$0xff] }
 0x1de   : > { %1118 = vmatpush.msra.mxu2 %v1055_v35  ;;  %v1052_v45 = vmul.f32 %v1044_v3, %v657_v18  ;;  %v613_v30 = vadd.f32 %v3942_v63, %v4073_v53  ;;  %v654_v12 = vadd.f32 %v3953_v38, %v4073_v53  ;;  %v2931_v63 = vld [vmem:[%s3363_s11 + $0xb0] sm:$0xff]  ;;  %v2932_v38 = vld [vmem:[%s3363_s11 + $0xb8] sm:$0xff]  ;;  %v2922_v35 = vld [vmem:[%s3363_s11 + $0x68] sm:$0xff] }
 0x1df   : > { %1153 = vmatpush.msra.mxu3 %v1056_v48  ;;  %v305_v34 = vld [vmem:[%s6066_s5 + $0x10] sm:$0xff]  ;;  %v2921_v42 = vld [vmem:[%s3363_s11 + $0x60] sm:$0xff]  ;;  %v306_v28 = vld [vmem:[%s6066_s5 + $0x18] sm:$0xff] }
 0x1e0   : > { %1119 = vmatpush.msra.mxu2 %v1053_v57  ;;  %v307_v48 = vld [vmem:[%s6066_s5 + $0x20] sm:$0xff]  ;;  %v308_v62 = vld [vmem:[%s6066_s5 + $0x28] sm:$0xff]  ;;  %v3201_v36 = vld [vmem:[%s6062_s1 + $0x10] sm:$0xff] }
 0x1e1   : > { %1154 = vmatpush.msra.mxu3 %v1054_v32  ;;  %v3199_v3 = vld [vmem:[%s6062_s1] sm:$0xff]  ;;  %v3200_v57 = vld [vmem:[%s6062_s1 + $0x8] sm:$0xff]  ;;  %v2983_v32 = vld [vmem:[%s3363_s11 + $0x110] sm:$0xff] }
 0x1e2   : > { %1120 = vmatpush.msra.mxu2 %v1051_v1  ;;  %v3148_v4 = vpop.eup %3147  ;;  %v2984_v18 = vld [vmem:[%s3363_s11 + $0x118] sm:$0xff]  ;;  %v2981_v1 = vld [vmem:[%s3363_s11 + $0x100] sm:$0xff] }
 0x1e3   : > { %1155 = vmatpush.msra.mxu3 %v1052_v45  ;;  %v3150_v43 = vpop.eup %3149  ;;  %v1025_v6 = vadd.f32 1.0, %v3148_v4  ;;  %v2982_v45 = vld [vmem:[%s3363_s11 + $0x108] sm:$0xff]  ;;  %v3202_v4 = vld [vmem:[%s6062_s1 + $0x18] sm:$0xff] }
 0x1e4   : > { %v1026_v50 = vadd.f32 1.0, %v3150_v43  ;;  %v2979_v43 = vld [vmem:[%s3363_s11 + $0xf0] sm:$0xff] }
 0x1e5   : > { %v1033_v8 = vmul.f32 0.5, %v1025_v6  ;;  %v2980_v6 = vld [vmem:[%s3363_s11 + $0xf8] sm:$0xff] }
 0x1e6   : > { %v1034_v26 = vmul.f32 0.5, %v1026_v50  ;;  %v2977_v50 = vld [vmem:[%s3363_s11 + $0xe0] sm:$0xff] }
 0x1e7   : > { %v1041_v56 = vmul.f32 %v1033_v8, %v4040_v17  ;;  %v2929_v17 = vld [vmem:[%s3363_s11 + $0xa0] sm:$0xff]  ;;  %v2978_v8 = vld [vmem:[%s3363_s11 + $0xe8] sm:$0xff] }
 0x1e8   : > { %v1042_v47 = vmul.f32 %v1034_v26, %v4043_v31  ;;  %v2930_v31 = vld [vmem:[%s3363_s11 + $0xa8] sm:$0xff]  ;;  %v2975_v26 = vld [vmem:[%s3363_s11 + $0xd0] sm:$0xff] }
 0x1e9   : > { %v1049_v22 = vmul.f32 %v1041_v56, %v613_v30  ;;  %v2976_v30 = vld [vmem:[%s3363_s11 + $0xd8] sm:$0xff]  ;;  %v2974_v56 = vld [vmem:[%s3363_s11 + $0xc8] sm:$0xff] }
 0x1ea   : > { %v1050_v19 = vmul.f32 %v1042_v47, %v654_v12  ;;  %v2973_v12 = vld [vmem:[%s3363_s11 + $0xc0] sm:$0xff]  ;;  %v6305_v47 = vld [vmem:[#allocation36_spill] sm:$0xff] }
 0x1eb   : > { %1121 = vmatpush.msra.mxu2 %v1049_v22  ;;  %v6306_v22 = vld [vmem:[#allocation38_spill] sm:$0xff] }
 0x1ec   : > { %1156 = vmatpush.msra.mxu3 %v1050_v19  ;;  %2909 = vmatmul.msk.f32.vlgmr.msra.gmra.mxu2 %vm1087_vm11, %v303_v33  ;;  %v6308_v19 = vld [vmem:[#allocation44_spill] sm:$0xff] }
 0x1ed   : > { %2915 = vmatmul.msk.f32.vlgmr.msra.gmra.mxu3 %vm1087_vm11, %v303_v33  ;;  %1223 = vmatpush.msrb.mxu2 %v2931_v63  ;;  %v6307_v33 = vld [vmem:[#allocation40_spill] sm:$0xff] }
 0x1ee   : > { %1264 = vmatpush.msrb.mxu3 %v2932_v38 }
 0x1ef   : > { %1224 = vmatpush.msrb.mxu2 %v2929_v17 }
 0x1f0   : > { %1265 = vmatpush.msrb.mxu3 %v2930_v31 }
 0x1f1   : > { %1225 = vmatpush.msrb.mxu2 %v2927_v13 }
 0x1f2   : > { %1266 = vmatpush.msrb.mxu3 %v2928_v60 }
 0x1f3   : > { %1226 = vmatpush.msrb.mxu2 %v2925_v25  ;;  %v3204_v25 = vld [vmem:[%s6062_s1 + $0x28] sm:$0xff] }
 0x1f4   : > { %2910 = vmatmul.msk.f32.gmra.mxu2 %vm1087_vm11, %v304_v20  ;;  %1267 = vmatpush.msrb.mxu3 %v2926_v61 }
 0x1f5   : > { %2916 = vmatmul.msk.f32.gmra.mxu3 %vm1087_vm11, %v304_v20  ;;  %1227 = vmatpush.msrb.mxu2 %v2923_v9  ;;  %v3203_v20 = vld [vmem:[%s6062_s1 + $0x20] sm:$0xff] }
 0x1f6   : > { %1268 = vmatpush.msrb.mxu3 %v2924_v21 }
 0x1f7   : > { %1228 = vmatpush.msrb.mxu2 %v2921_v42 }
 0x1f8   : > { %1269 = vmatpush.msrb.mxu3 %v2922_v35 }
 0x1f9   : > { %1765 = vmatpush.msra.mxu2 %v2983_v32  ;;  %v6322_v32 = vld [vmem:[#allocation2_spill] sm:$0xff] }
 0x1fa   : > { %1806 = vmatpush.msra.mxu3 %v2984_v18 }
 0x1fb   : > { %1766 = vmatpush.msra.mxu2 %v2981_v1 }
 0x1fc   : > { %2911 = vmatmul.msk.f32.gmra.mxu2 %vm1087_vm11, %v305_v34  ;;  %1807 = vmatpush.msra.mxu3 %v2982_v45 }
 0x1fd   : > { %2917 = vmatmul.msk.f32.gmra.mxu3 %vm1087_vm11, %v305_v34  ;;  %1767 = vmatpush.msra.mxu2 %v2979_v43  ;;  %v6323_v43 = vld [vmem:[#allocation16_spill] sm:$0xff] }
 0x1fe   : > { %1808 = vmatpush.msra.mxu3 %v2980_v6 }
 0x1ff   : > { %1768 = vmatpush.msra.mxu2 %v2977_v50 }
 0x200   : > { %1809 = vmatpush.msra.mxu3 %v2978_v8 }
 0x201   : > { %1769 = vmatpush.msra.mxu2 %v2975_v26 }
 0x202   : > { %1810 = vmatpush.msra.mxu3 %v2976_v30 }
 0x203   : > { %1770 = vmatpush.msra.mxu2 %v2973_v12 }
 0x204   : > { %2912 = vmatmul.msk.f32.gmra.mxu2 %vm1087_vm11, %v306_v28  ;;  %1811 = vmatpush.msra.mxu3 %v2974_v56  ;;  %v6324_v56 = vld [vmem:[#allocation13_spill] sm:$0xff] }
 0x205   : > { %2918 = vmatmul.msk.f32.gmra.mxu3 %vm1087_vm11, %v306_v28 }
 0x20c   : > { %2913 = vmatmul.msk.f32.gmra.mxu2 %vm1087_vm11, %v307_v48 }
 0x20d   : > { %2919 = vmatmul.msk.f32.gmra.mxu3 %vm1087_vm11, %v307_v48  ;;  %v6321_v48 = vld [vmem:[#allocation3_spill] sm:$0xff] }
 0x214   : > { %2914 = vmatmul.msk.f32.gmra.mxu2 %vm1087_vm11, %v308_v62 }
 0x215   : > { %2920 = vmatmul.msk.f32.gmra.mxu3 %vm1087_vm11, %v308_v62 }
 0x21c   : > { %2933 = vmatmul.msk.f32.vlgmr.msrb.gmra.mxu2 %vm558_vm0, %v3199_v3 }
 0x21d   : > { %2941 = vmatmul.msk.f32.vlgmr.msrb.gmra.mxu3 %vm558_vm0, %v3199_v3 }
 0x224   : > { %2934 = vmatmul.msk.f32.gmra.mxu2 %vm558_vm0, %v3200_v57 }
 0x225   : > { %2942 = vmatmul.msk.f32.gmra.mxu3 %vm558_vm0, %v3200_v57 }
 0x22c   : > { %2935 = vmatmul.msk.f32.gmra.mxu2 %vm558_vm0, %v3201_v36 }
 0x22d   : > { %2943 = vmatmul.msk.f32.gmra.mxu3 %vm558_vm0, %v3201_v36 }
 0x234   : > { %2936 = vmatmul.msk.f32.gmra.mxu2 %vm558_vm0, %v3202_v4 }
 0x235   : > { %2944 = vmatmul.msk.f32.gmra.mxu3 %vm558_vm0, %v3202_v4 }
 0x23c   : > { %2937 = vmatmul.msk.f32.gmra.mxu2 %vm558_vm0, %v6305_v47 }
 0x23d   : > { %2945 = vmatmul.msk.f32.gmra.mxu3 %vm558_vm0, %v6305_v47 }
 0x244   : > { %2938 = vmatmul.msk.f32.gmra.mxu2 %vm558_vm0, %v6306_v22 }
 0x245   : > { %2946 = vmatmul.msk.f32.gmra.mxu3 %vm558_vm0, %v6306_v22 }
 0x24c   : > { %2939 = vmatmul.msk.f32.gmra.mxu2 %vm558_vm0, %v6307_v33 }
 0x24d   : > { %2947 = vmatmul.msk.f32.gmra.mxu3 %vm558_vm0, %v6307_v33 }
 0x254   : > { %2940 = vmatmul.msk.f32.gmra.mxu2 %vm558_vm0, %v6308_v19 }
 0x255   : > { %2948 = vmatmul.msk.f32.gmra.mxu3 %vm558_vm0, %v6308_v19 }
 0x25c   : > { %2985 = vmatmul.msk.f32.vlgmr.msra.gmra.mxu2 %vm558_vm0, %v3199_v3 }
 0x25d   : > { %2993 = vmatmul.msk.f32.vlgmr.msra.gmra.mxu3 %vm558_vm0, %v3199_v3 }
 0x264   : > { %2986 = vmatmul.msk.f32.gmra.mxu2 %vm558_vm0, %v3200_v57 }
 0x265   : > { %2994 = vmatmul.msk.f32.gmra.mxu3 %vm558_vm0, %v3200_v57 }
 0x26c   : > { %2987 = vmatmul.msk.f32.gmra.mxu2 %vm558_vm0, %v3201_v36 }
 0x26d   : > { %2995 = vmatmul.msk.f32.gmra.mxu3 %vm558_vm0, %v3201_v36 }
 0x26f   : > { %v4177_v63 = vpop.f32.mrf.mxu2 }
 0x270   : > { %6309 = vst [vmem:[#allocation36_spill] sm:$0xff] %v4177_v63  ;;  %v4179_v38 = vpop.f32.mrf.mxu3 }
 0x271   : > { %6310 = vst [vmem:[#allocation38_spill] sm:$0xff] %v4179_v38 }
 0x274   : > { %2988 = vmatmul.msk.f32.gmra.mxu2 %vm558_vm0, %v3202_v4 }
 0x275   : > { %2996 = vmatmul.msk.f32.gmra.mxu3 %vm558_vm0, %v3202_v4 }
 0x277   : > { %v4183_v17 = vpop.f32.mrf.mxu2 }
 0x278   : > { %6311 = vst [vmem:[#allocation40_spill] sm:$0xff] %v4183_v17  ;;  %v4185_v31 = vpop.f32.mrf.mxu3 }
 0x279   : > { %6312 = vst [vmem:[#allocation44_spill] sm:$0xff] %v4185_v31  ;;  %v6338_v31 = vld [vmem:[#allocation43_spill] sm:$0xff] }
 0x27c   : > { %2989 = vmatmul.msk.f32.gmra.mxu2 %vm558_vm0, %v3203_v20 }
 0x27d   : > { %2997 = vmatmul.msk.f32.gmra.mxu3 %vm558_vm0, %v3203_v20 }
 0x27f   : > { %v4192_v13 = vpop.f32.mrf.mxu2 }
 0x280   : > { %6313 = vst [vmem:[#allocation54_spill] sm:$0xff] %v4192_v13  ;;  %v4194_v60 = vpop.f32.mrf.mxu3 }
 0x281   : > { %6314 = vst [vmem:[#allocation55_spill] sm:$0xff] %v4194_v60 }
 0x284   : > { %2990 = vmatmul.msk.f32.gmra.mxu2 %vm558_vm0, %v6306_v22 }
 0x285   : > { %2998 = vmatmul.msk.f32.gmra.mxu3 %vm558_vm0, %v3204_v25 }
 0x287   : > { %v4202_v61 = vpop.f32.mrf.mxu2 }
 0x288   : > { %6315 = vst [vmem:[#allocation56_spill] sm:$0xff] %v4202_v61  ;;  %v4204_v9 = vpop.f32.mrf.mxu3 }
 0x289   : > { %6316 = vst [vmem:[#allocation57_spill] sm:$0xff] %v4204_v9 }
 0x28c   : > { %2991 = vmatmul.msk.f32.gmra.mxu2 %vm558_vm0, %v6307_v33 }
 0x28d   : > { %2999 = vmatmul.msk.f32.gmra.mxu3 %vm558_vm0, %v6307_v33 }
 0x28f   : > { %v4210_v21 = vpop.f32.mrf.mxu2 }
 0x290   : > { %6317 = vst [vmem:[#allocation58_spill] sm:$0xff] %v4210_v21  ;;  %v4212_v34 = vpop.f32.mrf.mxu3 }
 0x291   : > { %6318 = vst [vmem:[#allocation59_spill] sm:$0xff] %v4212_v34 }
 0x294   : > { %2992 = vmatmul.msk.f32.gmra.mxu2 %vm558_vm0, %v6308_v19 }
 0x295   : > { %3000 = vmatmul.msk.f32.gmra.mxu3 %vm558_vm0, %v6308_v19 }
 0x297   : > { %v4218_v35 = vpop.f32.mrf.mxu2 }
 0x298   : > { %6319 = vst [vmem:[#allocation60_spill] sm:$0xff] %v4218_v35  ;;  %v4220_v42 = vpop.f32.mrf.mxu3 }
 0x299   : > { %6320 = vst [vmem:[#allocation61_spill] sm:$0xff] %v4220_v42 }
 0x29f   : > { %v1230_v28 = vpop.f32.mrf.mxu2 }
 0x2a0   : > { %v4223_v62 = vadd.f32 %v1230_v28, %v6321_v48  ;;  %v1271_v3 = vpop.f32.mrf.mxu3 }
 0x2a1   : > { %v4226_v57 = vadd.f32 %v1271_v3, %v6321_v48 }
 0x2a2   : > { %1295 = vrot.lane.b32.xlu2 %v4223_v62, %s3290_s13  ;;  %v1407_v23 = vmul.f32 %v4223_v62, %v6341_v44 }
 0x2a3   : > { %1335 = vrot.lane.b32.xlu1 %v4226_v57, %s3291_s14  ;;  %1303 = vrot.lane.b32.xlu0 %v4226_v57, %s3290_s13 }
 0x2a7   : > { %v1233_v36 = vpop.f32.mrf.mxu2 }
 0x2a8   : > { %v4235_v18 = vadd.f32 %v1233_v36, %v6322_v32  ;;  %v1274_v1 = vpop.f32.mrf.mxu3 }
 0x2a9   : > { %v4238_v45 = vadd.f32 %v1274_v1, %v6322_v32 }
 0x2ab   : > { %1297 = vrot.lane.b32.xlu1 %v4235_v18, %s3290_s13  ;;  %1327 = vrot.lane.b32.xlu0 %v4223_v62, %s3291_s14 }
 0x2ac   : > { %1305 = vrot.lane.b32.xlu2 %v4238_v45, %s3290_s13 }
 0x2af   : > { %v1236_v4 = vpop.f32.mrf.mxu2 }
 0x2b0   : > { %v4247_v6 = vadd.f32 %v1236_v4, %v6323_v43  ;;  %v1277_v50 = vpop.f32.mrf.mxu3 }
 0x2b1   : > { %v4256_v30 = vadd.f32 %v1277_v50, %v6323_v43 }
 0x2b3   : > { %1329 = vrot.lane.b32.xlu1 %v4235_v18, %s3291_s14  ;;  %1299 = vrot.lane.b32.xlu0 %v4247_v6, %s3290_s13 }
 0x2b4   : > { %1337 = vrot.lane.b32.xlu2 %v4238_v45, %s3291_s14 }
 0x2b7   : > { %v1239_v8 = vpop.f32.mrf.mxu2 }
 0x2b8   : > { %v1280_v26 = vpop.f32.mrf.mxu3  ;;  %v4272_v33 = vadd.f32 %v1239_v8, %v6324_v56 }
 0x2b9   : > { %v4259_v12 = vadd.f32 %v1280_v26, %v6324_v56 }
 0x2bb   : > { %1307 = vrot.lane.b32.xlu1 %v4256_v30, %s3290_s13  ;;  %1331 = vrot.lane.b32.xlu0 %v4247_v6, %s3291_s14 }
 0x2bc   : > { %1309 = vrot.lane.b32.xlu2 %v4259_v12, %s3290_s13 }
 0x2bf   : > { %v4267_v47 = vpop.f32.mrf.mxu2 }
 0x2c0   : > { %6325 = vst [vmem:[#allocation62_spill] sm:$0xff] %v4267_v47  ;;  %v4269_v22 = vpop.f32.mrf.mxu3  ;;  %v6340_v47 = vld [vmem:[#allocation29_spill] sm:$0xff] }
 0x2c1   : > { %6326 = vst [vmem:[#allocation63_spill] sm:$0xff] %v4269_v22 }
 0x2c3   : > { %1339 = vrot.lane.b32.xlu1 %v4256_v30, %s3291_s14  ;;  %1341 = vrot.lane.b32.xlu0 %v4259_v12, %s3291_s14 }
 0x2c4   : > { %1333 = vrot.lane.b32.xlu2 %v4272_v33, %s3291_s14 }
 0x2c7   : > { %v4280_v19 = vpop.f32.mrf.mxu2 }
 0x2c8   : > { %6327 = vst [vmem:[#allocation64_spill] sm:$0xff] %v4280_v19  ;;  %v4282_v20 = vpop.f32.mrf.mxu3 }
 0x2c9   : > { %6328 = vst [vmem:[#allocation65_spill] sm:$0xff] %v4282_v20  ;;  %v6342_v20 = vld [vmem:[#allocation25_spill] sm:$0xff] }
 0x2cb   : > { %1301 = vrot.lane.b32.xlu1 %v4272_v33, %s3290_s13 }
 0x2cf   : > { %v4286_v25 = vpop.f32.mrf.mxu2 }
 0x2d0   : > { %6329 = vst [vmem:[#allocation66_spill] sm:$0xff] %v4286_v25  ;;  %v4288_v28 = vpop.f32.mrf.mxu3  ;;  %v1487_v25 = vmul.f32 %v4223_v62, %v6294_v0 }
 0x2d1   : > { %6330 = vst [vmem:[#allocation67_spill] sm:$0xff] %v4288_v28  ;;  %v1408_v28 = vmul.f32 %v4226_v57, %v6341_v44 }
 0x2d7   : > { %v4290_v3 = vpop.f32.mrf.mxu2 }
 0x2d8   : > { %6331 = vst [vmem:[#allocation68_spill] sm:$0xff] %v4290_v3  ;;  %v4292_v36 = vpop.f32.mrf.mxu3 }
 0x2d9   : > { %6332 = vst [vmem:[#allocation69_spill] sm:$0xff] %v4292_v36 }
 0x2df   : > { %v1772_v1 = vpop.f32.mrf.mxu2 }
 0x2e0   : > { %v4295_v4 = vadd.f32 %v1772_v1, %v6321_v48  ;;  %v1813_v50 = vpop.f32.mrf.mxu3 }
 0x2e1   : > { %v4298_v8 = vadd.f32 %v1813_v50, %v6321_v48 }
 0x2e2   : > { %1837 = vrot.lane.b32.xlu2 %v4295_v4, %s3290_s13 }
 0x2e3   : > { %1845 = vrot.lane.b32.xlu0 %v4298_v8, %s3290_s13 }
 0x2e7   : > { %v1775_v26 = vpop.f32.mrf.mxu2 }
 0x2e8   : > { %v4305_v42 = vadd.f32 %v1775_v26, %v6322_v32  ;;  %v1816_v35 = vpop.f32.mrf.mxu3 }
 0x2e9   : > { %v4308_v60 = vadd.f32 %v1816_v35, %v6322_v32 }
 0x2eb   : > { %6333 = vst [vmem:[#allocation70_spill] sm:$0xff] %v4308_v60  ;;  %1847 = vrot.lane.b32.xlu1 %v4308_v60, %s3290_s13  ;;  %1839 = vrot.lane.b32.xlu0 %v4305_v42, %s3290_s13 }
 0x2ec   : > { %1879 = vrot.lane.b32.xlu2 %v4308_v60, %s3291_s14 }
 0x2ef   : > { %v1778_v1 = vpop.f32.mrf.mxu2 }
 0x2f0   : > { %v1819_v50 = vpop.f32.mrf.mxu3  ;;  %v4329_v61 = vadd.f32 %v1778_v1, %v6323_v43 }
 0x2f1   : > { %v4317_v9 = vadd.f32 %v1819_v50, %v6323_v43  ;;  %v6339_v43 = vld [vmem:[#allocation33_spill] sm:$0xff] }
 0x2f2   : > { %6336 = vst [vmem:[#allocation73_spill] sm:$0xff] %v4329_v61  ;;  %v1367_v32 = vmul.f32 %v4223_v62, %v6339_v43  ;;  %v1368_v48 = vmul.f32 %v4226_v57, %v6339_v43 }
 0x2f3   : > { %6334 = vst [vmem:[#allocation71_spill] sm:$0xff] %v4317_v9  ;;  %1871 = vrot.lane.b32.xlu1 %v4305_v42, %s3291_s14  ;;  %1881 = vrot.lane.b32.xlu0 %v4317_v9, %s3291_s14 }
 0x2f4   : > { %1849 = vrot.lane.b32.xlu2 %v4317_v9, %s3290_s13 }
 0x2f7   : > { %v1781_v35 = vpop.f32.mrf.mxu2 }
 0x2f8   : > { %v4326_v26 = vadd.f32 %v1781_v35, %v6324_v56  ;;  %v1822_v50 = vpop.f32.mrf.mxu3 }
 0x2f9   : > { %v4338_v13 = vadd.f32 %v1822_v50, %v6324_v56 }
 0x2fa   : > { %6335 = vst [vmem:[#allocation72_spill] sm:$0xff] %v4326_v26 }
 0x2fb   : > { %1841 = vrot.lane.b32.xlu1 %v4329_v61, %s3290_s13  ;;  %1875 = vrot.lane.b32.xlu0 %v4326_v26, %s3291_s14  ;;  %6337 = vst [vmem:[#allocation74_spill] sm:$0xff] %v4338_v13 }
 0x2fc   : > { %1873 = vrot.lane.b32.xlu2 %v4329_v61, %s3291_s14  ;;  %v1296_v1 = vpop.permute.xlu2 %1295 }
 0x303   : > { %1883 = vrot.lane.b32.xlu1 %v4338_v13, %s3291_s14 }
 0x304   : > { %1851 = vrot.lane.b32.xlu2 %v4338_v13, %s3290_s13  ;;  %v6343_v13 = vld [vmem:[#allocation14_spill] sm:$0xff] }
 0x306   : > { %v1306_v22 = vpop.permute.xlu2 %1305 }
 0x30b   : > { %1843 = vrot.lane.b32.xlu1 %v4326_v26, %s3290_s13 }
 0x315   : > { %v1336_v35 = vpop.permute.xlu1 %1335  ;;  %v1304_v38 = vpop.permute.xlu0 %1303 }
 0x316   : > { %v1311_v63 = vsel %vm681_vm1, %v1296_v1, %v1304_v38  ;;  %v1315_v34 = vsel %vm681_vm1, %v1304_v38, %v1296_v1 }
 0x317   : > { %v1319_v50 = vsel %vm3649_vm3, %v1315_v34, 0.0  ;;  %v4354_v21 = vsel %vm3653_vm4, %v1311_v63, 0.0 }
 0x318   : > { %v1359_v17 = vmul.f32 %v1319_v50, %v6338_v31  ;;  %v1360_v56 = vmul.f32 %v4354_v21, %v6338_v31  ;;  %v1399_v34 = vmul.f32 %v1319_v50, %v6340_v47  ;;  %v1400_v63 = vmul.f32 %v4354_v21, %v6340_v47 }
 0x319   : > { %v1479_v53 = vmul.f32 %v1319_v50, %v6292_v51 }
 0x31a   : > { %v1375_v38 = vadd.f32 %v1367_v32, %v1359_v17  ;;  %v1376_v1 = vadd.f32 %v1368_v48, %v1360_v56  ;;  %v1416_v44 = vadd.f32 %v1408_v28, %v1400_v63  ;;  %v6344_v28 = vld [vmem:[#allocation7_spill] sm:$0xff]  ;;  %v1370_v63 = vmul.f32 %v4238_v45, %v3579_v14 }
 0x31b   : > { %v1495_v43 = vadd.f32 %v1487_v25, %v1479_v53 }
 0x31d   : > { %v1298_v36 = vpop.permute.xlu1 %1297  ;;  %v1328_v3 = vpop.permute.xlu0 %1327 }
 0x31e   : > { %v1312_v17 = vsel %vm681_vm1, %v1298_v36, %v1306_v22  ;;  %v1316_v48 = vsel %vm681_vm1, %v1306_v22, %v1298_v36  ;;  %v1343_v32 = vsel %vm718_vm2, %v1328_v3, %v1336_v35  ;;  %v1347_v56 = vsel %vm718_vm2, %v1336_v35, %v1328_v3 }
 0x31f   : > { %v1321_v50 = vsel %vm3649_vm3, %v1316_v48, 0.0  ;;  %v1322_v47 = vsel %vm3653_vm4, %v1312_v17, 0.0  ;;  %v1351_v62 = vsel %vm3657_vm5, %v1343_v32, 0.0  ;;  %v4389_v31 = vsel %vm3661_vm6, %v1347_v56, 0.0 }
 0x320   : > { %v1361_v22 = vmul.f32 %v1321_v50, %v3612_v24  ;;  %v1369_v36 = vmul.f32 %v4235_v18, %v3579_v14  ;;  %v1415_v3 = vadd.f32 %v1407_v23, %v1399_v34  ;;  %v1362_v35 = vmul.f32 %v1322_v47, %v3612_v24 }
 0x321   : > { %v1383_v48 = vmul.f32 %v1351_v62, %v3865_v41  ;;  %v1384_v17 = vmul.f32 %v4389_v31, %v3865_v41  ;;  %v1423_v19 = vmul.f32 %v1351_v62, %v6342_v20  ;;  %v1424_v56 = vmul.f32 %v4389_v31, %v6342_v20  ;;  %v1338_v41 = vpop.permute.xlu2 %1337  ;;  %v6345_v20 = vld [vmem:[#allocation22_spill] sm:$0xff] }
 0x322   : > { %v1377_v32 = vadd.f32 %v1369_v36, %v1361_v22  ;;  %v1503_v11 = vmul.f32 %v1351_v62, %v3552_v2  ;;  %v1401_v26 = vmul.f32 %v1321_v50, %v6343_v13  ;;  %v1402_v23 = vmul.f32 %v1322_v47, %v6343_v13 }
 0x323   : > { %v1409_v34 = vmul.f32 %v4235_v18, %v6344_v28  ;;  %v1432_v53 = vadd.f32 %v1424_v56, %v1416_v44  ;;  %v1431_v22 = vadd.f32 %v1423_v19, %v1415_v3  ;;  %v1410_v36 = vmul.f32 %v4238_v45, %v6344_v28 }
 0x324   : > { %v1511_v25 = vadd.f32 %v1503_v11, %v1495_v43  ;;  %v1482_v9 = vmul.f32 %v1322_v47, %v6345_v20  ;;  %v4411_v24 = vadd.f32 %v1384_v17, %v1376_v1  ;;  %v4413_v13 = vadd.f32 %v1383_v48, %v1375_v38  ;;  %v6348_v43 = vld [vmem:[#allocation18_spill] sm:$0xff]  ;;  %v6349_v17 = vld [vmem:[#allocation15_spill] sm:$0xff] }
 0x325   : > { %v1330_v62 = vpop.permute.xlu1 %1329  ;;  %v1300_v61 = vpop.permute.xlu0 %1299  ;;  %v1378_v60 = vadd.f32 %v1370_v63, %v1362_v35  ;;  %1447 = vrot.lane.b32.xlu2 %v1432_v53, %s3292_s26  ;;  %v1490_v47 = vmul.f32 %v4238_v45, %v6348_v43  ;;  %1439 = vrot.lane.b32.xlu1 %v1431_v22, %s3292_s26  ;;  %v1417_v1 = vadd.f32 %v1409_v34, %v1401_v26  ;;  %v6350_v63 = vld [vmem:[#allocation28_spill] sm:$0xff] }
 0x326   : > { %6346 = vst [vmem:[#allocation75_spill] sm:$0xff] %v4411_v24  ;;  %1519 = vrot.lane.b32.xlu0 %v1511_v25, %s3293_s27  ;;  %v1344_v11 = vsel %vm718_vm2, %v1330_v62, %v1338_v41  ;;  %v1348_v44 = vsel %vm718_vm2, %v1338_v41, %v1330_v62  ;;  %v1418_v3 = vadd.f32 %v1410_v36, %v1402_v23 }
 0x327   : > { %6347 = vst [vmem:[#allocation76_spill] sm:$0xff] %v4413_v13  ;;  %v1353_v19 = vsel %vm3657_vm5, %v1344_v11, 0.0  ;;  %v1354_v38 = vsel %vm3661_vm6, %v1348_v44, 0.0  ;;  %v1498_v53 = vadd.f32 %v1490_v47, %v1482_v9  ;;  %v1481_v34 = vmul.f32 %v1321_v50, %v6345_v20 }
 0x328   : > { %v1385_v35 = vmul.f32 %v1353_v19, %v3807_v52  ;;  %v1386_v48 = vmul.f32 %v1354_v38, %v3807_v52  ;;  %v1425_v56 = vmul.f32 %v1353_v19, %v6349_v17  ;;  %v1426_v41 = vmul.f32 %v1354_v38, %v6349_v17 }
 0x329   : > { %v1506_v45 = vmul.f32 %v1354_v38, %v6350_v63  ;;  %v1310_v47 = vpop.permute.xlu2 %1309 }
 0x32a   : > { %v1433_v25 = vadd.f32 %v1425_v56, %v1417_v1  ;;  %v1434_v22 = vadd.f32 %v1426_v41, %v1418_v3  ;;  %v4433_v62 = vadd.f32 %v1385_v35, %v1377_v32  ;;  %v4435_v11 = vadd.f32 %v1386_v48, %v1378_v60  ;;  %v6353_v60 = vld [vmem:[#allocation35_spill] sm:$0xff]  ;;  %v6354_v35 = vld [vmem:[#allocation37_spill] sm:$0xff] }
 0x32b   : > { %v1514_v44 = vadd.f32 %v1506_v45, %v1498_v53  ;;  %v1371_v32 = vmul.f32 %v4247_v6, %v6353_v60  ;;  %v1489_v1 = vmul.f32 %v4235_v18, %v6348_v43  ;;  %v1505_v3 = vmul.f32 %v1353_v19, %v6350_v63 }
 0x32c   : > { %6351 = vst [vmem:[#allocation77_spill] sm:$0xff] %v4433_v62  ;;  %v1372_v56 = vmul.f32 %v4256_v30, %v6353_v60 }
 0x32d   : > { %6352 = vst [vmem:[#allocation78_spill] sm:$0xff] %v4435_v11  ;;  %v1308_v26 = vpop.permute.xlu1 %1307  ;;  %v1332_v23 = vpop.permute.xlu0 %1331  ;;  %1441 = vrot.lane.b32.xlu2 %v1433_v25, %s3292_s26  ;;  %1529 = vrot.lane.b32.xlu1 %v1514_v44, %s3293_s27  ;;  %v1497_v45 = vadd.f32 %v1489_v1, %v1481_v34  ;;  %v1411_v34 = vmul.f32 %v4247_v6, %v3478_v40 }
 0x32e   : > { %1449 = vrot.lane.b32.xlu0 %v1434_v22, %s3292_s26  ;;  %v1313_v36 = vsel %vm681_vm1, %v1300_v61, %v1308_v26  ;;  %v1317_v9 = vsel %vm681_vm1, %v1308_v26, %v1300_v61 }
 0x32f   : > { %v1323_v38 = vsel %vm3649_vm3, %v1317_v9, 0.0  ;;  %v1324_v50 = vsel %vm3653_vm4, %v1313_v36, 0.0  ;;  %v1513_v25 = vadd.f32 %v1505_v3, %v1497_v45  ;;  %v1412_v3 = vmul.f32 %v4256_v30, %v3478_v40 }
 0x330   : > { %v1363_v48 = vmul.f32 %v1323_v38, %v6354_v35  ;;  %v1364_v61 = vmul.f32 %v1324_v50, %v6354_v35  ;;  %v1403_v22 = vmul.f32 %v1323_v38, %v3569_v10  ;;  %v1404_v44 = vmul.f32 %v1324_v50, %v3569_v10 }
 0x331   : > { %v1484_v26 = vmul.f32 %v1324_v50, %v3524_v58  ;;  %v1492_v50 = vmul.f32 %v4256_v30, %v3495_v46  ;;  %v1334_v45 = vpop.permute.xlu2 %1333  ;;  %v1483_v13 = vmul.f32 %v1323_v38, %v3524_v58 }
 0x332   : > { %v1379_v41 = vadd.f32 %v1371_v32, %v1363_v48  ;;  %v1380_v53 = vadd.f32 %v1372_v56, %v1364_v61 }
 0x335   : > { %v1340_v18 = vpop.permute.xlu1 %1339  ;;  %v1342_v1 = vpop.permute.xlu0 %1341 }
 0x336   : > { %1521 = vrot.lane.b32.xlu0 %v1513_v25, %s3293_s27  ;;  %v1345_v19 = vsel %vm718_vm2, %v1332_v23, %v1340_v18  ;;  %v1349_v36 = vsel %vm718_vm2, %v1340_v18, %v1332_v23  ;;  %v1500_v18 = vadd.f32 %v1492_v50, %v1484_v26  ;;  %v1346_v24 = vsel %vm718_vm2, %v1334_v45, %v1342_v1 }
 0x337   : > { %v1355_v9 = vsel %vm3657_vm5, %v1345_v19, 0.0  ;;  %v1356_v32 = vsel %vm3661_vm6, %v1349_v36, 0.0  ;;  %v1419_v19 = vadd.f32 %v1411_v34, %v1403_v22  ;;  %v1420_v36 = vadd.f32 %v1412_v3, %v1404_v44 }
 0x338   : > { %v1387_v48 = vmul.f32 %v1355_v9, %v3625_v29  ;;  %v1388_v23 = vmul.f32 %v1356_v32, %v3625_v29  ;;  %v1427_v61 = vmul.f32 %v1355_v9, %v3476_v39  ;;  %v1428_v56 = vmul.f32 %v1356_v32, %v3476_v39 }
 0x339   : > { %v1508_v25 = vmul.f32 %v1356_v32, %v3582_v15  ;;  %v1350_v30 = vsel %vm718_vm2, %v1342_v1, %v1334_v45  ;;  %v1373_v39 = vmul.f32 %v4272_v33, %v3560_v7  ;;  %v1491_v32 = vmul.f32 %v4247_v6, %v3495_v46 }
 0x33a   : > { %v1435_v62 = vadd.f32 %v1427_v61, %v1419_v19  ;;  %v1436_v29 = vadd.f32 %v1428_v56, %v1420_v36  ;;  %v4490_v26 = vadd.f32 %v1387_v48, %v1379_v41  ;;  %v4492_v22 = vadd.f32 %v1388_v23, %v1380_v53  ;;  %v6357_v56 = vld [vmem:[#allocation27_spill] sm:$0xff] }
 0x33b   : > { %v1516_v11 = vadd.f32 %v1508_v25, %v1500_v18  ;;  %v1413_v44 = vmul.f32 %v4272_v33, %v3471_v37  ;;  %v1414_v34 = vmul.f32 %v4259_v12, %v3471_v37  ;;  %v1374_v1 = vmul.f32 %v4259_v12, %v3560_v7 }
 0x33c   : > { %6355 = vst [vmem:[#allocation79_spill] sm:$0xff] %v4490_v26  ;;  %1451 = vrot.lane.b32.xlu1 %v1436_v29, %s3292_s26  ;;  %v1357_v6 = vsel %vm3657_vm5, %v1346_v24, 0.0  ;;  %v1358_v41 = vsel %vm3661_vm6, %v1350_v30, 0.0  ;;  %v1507_v53 = vmul.f32 %v1355_v9, %v3582_v15  ;;  %v1499_v24 = vadd.f32 %v1491_v32, %v1483_v13  ;;  %v6358_v9 = vld [vmem:[#allocation4_spill] sm:$0xff]  ;;  %v6359_v32 = vld [vmem:[#allocation5_spill] sm:$0xff] }
 0x33d   : > { %6356 = vst [vmem:[#allocation80_spill] sm:$0xff] %v4492_v22  ;;  %1531 = vrot.lane.b32.xlu2 %v1516_v11, %s3293_s27  ;;  %v1302_v38 = vpop.permute.xlu1 %1301  ;;  %v1389_v45 = vmul.f32 %v1357_v6, %v6357_v56  ;;  %v1429_v25 = vmul.f32 %v1357_v6, %v6358_v9  ;;  %v1430_v18 = vmul.f32 %v1358_v41, %v6358_v9 }
 0x33e   : > { %1443 = vrot.lane.b32.xlu0 %v1435_v62, %s3292_s26  ;;  %v1314_v29 = vsel %vm681_vm1, %v1302_v38, %v1310_v47  ;;  %v1318_v11 = vsel %vm681_vm1, %v1310_v47, %v1302_v38  ;;  %v1390_v47 = vmul.f32 %v1358_v41, %v6357_v56  ;;  %v1480_v56 = vmul.f32 %v4354_v21, %v6292_v51 }
 0x33f   : > { %v1325_v50 = vsel %vm3649_vm3, %v1318_v11, 0.0  ;;  %v1326_v3 = vsel %vm3653_vm4, %v1314_v29, 0.0  ;;  %v1515_v11 = vadd.f32 %v1507_v53, %v1499_v24  ;;  %v1504_v53 = vmul.f32 %v4389_v31, %v3552_v2 }
 0x340   : > { %v1365_v48 = vmul.f32 %v1325_v50, %v3584_v16  ;;  %v1366_v23 = vmul.f32 %v1326_v3, %v3584_v16  ;;  %v1405_v62 = vmul.f32 %v1325_v50, %v3556_v5  ;;  %v1406_v61 = vmul.f32 %v1326_v3, %v3556_v5 }
 0x341   : > { %v1485_v38 = vmul.f32 %v1325_v50, %v6359_v32  ;;  %v1486_v29 = vmul.f32 %v1326_v3, %v6359_v32  ;;  %v1488_v50 = vmul.f32 %v4226_v57, %v6294_v0 }
 0x342   : > { %v1381_v19 = vadd.f32 %v1373_v39, %v1365_v48  ;;  %v1421_v36 = vadd.f32 %v1413_v44, %v1405_v62  ;;  %v1422_v30 = vadd.f32 %v1414_v34, %v1406_v61  ;;  %v1382_v13 = vadd.f32 %v1374_v1, %v1366_v23  ;;  %v1838_v39 = vpop.permute.xlu2 %1837  ;;  %v6360_v44 = vld [vmem:[#allocation11_spill] sm:$0xff] }
 0x343   : > { %v1493_v34 = vmul.f32 %v4272_v33, %v6360_v44  ;;  %v1494_v1 = vmul.f32 %v4259_v12, %v6360_v44  ;;  %v1496_v24 = vadd.f32 %v1488_v50, %v1480_v56  ;;  %v6361_v48 = vld [vmem:[#allocation19_spill] sm:$0xff] }
 0x344   : > { %v1437_v22 = vadd.f32 %v1429_v25, %v1421_v36  ;;  %v1438_v26 = vadd.f32 %v1430_v18, %v1422_v30  ;;  %v4526_v5 = vadd.f32 %v1389_v45, %v1381_v19  ;;  %v4528_v16 = vadd.f32 %v1390_v47, %v1382_v13  ;;  %1523 = vrot.lane.b32.xlu1 %v1515_v11, %s3293_s27  ;;  %v6362_v36 = vld [vmem:[#allocation70_spill] sm:$0xff]  ;;  %v6363_v13 = vld [vmem:[#allocation39_spill] sm:$0xff] }
 0x345   : > { %v1501_v21 = vadd.f32 %v1493_v34, %v1485_v38  ;;  %v1502_v3 = vadd.f32 %v1494_v1, %v1486_v29  ;;  %v1509_v23 = vmul.f32 %v1357_v6, %v6361_v48  ;;  %v1911_v25 = vmul.f32 %v4305_v42, %v3579_v14  ;;  %v6364_v11 = vld [vmem:[#allocation14_spill] sm:$0xff] }
 0x346   : > { %1445 = vrot.lane.b32.xlu2 %v1437_v22, %s3292_s26  ;;  %1453 = vrot.lane.b32.xlu0 %v1438_v26, %s3292_s26  ;;  %v1510_v22 = vmul.f32 %v1358_v41, %v6361_v48  ;;  %v1512_v26 = vadd.f32 %v1504_v53, %v1496_v24  ;;  %v1952_v30 = vmul.f32 %v6362_v36, %v6344_v28 }
 0x347   : > { %v1517_v62 = vadd.f32 %v1509_v23, %v1501_v21  ;;  %v1912_v34 = vmul.f32 %v6362_v36, %v3579_v14  ;;  %v2032_v1 = vmul.f32 %v6362_v36, %v6348_v43 }
 0x348   : > { %v1518_v61 = vadd.f32 %v1510_v22, %v1502_v3 }
 0x34a   : > { %v1880_v31 = vpop.permute.xlu2 %1879 }
 0x34c   : > { %1527 = vrot.lane.b32.xlu1 %v1512_v26, %s3293_s27 }
 0x34e   : > { %1525 = vrot.lane.b32.xlu2 %v1517_v62, %s3293_s27  ;;  %1533 = vrot.lane.b32.xlu0 %v1518_v61, %s3293_s27 }
 0x352   : > { %v1850_v6 = vpop.permute.xlu2 %1849 }
 0x355   : > { %v1846_v12 = vpop.permute.xlu0 %1845 }
 0x356   : > { %v4550_v57 = vsel %vm681_vm1, %v1838_v39, %v1846_v12  ;;  %v4554_v33 = vsel %vm681_vm1, %v1846_v12, %v1838_v39  ;;  %1869 = vrot.lane.b32.xlu2 %v4295_v4, %s3291_s14  ;;  %1877 = vrot.lane.b32.xlu0 %v4298_v8, %s3291_s14 }
 0x35a   : > { %v1874_v23 = vpop.permute.xlu2 %1873 }
 0x35d   : > { %v1848_v41 = vpop.permute.xlu1 %1847  ;;  %v1840_v56 = vpop.permute.xlu0 %1839 }
 0x35e   : > { %v1854_v45 = vsel %vm681_vm1, %v1840_v56, %v1848_v41  ;;  %v1858_v47 = vsel %vm681_vm1, %v1848_v41, %v1840_v56 }
 0x35f   : > { %v1863_v18 = vsel %vm3649_vm3, %v1858_v47, 0.0  ;;  %v1864_v19 = vsel %vm3653_vm4, %v1854_v45, 0.0  ;;  %v1951_v47 = vmul.f32 %v4305_v42, %v6344_v28 }
 0x360   : > { %v1903_v38 = vmul.f32 %v1863_v18, %v6363_v13  ;;  %v1904_v29 = vmul.f32 %v1864_v19, %v6363_v13  ;;  %v1944_v39 = vmul.f32 %v1864_v19, %v6364_v11  ;;  %v2024_v53 = vmul.f32 %v1864_v19, %v6345_v20 }
 0x361   : > { %v1943_v22 = vmul.f32 %v1863_v18, %v6364_v11 }
 0x362   : > { %v1919_v50 = vadd.f32 %v1911_v25, %v1903_v38  ;;  %v1960_v21 = vadd.f32 %v1952_v30, %v1944_v39  ;;  %v1920_v3 = vadd.f32 %v1912_v34, %v1904_v29  ;;  %v2040_v24 = vadd.f32 %v2032_v1, %v2024_v53 }
 0x363   : > { %v1959_v38 = vadd.f32 %v1951_v47, %v1943_v22 }
 0x365   : > { %v1872_v26 = vpop.permute.xlu1 %1871  ;;  %v1882_v62 = vpop.permute.xlu0 %1881 }
 0x366   : > { %v1886_v61 = vsel %vm718_vm2, %v1872_v26, %v1880_v31  ;;  %v1890_v12 = vsel %vm718_vm2, %v1880_v31, %v1872_v26  ;;  %v1887_v41 = vsel %vm718_vm2, %v1874_v23, %v1882_v62  ;;  %v1891_v39 = vsel %vm718_vm2, %v1882_v62, %v1874_v23 }
 0x367   : > { %v1895_v56 = vsel %vm3657_vm5, %v1886_v61, 0.0  ;;  %v1896_v45 = vsel %vm3661_vm6, %v1890_v12, 0.0  ;;  %v2023_v61 = vmul.f32 %v1863_v18, %v6345_v20  ;;  %v6365_v12 = vld [vmem:[#allocation73_spill] sm:$0xff] }
 0x368   : > { %v1927_v25 = vmul.f32 %v1895_v56, %v3807_v52  ;;  %v1928_v19 = vmul.f32 %v1896_v45, %v3807_v52  ;;  %v1967_v36 = vmul.f32 %v1895_v56, %v6349_v17  ;;  %v1968_v31 = vmul.f32 %v1896_v45, %v6349_v17 }
 0x369   : > { %v2048_v30 = vmul.f32 %v1896_v45, %v6350_v63  ;;  %v1913_v45 = vmul.f32 %v6365_v12, %v6353_v60  ;;  %v1953_v23 = vmul.f32 %v6365_v12, %v3478_v40  ;;  %v2047_v62 = vmul.f32 %v1895_v56, %v6350_v63 }
 0x36a   : > { %v1975_v34 = vadd.f32 %v1967_v36, %v1959_v38  ;;  %v4602_v1 = vadd.f32 %v1968_v31, %v1960_v21  ;;  %v4604_v53 = vadd.f32 %v1927_v25, %v1919_v50  ;;  %v4606_v26 = vadd.f32 %v1928_v19, %v1920_v3  ;;  %v6366_v31 = vld [vmem:[#allocation71_spill] sm:$0xff] }
 0x36b   : > { %v4598_v29 = vadd.f32 %v2048_v30, %v2040_v24  ;;  %v2031_v24 = vmul.f32 %v4305_v42, %v6348_v43  ;;  %v1897_v50 = vsel %vm3657_vm5, %v1887_v41, 0.0  ;;  %v1898_v21 = vsel %vm3661_vm6, %v1891_v39, 0.0  ;;  %v6367_v30 = vld [vmem:[#allocation41_spill] sm:$0xff] }
 0x36c   : > { %1983 = vrot.lane.b32.xlu1 %v1975_v34, %s3292_s26  ;;  %v2033_v41 = vmul.f32 %v6365_v12, %v3495_v46  ;;  %v1929_v56 = vmul.f32 %v1897_v50, %v6367_v30  ;;  %v1930_v38 = vmul.f32 %v1898_v21, %v6367_v30  ;;  %v2049_v43 = vmul.f32 %v1897_v50, %v3582_v15 }
 0x36d   : > { %v1842_v22 = vpop.permute.xlu1 %1841  ;;  %v2039_v34 = vadd.f32 %v2031_v24, %v2023_v61  ;;  %v1876_v30 = vpop.permute.xlu0 %1875 }
 0x36e   : > { %v1855_v18 = vsel %vm681_vm1, %v1842_v22, %v1850_v6  ;;  %v1859_v3 = vsel %vm681_vm1, %v1850_v6, %v1842_v22  ;;  %v1914_v6 = vmul.f32 %v6366_v31, %v6353_v60  ;;  %v6368_v22 = vld [vmem:[#allocation8_spill] sm:$0xff] }
 0x36f   : > { %v1865_v42 = vsel %vm3649_vm3, %v1859_v3, 0.0  ;;  %v1866_v47 = vsel %vm3653_vm4, %v1855_v18, 0.0  ;;  %v1969_v18 = vmul.f32 %v1897_v50, %v6368_v22  ;;  %v2055_v17 = vadd.f32 %v2047_v62, %v2039_v34 }
 0x370   : > { %v1905_v25 = vmul.f32 %v1865_v42, %v6354_v35  ;;  %v1906_v19 = vmul.f32 %v1866_v47, %v6354_v35  ;;  %v1945_v36 = vmul.f32 %v1865_v42, %v3569_v10  ;;  %v2025_v39 = vmul.f32 %v1865_v42, %v3524_v58 }
 0x371   : > { %v1946_v20 = vmul.f32 %v1866_v47, %v3569_v10  ;;  %v2026_v50 = vmul.f32 %v1866_v47, %v3524_v58  ;;  %v1970_v42 = vmul.f32 %v1898_v21, %v6368_v22 }
 0x372   : > { %v1921_v3 = vadd.f32 %v1913_v45, %v1905_v25  ;;  %v1961_v12 = vadd.f32 %v1953_v23, %v1945_v36  ;;  %v1922_v63 = vadd.f32 %v1914_v6, %v1906_v19  ;;  %v2041_v52 = vadd.f32 %v2033_v41, %v2025_v39  ;;  %v6369_v19 = vld [vmem:[#allocation72_spill] sm:$0xff]  ;;  %v6370_v6 = vld [vmem:[#allocation74_spill] sm:$0xff] }
 0x373   : > { %v1954_v45 = vmul.f32 %v6366_v31, %v3478_v40  ;;  %v2050_v36 = vmul.f32 %v1898_v21, %v3582_v15  ;;  %v2036_v39 = vmul.f32 %v6370_v6, %v6360_v44 }
 0x374   : > { %v4642_v28 = vadd.f32 %v1969_v18, %v1961_v12  ;;  %v4644_v11 = vadd.f32 %v1929_v56, %v1921_v3  ;;  %v4646_v60 = vadd.f32 %v1930_v38, %v1922_v63  ;;  %2063 = vrot.lane.b32.xlu1 %v2055_v17, %s3293_s27  ;;  %v4651_v24 = vadd.f32 %v2049_v43, %v2041_v52  ;;  %v1852_v43 = vpop.permute.xlu2 %1851 }
 0x375   : > { %v1884_v61 = vpop.permute.xlu1 %1883  ;;  %v1962_v62 = vadd.f32 %v1954_v45, %v1946_v20  ;;  %v2034_v63 = vmul.f32 %v6366_v31, %v3495_v46  ;;  %v1915_v52 = vmul.f32 %v6369_v19, %v3560_v7  ;;  %v1956_v31 = vmul.f32 %v6370_v6, %v3471_v37 }
 0x376   : > { %v1892_v23 = vsel %vm718_vm2, %v1884_v61, %v1876_v30  ;;  %v1888_v17 = vsel %vm718_vm2, %v1876_v30, %v1884_v61  ;;  %v2035_v30 = vmul.f32 %v6369_v19, %v6360_v44  ;;  %v1916_v12 = vmul.f32 %v6370_v6, %v3560_v7  ;;  %v6371_v61 = vld [vmem:[#allocation27_spill] sm:$0xff] }
 0x377   : > { %v1978_v41 = vadd.f32 %v1970_v42, %v1962_v62  ;;  %v2042_v25 = vadd.f32 %v2034_v63, %v2026_v50  ;;  %v1899_v47 = vsel %vm3657_vm5, %v1888_v17, 0.0  ;;  %v1900_v56 = vsel %vm3661_vm6, %v1892_v23, 0.0  ;;  %v6372_v23 = vld [vmem:[#allocation32_spill] sm:$0xff]  ;;  %v6373_v42 = vld [vmem:[#allocation23_spill] sm:$0xff] }
 0x378   : > { %v1931_v45 = vmul.f32 %v1899_v47, %v6371_v61  ;;  %v1932_v17 = vmul.f32 %v1900_v56, %v6371_v61 }
 0x379   : > { %v2058_v3 = vadd.f32 %v2050_v36, %v2042_v25  ;;  %v2051_v25 = vmul.f32 %v1899_v47, %v6361_v48 }
 0x37c   : > { %1993 = vrot.lane.b32.xlu1 %v1978_v41, %s3292_s26  ;;  %v1972_v41 = vmul.f32 %v1900_v56, %v6358_v9 }
 0x37d   : > { %v1844_v20 = vpop.permute.xlu1 %1843 }
 0x37e   : > { %v1856_v38 = vsel %vm681_vm1, %v1844_v20, %v1852_v43  ;;  %v1860_v21 = vsel %vm681_vm1, %v1852_v43, %v1844_v20 }
 0x37f   : > { %v1867_v34 = vsel %vm3649_vm3, %v1860_v21, 0.0  ;;  %v1868_v18 = vsel %vm3653_vm4, %v1856_v38, 0.0  ;;  %v2052_v21 = vmul.f32 %v1900_v56, %v6361_v48 }
 0x380   : > { %v1907_v50 = vmul.f32 %v1867_v34, %v6372_v23  ;;  %v1908_v62 = vmul.f32 %v1868_v18, %v6372_v23  ;;  %v1948_v63 = vmul.f32 %v1868_v18, %v6373_v42  ;;  %v2027_v43 = vmul.f32 %v1867_v34, %v6359_v32  ;;  %v6385_v23 = vld [vmem:[#allocation43_spill] sm:$0xff] }
 0x381   : > { %v2028_v20 = vmul.f32 %v1868_v18, %v6359_v32  ;;  %v1947_v44 = vmul.f32 %v1867_v34, %v6373_v42  ;;  %v1955_v18 = vmul.f32 %v6369_v19, %v3471_v37  ;;  %v1971_v34 = vmul.f32 %v1899_v47, %v6358_v9  ;;  %v6374_v47 = vld [vmem:[#allocation77_spill] sm:$0xff]  ;;  %v6384_v42 = vld [vmem:[#allocation80_spill] sm:$0xff] }
 0x382   : > { %v1923_v36 = vadd.f32 %v1915_v52, %v1907_v50  ;;  %v1964_v6 = vadd.f32 %v1956_v31, %v1948_v63  ;;  %v1924_v38 = vadd.f32 %v1916_v12, %v1908_v62  ;;  %v2043_v46 = vadd.f32 %v2035_v30, %v2027_v43  ;;  %v1448_v30 = vpop.permute.xlu2 %1447 }
 0x383   : > { %v2044_v15 = vadd.f32 %v2036_v39, %v2028_v20  ;;  %v1963_v56 = vadd.f32 %v1955_v18, %v1947_v44  ;;  %v6377_v18 = vld [vmem:[#allocation34_spill] sm:$0xff]  ;;  %v1862_v32 = vsel %vm3653_vm4, %v4550_v57, 0.0 }
 0x384   : > { %v4696_v58 = vadd.f32 %v1972_v41, %v1964_v6  ;;  %v4698_v22 = vadd.f32 %v1931_v45, %v1923_v36  ;;  %v4700_v40 = vadd.f32 %v1932_v17, %v1924_v38  ;;  %2073 = vrot.lane.b32.xlu1 %v2058_v3, %s3293_s27  ;;  %v4707_v31 = vadd.f32 %v2051_v25, %v2043_v46  ;;  %v6375_v17 = vld [vmem:[#allocation78_spill] sm:$0xff] }
 0x385   : > { %v4705_v52 = vadd.f32 %v2052_v21, %v2044_v15  ;;  %v1979_v39 = vadd.f32 %v1971_v34, %v1963_v56 }
 0x38a   : > { %v1442_v62 = vpop.permute.xlu2 %1441 }
 0x38c   : > { %1987 = vrot.lane.b32.xlu1 %v1979_v39, %s3292_s26 }
 0x397   : > { %v1440_v45 = vpop.permute.xlu1 %1439  ;;  %v1532_v21 = vpop.permute.xlu2 %1531 }
 0x398   : > { %v4711_v12 = vpop.permute.xlu0 %1519 }
 0x39f   : > { %v1530_v44 = vpop.permute.xlu1 %1529 }
 0x3a0   : > { %v1450_v50 = vpop.permute.xlu0 %1449 }
 0x3a1   : > { %v1460_v19 = vsel %vm835_vm8, %v1450_v50, %v1442_v62  ;;  %v1456_v46 = vsel %vm835_vm8, %v1442_v62, %v1450_v50 }
 0x3a2   : > { %v1465_v15 = vsel %vm502_vm10, %v1460_v19, 0.0  ;;  %v1474_v41 = vadd.f32 %v1456_v46, %v6375_v17  ;;  %v6379_v17 = vld [vmem:[#allocation64_spill] sm:$0xff] }
 0x3a3   : > { %v1473_v3 = vadd.f32 %v1465_v15, %v6374_v47 }
 0x3a8   : > { %v1522_v63 = vpop.permute.xlu0 %1521 }
 0x3a9   : > { %v1536_v43 = vsel %vm920_vm7, %v1522_v63, %v1530_v44  ;;  %v1540_v20 = vsel %vm920_vm7, %v1530_v44, %v1522_v63  ;;  %v6378_v63 = vld [vmem:[#allocation52_spill] sm:$0xff] }
 0x3aa   : > { %v1546_v36 = vsel %vm505_vm9, %v1540_v20, 0.0  ;;  %v1553_v6 = vadd.f32 %v1536_v43, %v1473_v3  ;;  %v1446_v43 = vpop.permute.xlu2 %1445 }
 0x3ab   : > { %v1554_v38 = vadd.f32 %v1546_v36, %v1474_v41  ;;  %v4743_v41 = vadd.f32 %v6379_v17, %v6378_v63 }
 0x3ac   : > { %v4728_v56 = vadd.f32 %v1553_v6, %v6377_v18  ;;  %v6380_v6 = vld [vmem:[#allocation65_spill] sm:$0xff] }
 0x3ad   : > { %v4731_v34 = vadd.f32 %v1554_v38, %v6377_v18  ;;  %v4750_v38 = vadd.f32 %v6380_v6, %v6378_v63 }
 0x3ae   : > { %v1569_v39 = vmul.f32 %v4728_v56, %v4728_v56  ;;  %v1452_v50 = vpop.permute.xlu1 %1451 }
 0x3af   : > { %v1570_v62 = vmul.f32 %v4731_v34, %v4731_v34 }
 0x3b0   : > { %v1444_v19 = vpop.permute.xlu0 %1443  ;;  %v1577_v15 = vmul.f32 %v1569_v39, %v4728_v56  ;;  %v6381_v39 = vld [vmem:[#allocation33_spill] sm:$0xff] }
 0x3b1   : > { %v1461_v46 = vsel %vm835_vm8, %v1452_v50, %v1444_v19  ;;  %v1578_v44 = vmul.f32 %v1570_v62, %v4731_v34  ;;  %v1909_v48 = vmul.f32 %v4295_v4, %v6381_v39  ;;  %v1457_v62 = vsel %vm835_vm8, %v1444_v19, %v1452_v50  ;;  %v6383_v50 = vld [vmem:[#allocation79_spill] sm:$0xff] }
 0x3b2   : > { %v1585_v47 = vmul.f32 0.044715, %v1577_v15  ;;  %v1467_v20 = vsel %vm502_vm10, %v1461_v46, 0.0  ;;  %v4764_v46 = vsel %vm3649_vm3, %v4554_v33, 0.0  ;;  %v1476_v10 = vadd.f32 %v1457_v62, %v6384_v42 }
 0x3b3   : > { %v1586_v3 = vmul.f32 0.044715, %v1578_v44  ;;  %v4759_v44 = vmul.f32 %v4298_v8, %v6294_v0  ;;  %v1475_v19 = vadd.f32 %v1467_v20, %v6383_v50  ;;  %v1901_v57 = vmul.f32 %v4764_v46, %v6385_v23 }
 0x3b4   : > { %v1593_v36 = vadd.f32 %v1585_v47, %v4728_v56  ;;  %v6382_v47 = vld [vmem:[#allocation21_spill] sm:$0xff]  ;;  %v1459_v20 = vsel %vm835_vm8, %v1448_v30, %v1440_v45 }
 0x3b5   : > { %v1594_v15 = vadd.f32 %v1586_v3, %v4731_v34  ;;  %v1949_v17 = vmul.f32 %v4295_v4, %v6382_v47  ;;  %v1950_v9 = vmul.f32 %v4298_v8, %v6382_v47  ;;  %v6386_v47 = vld [vmem:[#allocation29_spill] sm:$0xff] }
 0x3b6   : > { %v1601_v6 = vmul.f32 0.7978846, %v1593_v36  ;;  %v1524_v3 = vpop.permute.xlu1 %1523  ;;  %v1941_v42 = vmul.f32 %v4764_v46, %v6386_v47  ;;  %v1942_v62 = vmul.f32 %v1862_v32, %v6386_v47  ;;  %v6388_v47 = vld [vmem:[#allocation75_spill] sm:$0xff] }
 0x3b7   : > { %v1602_v37 = vmul.f32 0.7978846, %v1594_v15  ;;  %v1537_v33 = vsel %vm920_vm7, %v1524_v3, %v1532_v21  ;;  %v1541_v61 = vsel %vm920_vm7, %v1532_v21, %v1524_v3  ;;  %v6387_v3 = vld [vmem:[#allocation47_spill] sm:$0xff] }
 0x3b8   : > { %v1454_v36 = vpop.permute.xlu0 %1453  ;;  %3151 = vtanh.f32 %v1601_v6  ;;  %v1548_v50 = vsel %vm505_vm9, %v1541_v61, 0.0  ;;  %v1555_v15 = vadd.f32 %v1537_v33, %v1475_v19  ;;  %v1455_v6 = vsel %vm835_vm8, %v1440_v45, %v1448_v30 }
 0x3b9   : > { %v1556_v7 = vadd.f32 %v1548_v50, %v1476_v10  ;;  %v1462_v21 = vsel %vm835_vm8, %v1454_v36, %v1446_v43  ;;  %3153 = vtanh.f32 %v1602_v37  ;;  %v4797_v61 = vmul.f32 %v4298_v8, %v6381_v39 }
 0x3ba   : > { %v4793_v35 = vadd.f32 %v1555_v15, %v6387_v3  ;;  %v4800_v19 = vmul.f32 %v1862_v32, %v6385_v23  ;;  %v1463_v10 = vsel %vm502_vm10, %v1459_v20, 0.0  ;;  %v1458_v30 = vsel %vm835_vm8, %v1446_v43, %v1454_v36  ;;  %v1526_v20 = vpop.permute.xlu2 %1525  ;;  %v6389_v43 = vld [vmem:[#allocation76_spill] sm:$0xff] }
 0x3bb   : > { %v4805_v33 = vadd.f32 %v1556_v7, %v6387_v3  ;;  %v4809_v45 = vadd.f32 %v1909_v48, %v1901_v57  ;;  %v2022_v37 = vmul.f32 %v1862_v32, %v6292_v51  ;;  %v1469_v50 = vsel %vm502_vm10, %v1462_v21, 0.0 }
 0x3bc   : > { %v1571_v8 = vmul.f32 %v4793_v35, %v4793_v35  ;;  %v1472_v13 = vadd.f32 %v1455_v6, %v6388_v47  ;;  %v4817_v14 = vadd.f32 %v1950_v9, %v1942_v62  ;;  %v4819_v7 = vadd.f32 %v1949_v17, %v1941_v42 }
 0x3bd   : > { %v1572_v48 = vmul.f32 %v4805_v33, %v4805_v33  ;;  %v1471_v36 = vadd.f32 %v1463_v10, %v6389_v43  ;;  %v1478_v32 = vadd.f32 %v1458_v30, %v4528_v16  ;;  %v1477_v21 = vadd.f32 %v1469_v50, %v4526_v5 }
 0x3be   : > { %v3152_v15 = vpop.eup %3151  ;;  %v1528_v57 = vpop.permute.xlu1 %1527  ;;  %v1579_v39 = vmul.f32 %v1571_v8, %v4793_v35 }
 0x3bf   : > { %v1617_v23 = vadd.f32 1.0, %v3152_v15  ;;  %v1535_v9 = vsel %vm920_vm7, %v4711_v12, %v1528_v57  ;;  %v1539_v47 = vsel %vm920_vm7, %v1528_v57, %v4711_v12  ;;  %v1580_v42 = vmul.f32 %v1572_v48, %v4805_v33  ;;  %v3154_v62 = vpop.eup %3153  ;;  %v6390_v15 = vld [vmem:[#allocation10_spill] sm:$0xff] }
 0x3c0   : > { %v1534_v17 = vpop.permute.xlu0 %1533  ;;  %v1544_v16 = vsel %vm505_vm9, %v1539_v47, 0.0  ;;  %v1551_v6 = vadd.f32 %v1535_v9, %v1471_v36  ;;  %v1587_v12 = vmul.f32 0.044715, %v1579_v39  ;;  %v6391_v9 = vld [vmem:[#allocation20_spill] sm:$0xff] }
 0x3c1   : > { %v1538_v10 = vsel %vm920_vm7, %v1526_v20, %v1534_v17  ;;  %v1542_v5 = vsel %vm920_vm7, %v1534_v17, %v1526_v20  ;;  %v1552_v30 = vadd.f32 %v1544_v16, %v1472_v13  ;;  %v1588_v57 = vmul.f32 0.044715, %v1580_v42 }
 0x3c2   : > { %v1550_v8 = vsel %vm505_vm9, %v1542_v5, 0.0  ;;  %v1557_v50 = vadd.f32 %v1538_v10, %v1477_v21  ;;  %v4843_v43 = vadd.f32 %v1551_v6, %v6390_v15  ;;  %v1625_v54 = vmul.f32 0.5, %v1617_v23 }
 0x3c3   : > { %v1558_v48 = vadd.f32 %v1550_v8, %v1478_v32  ;;  %v4846_v36 = vadd.f32 %v1552_v30, %v6390_v15  ;;  %v1595_v20 = vadd.f32 %v1587_v12, %v4793_v35  ;;  %v1618_v13 = vadd.f32 1.0, %v3154_v62  ;;  %v1870_v8 = vpop.permute.xlu2 %1869 }
 0x3c4   : > { %v4849_v47 = vadd.f32 %v1557_v50, %v6391_v9  ;;  %v1567_v17 = vmul.f32 %v4843_v43, %v4843_v43  ;;  %v1596_v21 = vadd.f32 %v1588_v57, %v4805_v33  ;;  %v1633_v32 = vmul.f32 %v1625_v54, %v4728_v56 }
 0x3c5   : > { %v4855_v39 = vadd.f32 %v1558_v48, %v6391_v9  ;;  %v1603_v42 = vmul.f32 0.7978846, %v1595_v20  ;;  %v1626_v16 = vmul.f32 0.5, %v1618_v13  ;;  %v1568_v6 = vmul.f32 %v4846_v36, %v4846_v36 }
 0x3c6   : > { %v1573_v23 = vmul.f32 %v4849_v47, %v4849_v47  ;;  %v1604_v10 = vmul.f32 0.7978846, %v1596_v21  ;;  %v4866_v5 = vmul.f32 %v1633_v32, %v4743_v41  ;;  %v1575_v30 = vmul.f32 %v1567_v17, %v4843_v43  ;;  %v6392_v32 = vld [vmem:[#allocation49_spill] sm:$0xff] }
 0x3c7   : > { %v1574_v62 = vmul.f32 %v4855_v39, %v4855_v39  ;;  %3155 = vtanh.f32 %v1603_v42  ;;  %v1634_v56 = vmul.f32 %v1626_v16, %v4731_v34  ;;  %v1576_v12 = vmul.f32 %v1568_v6, %v4846_v36  ;;  %v6393_v42 = vld [vmem:[#allocation25_spill] sm:$0xff] }
 0x3c8   : > { %v1878_v50 = vpop.permute.xlu0 %1877  ;;  %v1581_v54 = vmul.f32 %v1573_v23, %v4849_v47  ;;  %3157 = vtanh.f32 %v1604_v10  ;;  %v2038_v21 = vadd.f32 %v4759_v44, %v2022_v37  ;;  %v1583_v44 = vmul.f32 0.044715, %v1575_v30 }
 0x3c9   : > { %v1885_v48 = vsel %vm718_vm2, %v1870_v8, %v1878_v50  ;;  %v1889_v57 = vsel %vm718_vm2, %v1878_v50, %v1870_v8  ;;  %v1582_v41 = vmul.f32 %v1574_v62, %v4855_v39  ;;  %v4884_v34 = vmul.f32 %v1634_v56, %v4750_v38 }
 0x3ca   : > { %v4879_v20 = vsel %vm3657_vm5, %v1885_v48, 0.0  ;;  %v1894_v13 = vsel %vm3661_vm6, %v1889_v57, 0.0  ;;  %v1589_v17 = vmul.f32 0.044715, %v1581_v54  ;;  %v1584_v37 = vmul.f32 0.044715, %v1576_v12 }
 0x3cb   : > { %v1925_v23 = vmul.f32 %v4879_v20, %v6392_v32  ;;  %v1965_v16 = vmul.f32 %v4879_v20, %v6393_v42  ;;  %v1966_v6 = vmul.f32 %v1894_v13, %v6393_v42  ;;  %v1926_v62 = vmul.f32 %v1894_v13, %v6392_v32 }
 0x3cc   : > { %v2046_v10 = vmul.f32 %v1894_v13, %v3552_v2  ;;  %v1597_v8 = vadd.f32 %v1589_v17, %v4849_v47  ;;  %v1590_v50 = vmul.f32 0.044715, %v1582_v41  ;;  %v1918_v42 = vadd.f32 %v4797_v61, %v4800_v19 }
 0x3cd   : > { %v1974_v38 = vadd.f32 %v1966_v6, %v4817_v14  ;;  %v1973_v54 = vadd.f32 %v1965_v16, %v4819_v7  ;;  %v3156_v56 = vpop.eup %3155  ;;  %v1591_v14 = vadd.f32 %v1583_v44, %v4843_v43  ;;  %v1592_v7 = vadd.f32 %v1584_v37, %v4846_v36  ;;  %v6394_v6 = vld [vmem:[#allocation51_spill] sm:$0xff] }
 0x3ce   : > { %v2054_v48 = vadd.f32 %v2046_v10, %v2038_v21  ;;  %v1605_v57 = vmul.f32 0.7978846, %v1597_v8  ;;  %v1598_v59 = vadd.f32 %v1590_v50, %v4855_v39  ;;  %v3158_v32 = vpop.eup %3157  ;;  %v1619_v41 = vadd.f32 1.0, %v3156_v56  ;;  %v6395_v10 = vld [vmem:[#allocation66_spill] sm:$0xff] }
 0x3cf   : > { %1989 = vrot.lane.b32.xlu0 %v1974_v38, %s3292_s26  ;;  %1981 = vrot.lane.b32.xlu2 %v1973_v54, %s3292_s26  ;;  %v4905_v30 = vadd.f32 %v1925_v23, %v4809_v45  ;;  %v1620_v13 = vadd.f32 1.0, %v3158_v32  ;;  %v4908_v17 = vadd.f32 %v1926_v62, %v1918_v42  ;;  %v1599_v19 = vmul.f32 0.7978846, %v1591_v14  ;;  %v6396_v45 = vld [vmem:[#allocation67_spill] sm:$0xff] }
 0x3d0   : > { %2069 = vrot.lane.b32.xlu1 %v2054_v48, %s3293_s27  ;;  %3159 = vtanh.f32 %v1605_v57  ;;  %v1606_v12 = vmul.f32 0.7978846, %v1598_v59  ;;  %v1627_v61 = vmul.f32 0.5, %v1619_v41  ;;  %v1600_v21 = vmul.f32 0.7978846, %v1592_v7  ;;  %v6397_v57 = vld [vmem:[#allocation50_spill] sm:$0xff] }
 0x3d1   : > { %v1628_v16 = vmul.f32 0.5, %v1620_v13  ;;  %v1249_v8 = vadd.f32 %v6395_v10, %v6394_v6  ;;  %v1290_v23 = vadd.f32 %v6396_v45, %v6394_v6  ;;  %v6398_v41 = vld [vmem:[#allocation68_spill] sm:$0xff]  ;;  %v6401_v10 = vld [vmem:[#allocation62_spill] sm:$0xff]  ;;  %v6402_v45 = vld [vmem:[#allocation63_spill] sm:$0xff] }
 0x3d2   : > { %3161 = vtanh.f32 %v1606_v12  ;;  %v1635_v50 = vmul.f32 %v1627_v61, %v4793_v35 }
 0x3d3   : > { %3163 = vtanh.f32 %v1599_v19  ;;  %v1636_v38 = vmul.f32 %v1628_v16, %v4805_v33  ;;  %v1252_v33 = vadd.f32 %v6398_v41, %v6397_v57  ;;  %v6400_v16 = vld [vmem:[#allocation53_spill] sm:$0xff] }
 0x3d4   : > { %3165 = vtanh.f32 %v1600_v21  ;;  %v1643_v59 = vmul.f32 %v1635_v50, %v1249_v8  ;;  %v1243_v8 = vadd.f32 %v6401_v10, %v6400_v16 }
 0x3d5   : > { %v1644_v42 = vmul.f32 %v1636_v38, %v1290_v23  ;;  %v1284_v23 = vadd.f32 %v6402_v45, %v6400_v16 }
 0x3d6   : > { %v3160_v32 = vpop.eup %3159 }
 0x3d7   : > { %1985 = vrot.lane.b32.xlu0 %v4642_v28, %s3292_s26  ;;  %1991 = vrot.lane.b32.xlu2 %v4602_v1, %s3292_s26  ;;  %v1621_v62 = vadd.f32 1.0, %v3160_v32  ;;  %v6399_v28 = vld [vmem:[#allocation69_spill] sm:$0xff] }
 0x3d8   : > { %v3162_v54 = vpop.eup %3161  ;;  %v1293_v61 = vadd.f32 %v6399_v28, %v6397_v57 }
 0x3d9   : > { %v3164_v44 = vpop.eup %3163  ;;  %v1629_v35 = vmul.f32 0.5, %v1621_v62  ;;  %v1622_v37 = vadd.f32 1.0, %v3162_v54 }
 0x3da   : > { %v3166_v56 = vpop.eup %3165  ;;  %v1615_v48 = vadd.f32 1.0, %v3164_v44 }
 0x3db   : > { %v1637_v14 = vmul.f32 %v1629_v35, %v4849_v47  ;;  %v1630_v7 = vmul.f32 0.5, %v1622_v37  ;;  %v1616_v12 = vadd.f32 1.0, %v3166_v56 }
 0x3dc   : > { %v1623_v13 = vmul.f32 0.5, %v1615_v48 }
 0x3dd   : > { %v1645_v19 = vmul.f32 %v1637_v14, %v1252_v33  ;;  %v1638_v1 = vmul.f32 %v1630_v7, %v4855_v39  ;;  %v1624_v21 = vmul.f32 0.5, %v1616_v12 }
 0x3de   : > { %v1631_v50 = vmul.f32 %v1623_v13, %v4843_v43  ;;  %v2045_v43 = vmul.f32 %v4879_v20, %v3552_v2 }
 0x3df   : > { %1659 = vmatpush.msrb.mxu0 %v1645_v19  ;;  %2065 = vrot.lane.b32.xlu0 %v4651_v24, %s3293_s27  ;;  %v1646_v47 = vmul.f32 %v1638_v1, %v1293_v61  ;;  %v1632_v38 = vmul.f32 %v1624_v21, %v4846_v36  ;;  %v4941_v24 = vld [vmem:[%s6066_s5] sm:$0xff]  ;;  %v2029_v36 = vmul.f32 %v4295_v4, %v6294_v0  ;;  %v4972_v4 = vld [vmem:[%s6066_s5 + $0x10] sm:$0xff] }
 0x3e0   : > { %1995 = vrot.lane.b32.xlu2 %v4696_v58, %s3292_s26  ;;  %v1639_v39 = vmul.f32 %v1631_v50, %v1243_v8  ;;  %v2021_v58 = vmul.f32 %v4764_v46, %v6292_v51  ;;  %v4960_v46 = vld [vmem:[%s6066_s5 + $0x8] sm:$0xff] }
 0x3e1   : > { %1694 = vmatpush.msrb.mxu1 %v1646_v47  ;;  %1660 = vmatpush.msrb.mxu0 %v1643_v59  ;;  %v1640_v32 = vmul.f32 %v1632_v38, %v1284_v23  ;;  %v1984_v59 = vpop.permute.xlu1 %1983 }
 0x3e3   : > { %1695 = vmatpush.msrb.mxu1 %v1644_v42  ;;  %1661 = vmatpush.msrb.mxu0 %v4866_v5  ;;  %v2037_v5 = vadd.f32 %v2029_v36, %v2021_v58  ;;  %v5043_v36 = vpop.f32.mrf.mxu2 }
 0x3e5   : > { %1696 = vmatpush.msrb.mxu1 %v4884_v34  ;;  %1662 = vmatpush.msrb.mxu0 %v1639_v39  ;;  %v2053_v34 = vadd.f32 %v2045_v43, %v2037_v5 }
 0x3e6   : > { %2949 = vmatmul.msk.f32.vlgmr.msrb.gmra.mxu0 %vm1087_vm11, %v4941_v24 }
 0x3e7   : > { %1697 = vmatpush.msrb.mxu1 %v1640_v32  ;;  %2075 = vrot.lane.b32.xlu0 %v4705_v52, %s3293_s27  ;;  %v4981_v52 = vld [vmem:[%s6066_s5 + $0x18] sm:$0xff] }
 0x3e8   : > { %2067 = vrot.lane.b32.xlu2 %v4707_v31, %s3293_s27  ;;  %2955 = vmatmul.msk.f32.vlgmr.msrb.gmra.mxu1 %vm1087_vm11, %v4941_v24  ;;  %v4999_v31 = vld [vmem:[%s6066_s5 + $0x28] sm:$0xff] }
 0x3e9   : > { %v2064_v62 = vpop.permute.xlu1 %2063 }
 0x3ee   : > { %2950 = vmatmul.msk.f32.gmra.mxu0 %vm1087_vm11, %v4960_v46 }
 0x3ef   : > { %2061 = vrot.lane.b32.xlu0 %v2053_v34, %s3293_s27 }
 0x3f0   : > { %2071 = vrot.lane.b32.xlu2 %v4598_v29, %s3293_s27  ;;  %2956 = vmatmul.msk.f32.gmra.mxu1 %vm1087_vm11, %v4960_v46  ;;  %v4990_v29 = vld [vmem:[%s6066_s5 + $0x20] sm:$0xff] }
 0x3f1   : > { %v1994_v44 = vpop.permute.xlu1 %1993 }
 0x3f6   : > { %2951 = vmatmul.msk.f32.gmra.mxu0 %vm1087_vm11, %v4972_v4 }
 0x3f8   : > { %2957 = vmatmul.msk.f32.gmra.mxu1 %vm1087_vm11, %v4972_v4 }
 0x3f9   : > { %v2074_v41 = vpop.permute.xlu1 %2073 }
 0x3fe   : > { %2952 = vmatmul.msk.f32.gmra.mxu0 %vm1087_vm11, %v4981_v52 }
 0x400   : > { %2958 = vmatmul.msk.f32.gmra.mxu1 %vm1087_vm11, %v4981_v52 }
 0x401   : > { %v1988_v38 = vpop.permute.xlu1 %1987 }
 0x406   : > { %2953 = vmatmul.msk.f32.gmra.mxu0 %vm1087_vm11, %v4990_v29 }
 0x408   : > { %2959 = vmatmul.msk.f32.gmra.mxu1 %vm1087_vm11, %v4990_v29 }
 0x40e   : > { %2954 = vmatmul.msk.f32.gmra.mxu0 %vm1087_vm11, %v4999_v31 }
 0x410   : > { %2960 = vmatmul.msk.f32.gmra.mxu1 %vm1087_vm11, %v4999_v31 }
 0x429   : > { %v5005_v20 = vpop.permute.xlu2 %1981 }
 0x431   : > { %v1992_v42 = vpop.permute.xlu2 %1991 }
 0x432   : > { %v2002_v56 = vsel %vm835_vm8, %v1992_v42, %v1984_v59  ;;  %v1998_v33 = vsel %vm835_vm8, %v1984_v59, %v1992_v42  ;;  %v5049_v59 = vpop.f32.mrf.mxu3 }
 0x433   : > { %v2007_v48 = vsel %vm502_vm10, %v2002_v56, 0.0  ;;  %v2016_v13 = vadd.f32 %v1998_v33, %v4606_v26 }
 0x434   : > { %v2015_v7 = vadd.f32 %v2007_v48, %v4604_v53 }
 0x43a   : > { %v1996_v54 = vpop.permute.xlu2 %1995 }
 0x441   : > { %v1990_v35 = vpop.permute.xlu0 %1989 }
 0x442   : > { %v2068_v37 = vpop.permute.xlu2 %2067 }
 0x449   : > { %v1986_v14 = vpop.permute.xlu0 %1985 }
 0x44a   : > { %v2072_v12 = vpop.permute.xlu2 %2071  ;;  %v2003_v28 = vsel %vm835_vm8, %v1994_v44, %v1986_v14  ;;  %v1999_v26 = vsel %vm835_vm8, %v1986_v14, %v1994_v44  ;;  %v2000_v44 = vsel %vm835_vm8, %v1988_v38, %v1996_v54 }
 0x44b   : > { %v2078_v61 = vsel %vm920_vm7, %v2064_v62, %v2072_v12  ;;  %v2082_v19 = vsel %vm920_vm7, %v2072_v12, %v2064_v62  ;;  %v2009_v53 = vsel %vm502_vm10, %v2003_v28, 0.0  ;;  %v2018_v39 = vadd.f32 %v1999_v26, %v4646_v60 }
 0x44c   : > { %v2088_v1 = vsel %vm505_vm9, %v2082_v19, 0.0  ;;  %v2095_v21 = vadd.f32 %v2078_v61, %v2015_v7  ;;  %v2017_v45 = vadd.f32 %v2009_v53, %v4644_v11  ;;  %v2004_v11 = vsel %vm835_vm8, %v1996_v54, %v1988_v38 }
 0x44d   : > { %v2096_v10 = vadd.f32 %v2088_v1, %v2016_v13  ;;  %v2011_v56 = vsel %vm502_vm10, %v2004_v11, 0.0  ;;  %v2020_v12 = vadd.f32 %v2000_v44, %v4700_v40 }
 0x44e   : > { %v5026_v8 = vadd.f32 %v2095_v21, %v6377_v18  ;;  %v2019_v7 = vadd.f32 %v2011_v56, %v4698_v22  ;;  %v2070_v56 = vpop.permute.xlu1 %2069 }
 0x44f   : > { %v5031_v50 = vadd.f32 %v2096_v10, %v6377_v18  ;;  %v2001_v10 = vsel %vm835_vm8, %v1990_v35, %v5005_v20 }
 0x450   : > { %v2111_v23 = vmul.f32 %v5026_v8, %v5026_v8 }
 0x451   : > { %v2066_v47 = vpop.permute.xlu0 %2065  ;;  %v2112_v32 = vmul.f32 %v5031_v50, %v5031_v50 }
 0x452   : > { %v2079_v58 = vsel %vm920_vm7, %v2066_v47, %v2074_v41  ;;  %v2083_v43 = vsel %vm920_vm7, %v2074_v41, %v2066_v47  ;;  %v2119_v42 = vmul.f32 %v2111_v23, %v5026_v8  ;;  %v5080_v23 = vpop.f32.mrf.mxu2 }
 0x453   : > { %v2090_v5 = vsel %vm505_vm9, %v2083_v43, 0.0  ;;  %v2097_v34 = vadd.f32 %v2079_v58, %v2017_v45  ;;  %v2120_v41 = vmul.f32 %v2112_v32, %v5031_v50  ;;  %v5090_v32 = vpop.f32.mrf.mxu3  ;;  %v2005_v58 = vsel %vm502_vm10, %v2001_v10, 0.0 }
 0x454   : > { %v2098_v60 = vadd.f32 %v2090_v5, %v2018_v39  ;;  %v2127_v28 = vmul.f32 0.044715, %v2119_v42  ;;  %v2013_v42 = vadd.f32 %v2005_v58, %v4905_v30 }
 0x455   : > { %v5053_v62 = vadd.f32 %v2097_v34, %v6387_v3  ;;  %v2128_v21 = vmul.f32 0.044715, %v2120_v41 }
 0x456   : > { %v5060_v48 = vadd.f32 %v2098_v60, %v6387_v3  ;;  %v2135_v39 = vadd.f32 %v2127_v28, %v5026_v8  ;;  %v6446_v3 = vld [vmem:[#allocation15_spill] sm:$0xff] }
 0x457   : > { %v2113_v33 = vmul.f32 %v5053_v62, %v5053_v62  ;;  %v2136_v5 = vadd.f32 %v2128_v21, %v5031_v50 }
 0x458   : > { %v2114_v14 = vmul.f32 %v5060_v48, %v5060_v48 }
 0x459   : > { %v2121_v54 = vmul.f32 %v2113_v33, %v5053_v62  ;;  %v2076_v13 = vpop.permute.xlu0 %2075 }
 0x45a   : > { %v2080_v61 = vsel %vm920_vm7, %v2068_v37, %v2076_v13  ;;  %v2084_v19 = vsel %vm920_vm7, %v2076_v13, %v2068_v37  ;;  %v2122_v1 = vmul.f32 %v2114_v14, %v5060_v48  ;;  %v1997_v37 = vsel %vm835_vm8, %v5005_v20, %v1990_v35 }
 0x45b   : > { %v2092_v40 = vsel %vm505_vm9, %v2084_v19, 0.0  ;;  %v2099_v22 = vadd.f32 %v2080_v61, %v2019_v7  ;;  %v2129_v53 = vmul.f32 0.044715, %v2121_v54  ;;  %v2014_v44 = vadd.f32 %v1997_v37, %v4908_v17 }
 0x45c   : > { %v2100_v26 = vadd.f32 %v2092_v40, %v2020_v12  ;;  %v2130_v45 = vmul.f32 0.044715, %v2122_v1  ;;  %v2143_v14 = vmul.f32 0.7978846, %v2135_v39  ;;  %v2144_v13 = vmul.f32 0.7978846, %v2136_v5 }
 0x45d   : > { %v5086_v47 = vadd.f32 %v2099_v22, %v6391_v9  ;;  %v2137_v38 = vadd.f32 %v2129_v53, %v5053_v62  ;;  %v1790_v22 = vpop.f32.mrf.mxu2 }
 0x45e   : > { %v5095_v43 = vadd.f32 %v2100_v26, %v6391_v9  ;;  %v2138_v11 = vadd.f32 %v2130_v45, %v5060_v48  ;;  %v1831_v45 = vpop.f32.mrf.mxu3 }
 0x45f   : > { %v2115_v20 = vmul.f32 %v5086_v47, %v5086_v47  ;;  %v2145_v35 = vmul.f32 0.7978846, %v2137_v38 }
 0x460   : > { %v2116_v34 = vmul.f32 %v5095_v43, %v5095_v43  ;;  %v2146_v60 = vmul.f32 0.7978846, %v2138_v11 }
 0x461   : > { %v2123_v41 = vmul.f32 %v2115_v20, %v5086_v47  ;;  %v2062_v33 = vpop.permute.xlu0 %2061  ;;  %3167 = vtanh.f32 %v2145_v35 }
 0x462   : > { %v2124_v7 = vmul.f32 %v2116_v34, %v5095_v43  ;;  %v2077_v12 = vsel %vm920_vm7, %v2062_v33, %v2070_v56  ;;  %v2081_v54 = vsel %vm920_vm7, %v2070_v56, %v2062_v33  ;;  %3169 = vtanh.f32 %v2146_v60 }
 0x463   : > { %v2131_v28 = vmul.f32 0.044715, %v2123_v41  ;;  %v2086_v30 = vsel %vm505_vm9, %v2081_v54, 0.0  ;;  %v2093_v61 = vadd.f32 %v2077_v12, %v2013_v42  ;;  %3171 = vtanh.f32 %v2143_v14 }
 0x464   : > { %v2132_v17 = vmul.f32 0.044715, %v2124_v7  ;;  %v2094_v19 = vadd.f32 %v2086_v30, %v2014_v44  ;;  %3173 = vtanh.f32 %v2144_v13 }
 0x465   : > { %v2139_v1 = vadd.f32 %v2131_v28, %v5086_v47  ;;  %v5115_v21 = vadd.f32 %v2093_v61, %v6390_v15  ;;  %v1793_v61 = vpop.f32.mrf.mxu2 }
 0x466   : > { %v2140_v10 = vadd.f32 %v2132_v17, %v5095_v43  ;;  %v5119_v40 = vadd.f32 %v2094_v19, %v6390_v15  ;;  %v6442_v15 = vld [vmem:[#allocation49_spill] sm:$0xff] }
 0x467   : > { %v2147_v53 = vmul.f32 0.7978846, %v2139_v1  ;;  %v2109_v26 = vmul.f32 %v5115_v21, %v5115_v21  ;;  %v3168_v39 = vpop.eup %3167  ;;  %v1834_v1 = vpop.f32.mrf.mxu3 }
 0x468   : > { %v2110_v37 = vmul.f32 %v5119_v40, %v5119_v40  ;;  %v2148_v38 = vmul.f32 0.7978846, %v2140_v10  ;;  %v3170_v11 = vpop.eup %3169  ;;  %v2161_v60 = vadd.f32 1.0, %v3168_v39 }
 0x469   : > { %v2117_v58 = vmul.f32 %v2109_v26, %v5115_v21  ;;  %3175 = vtanh.f32 %v2147_v53  ;;  %v3172_v20 = vpop.eup %3171  ;;  %v2162_v44 = vadd.f32 1.0, %v3170_v11  ;;  %v1835_v11 = vadd.f32 %v1834_v1, %v6397_v57  ;;  %v3028_v1 = vld [vmem:[%s3363_s11 + $0x138] sm:$0xff] }
 0x46a   : > { %3177 = vtanh.f32 %v2148_v38  ;;  %v2118_v5 = vmul.f32 %v2110_v37, %v5119_v40  ;;  %v3174_v34 = vpop.eup %3173  ;;  %v2159_v41 = vadd.f32 1.0, %v3172_v20  ;;  %v2169_v28 = vmul.f32 0.5, %v2161_v60 }
 0x46b   : > { %v2125_v35 = vmul.f32 0.044715, %v2117_v58  ;;  %v2160_v7 = vadd.f32 1.0, %v3174_v34  ;;  %v2170_v19 = vmul.f32 0.5, %v2162_v44  ;;  %v1794_v38 = vadd.f32 %v1793_v61, %v6397_v57  ;;  %v3032_v61 = vld [vmem:[%s3363_s11 + $0x158] sm:$0xff] }
 0x46c   : > { %v2126_v42 = vmul.f32 0.044715, %v2118_v5  ;;  %v2167_v53 = vmul.f32 0.5, %v2159_v41  ;;  %v2177_v58 = vmul.f32 %v2169_v28, %v5053_v62  ;;  %v1832_v44 = vadd.f32 %v1831_v45, %v6394_v6 }
 0x46d   : > { %v2133_v56 = vadd.f32 %v2125_v35, %v5115_v21  ;;  %v2168_v37 = vmul.f32 0.5, %v2160_v7  ;;  %v2178_v20 = vmul.f32 %v2170_v19, %v5060_v48  ;;  %v1791_v35 = vadd.f32 %v1790_v22, %v6394_v6  ;;  %v3027_v19 = vld [vmem:[%s3363_s11 + $0x130] sm:$0xff] }
 0x46e   : > { %v2134_v33 = vadd.f32 %v2126_v42, %v5119_v40  ;;  %v2175_v60 = vmul.f32 %v2167_v53, %v5026_v8  ;;  %v1788_v62 = vadd.f32 %v5080_v23, %v6378_v63  ;;  %v1829_v48 = vadd.f32 %v5090_v32, %v6378_v63  ;;  %v3026_v53 = vld [vmem:[%s3363_s11 + $0x128] sm:$0xff] }
 0x46f   : > { %v3176_v14 = vpop.eup %3175  ;;  %v2141_v12 = vmul.f32 0.7978846, %v2133_v56  ;;  %v2176_v41 = vmul.f32 %v2168_v37, %v5031_v50  ;;  %v2186_v22 = vmul.f32 %v2178_v20, %v1832_v44  ;;  %v1785_v23 = vadd.f32 %v5043_v36, %v6400_v16  ;;  %v3035_v36 = vld [vmem:[%s3363_s11 + $0x170] sm:$0xff] }
 0x470   : > { %v3178_v54 = vpop.eup %3177  ;;  %v2163_v13 = vadd.f32 1.0, %v3176_v14  ;;  %v2142_v30 = vmul.f32 0.7978846, %v2134_v33  ;;  %v2185_v33 = vmul.f32 %v2177_v58, %v1791_v35  ;;  %v2183_v8 = vmul.f32 %v2175_v60, %v1788_v62  ;;  %v3217_v35 = vld [vmem:[%s6062_s1 + $0x30] sm:$0xff]  ;;  %v3218_v60 = vld [vmem:[%s6062_s1 + $0x38] sm:$0xff] }
 0x471   : > { %v2164_v17 = vadd.f32 1.0, %v3178_v54  ;;  %3179 = vtanh.f32 %v2141_v12  ;;  %v2184_v50 = vmul.f32 %v2176_v41, %v1829_v48  ;;  %v1826_v32 = vadd.f32 %v5049_v59, %v6400_v16  ;;  %v3036_v59 = vld [vmem:[%s3363_s11 + $0x178] sm:$0xff] }
 0x472   : > { %v2171_v10 = vmul.f32 0.5, %v2163_v13  ;;  %3181 = vtanh.f32 %v2142_v30  ;;  %v3031_v30 = vld [vmem:[%s3363_s11 + $0x150] sm:$0xff] }
 0x473   : > { %v2172_v26 = vmul.f32 0.5, %v2164_v17  ;;  %v3030_v17 = vld [vmem:[%s3363_s11 + $0x148] sm:$0xff] }
 0x474   : > { %v2179_v39 = vmul.f32 %v2171_v10, %v5086_v47  ;;  %v3025_v10 = vld [vmem:[%s3363_s11 + $0x120] sm:$0xff] }
 0x475   : > { %v2180_v5 = vmul.f32 %v2172_v26, %v5095_v43  ;;  %v3214_v26 = vld [vmem:[%s6062_s1 + $0x18] sm:$0xff] }
 0x476   : > { %v2187_v34 = vmul.f32 %v2179_v39, %v1794_v38  ;;  %v3215_v39 = vld [vmem:[%s6062_s1 + $0x20] sm:$0xff] }
 0x477   : > { %v3180_v42 = vpop.eup %3179  ;;  %v2188_v56 = vmul.f32 %v2180_v5, %v1835_v11  ;;  %v3216_v5 = vld [vmem:[%s6062_s1 + $0x28] sm:$0xff] }
 0x478   : > { %v3182_v47 = vpop.eup %3181  ;;  %2201 = vmatpush.msra.mxu0 %v2187_v34  ;;  %v2157_v43 = vadd.f32 1.0, %v3180_v42 }
 0x479   : > { %2236 = vmatpush.msra.mxu1 %v2188_v56  ;;  %v2158_v14 = vadd.f32 1.0, %v3182_v47 }
 0x47a   : > { %2202 = vmatpush.msra.mxu0 %v2185_v33  ;;  %v2165_v7 = vmul.f32 0.5, %v2157_v43 }
 0x47b   : > { %2237 = vmatpush.msra.mxu1 %v2186_v22  ;;  %v2166_v45 = vmul.f32 0.5, %v2158_v14 }
 0x47c   : > { %2203 = vmatpush.msra.mxu0 %v2183_v8  ;;  %v2173_v12 = vmul.f32 %v2165_v7, %v5115_v21  ;;  %v3033_v21 = vld [vmem:[%s3363_s11 + $0x160] sm:$0xff] }
 0x47d   : > { %2238 = vmatpush.msra.mxu1 %v2184_v50  ;;  %v2174_v54 = vmul.f32 %v2166_v45, %v5119_v40  ;;  %v3034_v40 = vld [vmem:[%s3363_s11 + $0x168] sm:$0xff] }
 0x47e   : > { %v2181_v13 = vmul.f32 %v2173_v12, %v1785_v23 }
 0x47f   : > { %v2182_v28 = vmul.f32 %v2174_v54, %v1826_v32  ;;  %v6420_v32 = vld [vmem:[#allocation3_spill] sm:$0xff] }
 0x480   : > { %2204 = vmatpush.msra.mxu0 %v2181_v13 }
 0x481   : > { %3001 = vmatmul.msk.f32.vlgmr.msra.gmra.mxu0 %vm1087_vm11, %v4941_v24  ;;  %2239 = vmatpush.msra.mxu1 %v2182_v28 }
 0x482   : > { %3007 = vmatmul.msk.f32.vlgmr.msra.gmra.mxu1 %vm1087_vm11, %v4941_v24  ;;  %2307 = vmatpush.msrb.mxu0 %v3035_v36  ;;  %v3029_v24 = vld [vmem:[%s3363_s11 + $0x140] sm:$0xff] }
 0x483   : > { %2348 = vmatpush.msrb.mxu1 %v3036_v59  ;;  %v6421_v59 = vld [vmem:[#allocation2_spill] sm:$0xff] }
 0x484   : > { %2308 = vmatpush.msrb.mxu0 %v3033_v21 }
 0x485   : > { %2349 = vmatpush.msrb.mxu1 %v3034_v40 }
 0x486   : > { %2309 = vmatpush.msrb.mxu0 %v3031_v30 }
 0x487   : > { %2350 = vmatpush.msrb.mxu1 %v3032_v61 }
 0x488   : > { %2310 = vmatpush.msrb.mxu0 %v3029_v24  ;;  %v6422_v24 = vld [vmem:[#allocation16_spill] sm:$0xff] }
 0x489   : > { %3002 = vmatmul.msk.f32.gmra.mxu0 %vm1087_vm11, %v4960_v46  ;;  %2351 = vmatpush.msrb.mxu1 %v3030_v17 }
 0x48a   : > { %3008 = vmatmul.msk.f32.gmra.mxu1 %vm1087_vm11, %v4960_v46  ;;  %2311 = vmatpush.msrb.mxu0 %v3027_v19  ;;  %v3211_v46 = vld [vmem:[%s6062_s1] sm:$0xff] }
 0x48b   : > { %2352 = vmatpush.msrb.mxu1 %v3028_v1 }
 0x48c   : > { %2312 = vmatpush.msrb.mxu0 %v3025_v10 }
 0x48d   : > { %2353 = vmatpush.msrb.mxu1 %v3026_v53  ;;  %v6423_v53 = vld [vmem:[#allocation13_spill] sm:$0xff] }
 0x491   : > { %3003 = vmatmul.msk.f32.gmra.mxu0 %vm1087_vm11, %v4972_v4 }
 0x492   : > { %3009 = vmatmul.msk.f32.gmra.mxu1 %vm1087_vm11, %v4972_v4  ;;  %v3212_v4 = vld [vmem:[%s6062_s1 + $0x8] sm:$0xff] }
 0x499   : > { %3004 = vmatmul.msk.f32.gmra.mxu0 %vm1087_vm11, %v4981_v52 }
 0x49a   : > { %3010 = vmatmul.msk.f32.gmra.mxu1 %vm1087_vm11, %v4981_v52  ;;  %v3213_v52 = vld [vmem:[%s6062_s1 + $0x10] sm:$0xff] }
 0x4a1   : > { %3005 = vmatmul.msk.f32.gmra.mxu0 %vm1087_vm11, %v4990_v29 }
 0x4a2   : > { %3011 = vmatmul.msk.f32.gmra.mxu1 %vm1087_vm11, %v4990_v29  ;;  %v5200_v29 = vpop.f32.mrf.mxu0 }
 0x4a3   : > { %6403 = vst [vmem:[#allocation70_spill] sm:$0xff] %v5200_v29 }
 0x4a9   : > { %3006 = vmatmul.msk.f32.gmra.mxu0 %vm1087_vm11, %v4999_v31 }
 0x4aa   : > { %3012 = vmatmul.msk.f32.gmra.mxu1 %vm1087_vm11, %v4999_v31  ;;  %v5202_v31 = vpop.f32.mrf.mxu1  ;;  %v5209_v37 = vpop.f32.mrf.mxu0 }
 0x4ab   : > { %6404 = vst [vmem:[#allocation73_spill] sm:$0xff] %v5202_v31 }
 0x4b1   : > { %3037 = vmatmul.msk.f32.vlgmr.msrb.gmra.mxu0 %vm558_vm0, %v3211_v46 }
 0x4b2   : > { %3045 = vmatmul.msk.f32.vlgmr.msrb.gmra.mxu1 %vm558_vm0, %v3211_v46  ;;  %v5211_v38 = vpop.f32.mrf.mxu1  ;;  %v5218_v58 = vpop.f32.mrf.mxu0 }
 0x4b3   : > { %6405 = vst [vmem:[#allocation71_spill] sm:$0xff] %v5218_v58  ;;  %v6434_v58 = vld [vmem:[#allocation32_spill] sm:$0xff] }
 0x4b9   : > { %3038 = vmatmul.msk.f32.gmra.mxu0 %vm558_vm0, %v3212_v4 }
 0x4ba   : > { %3046 = vmatmul.msk.f32.gmra.mxu1 %vm558_vm0, %v3212_v4  ;;  %v5220_v11 = vpop.f32.mrf.mxu1  ;;  %v5227_v20 = vpop.f32.mrf.mxu0 }
 0x4bb   : > { %6406 = vst [vmem:[#allocation72_spill] sm:$0xff] %v5220_v11 }
 0x4bc   : > { %6407 = vst [vmem:[#allocation74_spill] sm:$0xff] %v5227_v20 }
 0x4c1   : > { %3039 = vmatmul.msk.f32.gmra.mxu0 %vm558_vm0, %v3213_v52 }
 0x4c2   : > { %3047 = vmatmul.msk.f32.gmra.mxu1 %vm558_vm0, %v3213_v52  ;;  %v5233_v34 = vpop.f32.mrf.mxu1  ;;  %v5241_v42 = vpop.f32.mrf.mxu0 }
 0x4c3   : > { %6408 = vst [vmem:[#allocation77_spill] sm:$0xff] %v5233_v34 }
 0x4c9   : > { %3040 = vmatmul.msk.f32.gmra.mxu0 %vm558_vm0, %v3214_v26 }
 0x4ca   : > { %3048 = vmatmul.msk.f32.gmra.mxu1 %vm558_vm0, %v3214_v26  ;;  %v5243_v44 = vpop.f32.mrf.mxu1  ;;  %v5245_v56 = vpop.f32.mrf.mxu0 }
 0x4cb   : > { %6409 = vst [vmem:[#allocation78_spill] sm:$0xff] %v5245_v56 }
 0x4d1   : > { %3041 = vmatmul.msk.f32.gmra.mxu0 %vm558_vm0, %v3215_v39 }
 0x4d2   : > { %3049 = vmatmul.msk.f32.gmra.mxu1 %vm558_vm0, %v3215_v39  ;;  %v5247_v41 = vpop.f32.mrf.mxu1 }
 0x4d3   : > { %6410 = vst [vmem:[#allocation64_spill] sm:$0xff] %v5247_v41 }
 0x4d9   : > { %3042 = vmatmul.msk.f32.gmra.mxu0 %vm558_vm0, %v3216_v5 }
 0x4da   : > { %3050 = vmatmul.msk.f32.gmra.mxu1 %vm558_vm0, %v3216_v5 }
 0x4e1   : > { %3043 = vmatmul.msk.f32.gmra.mxu0 %vm558_vm0, %v3217_v35 }
 0x4e2   : > { %3051 = vmatmul.msk.f32.gmra.mxu1 %vm558_vm0, %v3217_v35 }
 0x4e9   : > { %3044 = vmatmul.msk.f32.gmra.mxu0 %vm558_vm0, %v3218_v60 }
 0x4ea   : > { %3052 = vmatmul.msk.f32.gmra.mxu1 %vm558_vm0, %v3218_v60 }
 0x4fe   : > { %v5249_v47 = vpop.f32.mrf.mxu0 }
 0x4ff   : > { %6411 = vst [vmem:[#allocation65_spill] sm:$0xff] %v5249_v47  ;;  %v5251_v62 = vpop.f32.mrf.mxu1 }
 0x500   : > { %6412 = vst [vmem:[#allocation79_spill] sm:$0xff] %v5251_v62 }
 0x506   : > { %v5253_v33 = vpop.f32.mrf.mxu0 }
 0x507   : > { %v5255_v43 = vpop.f32.mrf.mxu1 }
 0x50e   : > { %v5257_v48 = vpop.f32.mrf.mxu0 }
 0x50f   : > { %6413 = vst [vmem:[#allocation80_spill] sm:$0xff] %v5257_v48  ;;  %v5259_v22 = vpop.f32.mrf.mxu1 }
 0x510   : > { %6414 = vst [vmem:[#allocation75_spill] sm:$0xff] %v5259_v22 }
 0x516   : > { %v5261_v14 = vpop.f32.mrf.mxu0 }
 0x517   : > { %6415 = vst [vmem:[#allocation76_spill] sm:$0xff] %v5261_v14  ;;  %v5263_v8 = vpop.f32.mrf.mxu1 }
 0x518   : > { %6416 = vst [vmem:[#allocation66_spill] sm:$0xff] %v5263_v8 }
 0x51e   : > { %v5265_v7 = vpop.f32.mrf.mxu0 }
 0x51f   : > { %v5267_v50 = vpop.f32.mrf.mxu1 }
 0x520   : > { %6417 = vst [vmem:[#allocation67_spill] sm:$0xff] %v5267_v50 }
 0x526   : > { %v5269_v45 = vpop.f32.mrf.mxu0 }
 0x527   : > { %6418 = vst [vmem:[#allocation68_spill] sm:$0xff] %v5269_v45  ;;  %v5271_v23 = vpop.f32.mrf.mxu1 }
 0x528   : > { %6419 = vst [vmem:[#allocation69_spill] sm:$0xff] %v5271_v23 }
 0x52e   : > { %v2314_v12 = vpop.f32.mrf.mxu0 }
 0x52f   : > { %v5274_v54 = vadd.f32 %v2314_v12, %v6420_v32  ;;  %v2355_v13 = vpop.f32.mrf.mxu1 }
 0x530   : > { %v5277_v28 = vadd.f32 %v2355_v13, %v6420_v32 }
 0x531   : > { %2379 = vrot.lane.b32.xlu0 %v5274_v54, %s3290_s13 }
 0x532   : > { %2387 = vrot.lane.b32.xlu1 %v5277_v28, %s3290_s13 }
 0x536   : > { %v2317_v36 = vpop.f32.mrf.mxu0 }
 0x537   : > { %v5284_v21 = vadd.f32 %v2317_v36, %v6421_v59  ;;  %v2358_v40 = vpop.f32.mrf.mxu1 }
 0x538   : > { %v5287_v30 = vadd.f32 %v2358_v40, %v6421_v59  ;;  %v6425_v59 = vld [vmem:[#allocation43_spill] sm:$0xff] }
 0x539   : > { %2381 = vrot.lane.b32.xlu2 %v5284_v21, %s3290_s13 }
 0x53a   : > { %2389 = vrot.lane.b32.xlu0 %v5287_v30, %s3290_s13 }
 0x53e   : > { %v2320_v61 = vpop.f32.mrf.mxu0 }
 0x53f   : > { %v5294_v17 = vadd.f32 %v2320_v61, %v6422_v24  ;;  %v2361_v19 = vpop.f32.mrf.mxu1 }
 0x540   : > { %v5301_v1 = vadd.f32 %v2361_v19, %v6422_v24  ;;  %v6426_v24 = vld [vmem:[#allocation33_spill] sm:$0xff] }
 0x541   : > { %2383 = vrot.lane.b32.xlu1 %v5294_v17, %s3290_s13  ;;  %2413 = vrot.lane.b32.xlu2 %v5284_v21, %s3291_s14  ;;  %v2451_v19 = vmul.f32 %v5274_v54, %v6426_v24 }
 0x546   : > { %v2323_v4 = vpop.f32.mrf.mxu0 }
 0x547   : > { %v2364_v10 = vpop.f32.mrf.mxu1  ;;  %v5313_v52 = vadd.f32 %v2323_v4, %v6423_v53 }
 0x548   : > { %v5304_v46 = vadd.f32 %v2364_v10, %v6423_v53  ;;  %v2452_v10 = vmul.f32 %v5277_v28, %v6426_v24  ;;  %v6427_v24 = vld [vmem:[#allocation30_spill] sm:$0xff] }
 0x549   : > { %2415 = vrot.lane.b32.xlu1 %v5294_v17, %s3291_s14  ;;  %2391 = vrot.lane.b32.xlu2 %v5301_v1, %s3290_s13 }
 0x54a   : > { %2393 = vrot.lane.b32.xlu0 %v5304_v46, %s3290_s13 }
 0x551   : > { %2425 = vrot.lane.b32.xlu1 %v5304_v46, %s3291_s14  ;;  %2423 = vrot.lane.b32.xlu2 %v5301_v1, %s3291_s14 }
 0x552   : > { %2417 = vrot.lane.b32.xlu0 %v5313_v52, %s3291_s14 }
 0x559   : > { %2385 = vrot.lane.b32.xlu2 %v5313_v52, %s3290_s13  ;;  %2411 = vrot.lane.b32.xlu1 %v5274_v54, %s3291_s14 }
 0x55a   : > { %2421 = vrot.lane.b32.xlu0 %v5287_v30, %s3291_s14 }
 0x561   : > { %2419 = vrot.lane.b32.xlu2 %v5277_v28, %s3291_s14 }
 0x593   : > { %v2382_v26 = vpop.permute.xlu2 %2381 }
 0x59b   : > { %v5329_v39 = vpop.permute.xlu2 %2413 }
 0x5a3   : > { %v2380_v5 = vpop.permute.xlu0 %2379  ;;  %v2392_v53 = vpop.permute.xlu2 %2391 }
 0x5a4   : > { %v2388_v35 = vpop.permute.xlu1 %2387 }
 0x5a5   : > { %v2395_v60 = vsel %vm681_vm1, %v2380_v5, %v2388_v35  ;;  %v2399_v12 = vsel %vm681_vm1, %v2388_v35, %v2380_v5 }
 0x5a6   : > { %v5337_v32 = vsel %vm3649_vm3, %v2399_v12, 0.0  ;;  %v5341_v36 = vsel %vm3653_vm4, %v2395_v60, 0.0 }
 0x5a7   : > { %v2443_v40 = vmul.f32 %v5337_v32, %v6425_v59  ;;  %v2444_v61 = vmul.f32 %v5341_v36, %v6425_v59 }
 0x5a9   : > { %v5351_v4 = vadd.f32 %v2451_v19, %v2443_v40  ;;  %v5353_v5 = vadd.f32 %v2452_v10, %v2444_v61  ;;  %v2453_v40 = vmul.f32 %v5284_v21, %v6427_v24  ;;  %v6428_v61 = vld [vmem:[#allocation39_spill] sm:$0xff] }
 0x5ab   : > { %v2424_v45 = vpop.permute.xlu2 %2423 }
 0x5ac   : > { %v2390_v35 = vpop.permute.xlu0 %2389 }
 0x5ad   : > { %v2396_v60 = vsel %vm681_vm1, %v2382_v26, %v2390_v35  ;;  %v2400_v12 = vsel %vm681_vm1, %v2390_v35, %v2382_v26  ;;  %v2454_v26 = vmul.f32 %v5287_v30, %v6427_v24  ;;  %v6429_v24 = vld [vmem:[#allocation37_spill] sm:$0xff] }
 0x5ae   : > { %v5361_v59 = vsel %vm3649_vm3, %v2400_v12, 0.0  ;;  %v5365_v23 = vsel %vm3653_vm4, %v2396_v60, 0.0 }
 0x5af   : > { %v2445_v19 = vmul.f32 %v5361_v59, %v6428_v61  ;;  %v2446_v10 = vmul.f32 %v5365_v23, %v6428_v61 }
 0x5b1   : > { %v5375_v35 = vadd.f32 %v2453_v40, %v2445_v19  ;;  %v5377_v12 = vadd.f32 %v2454_v26, %v2446_v10  ;;  %v6430_v10 = vld [vmem:[#allocation35_spill] sm:$0xff] }
 0x5b2   : > { %v2455_v26 = vmul.f32 %v5294_v17, %v6430_v10 }
 0x5b3   : > { %v2384_v41 = vpop.permute.xlu1 %2383  ;;  %v2386_v11 = vpop.permute.xlu2 %2385 }
 0x5b4   : > { %v2397_v60 = vsel %vm681_vm1, %v2384_v41, %v2392_v53  ;;  %v2401_v56 = vsel %vm681_vm1, %v2392_v53, %v2384_v41  ;;  %v2456_v41 = vmul.f32 %v5301_v1, %v6430_v10  ;;  %v6432_v10 = vld [vmem:[#allocation41_spill] sm:$0xff] }
 0x5b5   : > { %v5385_v8 = vsel %vm3649_vm3, %v2401_v56, 0.0  ;;  %v5389_v61 = vsel %vm3653_vm4, %v2397_v60, 0.0 }
 0x5b6   : > { %v2447_v40 = vmul.f32 %v5385_v8, %v6429_v24  ;;  %v2448_v19 = vmul.f32 %v5389_v61, %v6429_v24 }
 0x5b8   : > { %v2463_v53 = vadd.f32 %v2455_v26, %v2447_v40  ;;  %v2464_v22 = vadd.f32 %v2456_v41, %v2448_v19 }
 0x5bb   : > { %v2416_v56 = vpop.permute.xlu1 %2415 }
 0x5bc   : > { %v2429_v60 = vsel %vm718_vm2, %v2416_v56, %v2424_v45  ;;  %v2433_v14 = vsel %vm718_vm2, %v2424_v45, %v2416_v56  ;;  %v2394_v34 = vpop.permute.xlu0 %2393  ;;  %v6433_v56 = vld [vmem:[#allocation24_spill] sm:$0xff] }
 0x5bd   : > { %v5405_v24 = vsel %vm3657_vm5, %v2429_v60, 0.0  ;;  %v5409_v48 = vsel %vm3661_vm6, %v2433_v14, 0.0  ;;  %v2398_v40 = vsel %vm681_vm1, %v2386_v11, %v2394_v34  ;;  %v2402_v19 = vsel %vm681_vm1, %v2394_v34, %v2386_v11 }
 0x5be   : > { %v2471_v26 = vmul.f32 %v5405_v24, %v6432_v10  ;;  %v2472_v45 = vmul.f32 %v5409_v48, %v6432_v10  ;;  %v5421_v41 = vsel %vm3649_vm3, %v2402_v19, 0.0  ;;  %v5425_v14 = vsel %vm3653_vm4, %v2398_v40, 0.0 }
 0x5bf   : > { %v2457_v60 = vmul.f32 %v5313_v52, %v6433_v56  ;;  %v2449_v11 = vmul.f32 %v5421_v41, %v6434_v58  ;;  %v2450_v34 = vmul.f32 %v5425_v14, %v6434_v58  ;;  %v2458_v10 = vmul.f32 %v5304_v46, %v6433_v56 }
 0x5c0   : > { %v5435_v49 = vadd.f32 %v2471_v26, %v2463_v53  ;;  %v5437_v31 = vadd.f32 %v2472_v45, %v2464_v22  ;;  %v6436_v53 = vld [vmem:[#allocation27_spill] sm:$0xff]  ;;  %v6437_v45 = vld [vmem:[#allocation29_spill] sm:$0xff] }
 0x5c1   : > { %v2465_v62 = vadd.f32 %v2457_v60, %v2449_v11  ;;  %v2466_v13 = vadd.f32 %v2458_v10, %v2450_v34  ;;  %v2483_v60 = vmul.f32 %v5337_v32, %v6437_v45  ;;  %v6440_v10 = vld [vmem:[#allocation21_spill] sm:$0xff] }
 0x5c2   : > { %6435 = vst [vmem:[#allocation62_spill] sm:$0xff] %v5437_v31  ;;  %v6454_v31 = vld [vmem:[#allocation17_spill] sm:$0xff] }
 0x5c3   : > { %v2426_v19 = vpop.permute.xlu1 %2425 }
 0x5c4   : > { %v2418_v40 = vpop.permute.xlu0 %2417 }
 0x5c5   : > { %v2430_v57 = vsel %vm718_vm2, %v2418_v40, %v2426_v19  ;;  %v2434_v6 = vsel %vm718_vm2, %v2426_v19, %v2418_v40  ;;  %v2492_v19 = vmul.f32 %v5277_v28, %v6440_v10  ;;  %v2420_v40 = vpop.permute.xlu2 %2419 }
 0x5c6   : > { %v5445_v58 = vsel %vm3657_vm5, %v2430_v57, 0.0  ;;  %v5449_v56 = vsel %vm3661_vm6, %v2434_v6, 0.0  ;;  %v2484_v57 = vmul.f32 %v5341_v36, %v6437_v45  ;;  %v2491_v6 = vmul.f32 %v5274_v54, %v6440_v10 }
 0x5c7   : > { %v2473_v22 = vmul.f32 %v5445_v58, %v6436_v53  ;;  %v2474_v26 = vmul.f32 %v5449_v56, %v6436_v53  ;;  %v6441_v53 = vld [vmem:[#allocation14_spill] sm:$0xff] }
 0x5c8   : > { %v2499_v16 = vadd.f32 %v2491_v6, %v2483_v60  ;;  %v2485_v47 = vmul.f32 %v5361_v59, %v6441_v53  ;;  %v2500_v6 = vadd.f32 %v2492_v19, %v2484_v57  ;;  %v2486_v55 = vmul.f32 %v5365_v23, %v6441_v53  ;;  %v6449_v53 = vld [vmem:[#allocation9_spill] sm:$0xff] }
 0x5c9   : > { %v5457_v11 = vadd.f32 %v2473_v22, %v2465_v62  ;;  %v5459_v34 = vadd.f32 %v2474_v26, %v2466_v13 }
 0x5cb   : > { %6438 = vst [vmem:[#allocation63_spill] sm:$0xff] %v5457_v11  ;;  %v2412_v63 = vpop.permute.xlu1 %2411 }
 0x5cc   : > { %6439 = vst [vmem:[#allocation3_spill] sm:$0xff] %v5459_v34  ;;  %v2427_v62 = vsel %vm718_vm2, %v2412_v63, %v2420_v40  ;;  %v2431_v13 = vsel %vm718_vm2, %v2420_v40, %v2412_v63  ;;  %v2422_v22 = vpop.permute.xlu0 %2421  ;;  %v6443_v40 = vld [vmem:[#allocation25_spill] sm:$0xff]  ;;  %v6445_v34 = vld [vmem:[#allocation48_spill] sm:$0xff] }
 0x5cd   : > { %v5475_v26 = vsel %vm3657_vm5, %v2427_v62, 0.0  ;;  %v5479_v45 = vsel %vm3661_vm6, %v2431_v13, 0.0  ;;  %v2428_v60 = vsel %vm718_vm2, %v5329_v39, %v2422_v22  ;;  %v2432_v10 = vsel %vm718_vm2, %v2422_v22, %v5329_v39  ;;  %v6444_v39 = vld [vmem:[#allocation7_spill] sm:$0xff] }
 0x5ce   : > { %v2468_v63 = vmul.f32 %v5479_v45, %v6442_v15  ;;  %v2507_v62 = vmul.f32 %v5475_v26, %v6443_v40  ;;  %v2508_v29 = vmul.f32 %v5479_v45, %v6443_v40  ;;  %v2467_v13 = vmul.f32 %v5475_v26, %v6442_v15 }
 0x5cf   : > { %v2437_v9 = vsel %vm3657_vm5, %v2428_v60, 0.0  ;;  %v5499_v11 = vsel %vm3661_vm6, %v2432_v10, 0.0  ;;  %v2493_v57 = vmul.f32 %v5284_v21, %v6444_v39  ;;  %v6447_v60 = vld [vmem:[#allocation26_spill] sm:$0xff] }
 0x5d0   : > { %v2515_v19 = vadd.f32 %v2507_v62, %v2499_v16  ;;  %v2516_v22 = vadd.f32 %v2508_v29, %v2500_v6  ;;  %v2469_v18 = vmul.f32 %v2437_v9, %v6445_v34  ;;  %v2470_v40 = vmul.f32 %v5499_v11, %v6445_v34  ;;  %v6450_v62 = vld [vmem:[#allocation8_spill] sm:$0xff] }
 0x5d1   : > { %v2509_v25 = vmul.f32 %v2437_v9, %v6446_v3  ;;  %v2501_v15 = vadd.f32 %v2493_v57, %v2485_v47  ;;  %v2487_v20 = vmul.f32 %v5385_v8, %v6447_v60  ;;  %v5514_v16 = vadd.f32 %v2468_v63, %v5353_v5 }
 0x5d2   : > { %2531 = vrot.lane.b32.xlu2 %v2516_v22, %s3292_s26  ;;  %2523 = vrot.lane.b32.xlu1 %v2515_v19, %s3292_s26  ;;  %v2494_v29 = vmul.f32 %v5287_v30, %v6444_v39  ;;  %v5519_v10 = vadd.f32 %v2467_v13, %v5351_v4  ;;  %v5522_v47 = vadd.f32 %v2469_v18, %v5375_v35  ;;  %v6451_v39 = vld [vmem:[#allocation22_spill] sm:$0xff]  ;;  %v6453_v19 = vld [vmem:[#allocation28_spill] sm:$0xff] }
 0x5d3   : > { %v2517_v34 = vadd.f32 %v2509_v25, %v2501_v15  ;;  %v2495_v6 = vmul.f32 %v5294_v17, %v6449_v53  ;;  %v2511_v57 = vmul.f32 %v5405_v24, %v6450_v62  ;;  %v2510_v5 = vmul.f32 %v5499_v11, %v6446_v3  ;;  %v6452_v35 = vld [vmem:[#allocation18_spill] sm:$0xff] }
 0x5d4   : > { %6448 = vst [vmem:[#allocation2_spill] sm:$0xff] %v5522_v47  ;;  %v5531_v63 = vadd.f32 %v2470_v40, %v5377_v12  ;;  %v2565_v25 = vmul.f32 %v5361_v59, %v6451_v39  ;;  %v2502_v4 = vadd.f32 %v2494_v29, %v2486_v55  ;;  %v2573_v13 = vmul.f32 %v5284_v21, %v6452_v35  ;;  %v6455_v12 = vld [vmem:[#allocation23_spill] sm:$0xff]  ;;  %v6456_v55 = vld [vmem:[#allocation12_spill] sm:$0xff]  ;;  %v6458_v29 = vld [vmem:[#allocation6_spill] sm:$0xff] }
 0x5d5   : > { %2525 = vrot.lane.b32.xlu0 %v2517_v34, %s3292_s26  ;;  %v2503_v18 = vadd.f32 %v2495_v6, %v2487_v20  ;;  %v2589_v22 = vmul.f32 %v2437_v9, %v6453_v19  ;;  %v2567_v3 = vmul.f32 %v5385_v8, %v6454_v31  ;;  %v2490_v40 = vmul.f32 %v5425_v14, %v6455_v12  ;;  %v6457_v21 = vld [vmem:[#allocation31_spill] sm:$0xff]  ;;  %v6459_v6 = vld [vmem:[#allocation4_spill] sm:$0xff] }
 0x5d6   : > { %v2518_v47 = vadd.f32 %v2510_v5, %v2502_v4  ;;  %v2581_v50 = vadd.f32 %v2573_v13, %v2565_v25  ;;  %v2575_v20 = vmul.f32 %v5294_v17, %v6456_v55  ;;  %v2591_v9 = vmul.f32 %v5405_v24, %v6457_v21 }
 0x5d7   : > { %v2519_v15 = vadd.f32 %v2511_v57, %v2503_v18  ;;  %v2498_v34 = vmul.f32 %v5304_v46, %v6458_v29  ;;  %v2514_v8 = vmul.f32 %v5449_v56, %v6459_v6  ;;  %v2488_v57 = vmul.f32 %v5389_v61, %v6447_v60  ;;  %v6460_v18 = vld [vmem:[#allocation5_spill] sm:$0xff] }
 0x5d8   : > { %v2597_v59 = vadd.f32 %v2589_v22, %v2581_v50  ;;  %v2583_v5 = vadd.f32 %v2575_v20, %v2567_v3  ;;  %v2496_v50 = vmul.f32 %v5301_v1, %v6449_v53  ;;  %v2512_v17 = vmul.f32 %v5409_v48, %v6450_v62  ;;  %v6462_v3 = vld [vmem:[#allocation19_spill] sm:$0xff] }
 0x5d9   : > { %v2569_v13 = vmul.f32 %v5421_v41, %v6460_v18  ;;  %v2570_v22 = vmul.f32 %v5425_v14, %v6460_v18  ;;  %v2568_v14 = vmul.f32 %v5389_v61, %v6454_v31  ;;  %v2587_v61 = vmul.f32 %v5475_v26, %v3552_v2 }
 0x5da   : > { %2527 = vrot.lane.b32.xlu2 %v2519_v15, %s3292_s26  ;;  %2533 = vrot.lane.b32.xlu1 %v2518_v47, %s3292_s26  ;;  %v2506_v47 = vadd.f32 %v2498_v34, %v2490_v40  ;;  %v2599_v24 = vadd.f32 %v2591_v9, %v2583_v5  ;;  %v2504_v4 = vadd.f32 %v2496_v50, %v2488_v57  ;;  %v6461_v15 = vld [vmem:[#allocation11_spill] sm:$0xff] }
 0x5db   : > { %v2577_v53 = vmul.f32 %v5313_v52, %v6461_v15  ;;  %v2578_v62 = vmul.f32 %v5304_v46, %v6461_v15  ;;  %v2593_v40 = vmul.f32 %v5445_v58, %v6462_v3  ;;  %v2576_v34 = vmul.f32 %v5301_v1, %v6456_v55 }
 0x5dc   : > { %v2522_v25 = vadd.f32 %v2514_v8, %v2506_v47  ;;  %v2520_v60 = vadd.f32 %v2512_v17, %v2504_v4  ;;  %v2592_v8 = vmul.f32 %v5409_v48, %v6457_v21  ;;  %v2563_v47 = vmul.f32 %v5337_v32, %v6292_v51 }
 0x5dd   : > { %2605 = vrot.lane.b32.xlu0 %v2597_v59, %s3293_s27  ;;  %v2594_v59 = vmul.f32 %v5449_v56, %v6462_v3  ;;  %v2585_v20 = vadd.f32 %v2577_v53, %v2569_v13  ;;  %v2586_v9 = vadd.f32 %v2578_v62, %v2570_v22  ;;  %v2584_v5 = vadd.f32 %v2576_v34, %v2568_v14 }
 0x5de   : > { %v2566_v56 = vmul.f32 %v5365_v23, %v6451_v39  ;;  %v2571_v1 = vmul.f32 %v5274_v54, %v6294_v0  ;;  %v2574_v48 = vmul.f32 %v5287_v30, %v6452_v35  ;;  %v2590_v32 = vmul.f32 %v5499_v11, %v6453_v19  ;;  %v309_v19 = vld [vmem:[%s6067_s6] sm:$0xff] }
 0x5df   : > { %v2601_v46 = vadd.f32 %v2593_v40, %v2585_v20  ;;  %v2602_v57 = vadd.f32 %v2594_v59, %v2586_v9  ;;  %v2600_v31 = vadd.f32 %v2592_v8, %v2584_v5  ;;  %v2489_v23 = vmul.f32 %v5421_v41, %v6455_v12  ;;  %v6464_v20 = vld [vmem:[#allocation44_spill] sm:$0xff]  ;;  %v3221_v5 = vld [vmem:[%s3363_s11 + $0x18] sm:$0xff] }
 0x5e0   : > { %v2579_v39 = vadd.f32 %v2571_v1, %v2563_v47  ;;  %v2582_v55 = vadd.f32 %v2574_v48, %v2566_v56  ;;  %v2497_v21 = vmul.f32 %v5313_v52, %v6458_v29  ;;  %v2513_v54 = vmul.f32 %v5445_v58, %v6459_v6  ;;  %v310_v58 = vld [vmem:[%s6067_s6 + $0x8] sm:$0xff]  ;;  %v3222_v1 = vld [vmem:[%s3363_s11 + $0xd0] sm:$0xff]  ;;  %v3223_v48 = vld [vmem:[%s3363_s11 + $0x78] sm:$0xff] }
 0x5e1   : > { %v2564_v41 = vmul.f32 %v5341_v36, %v6292_v51  ;;  %v2572_v26 = vmul.f32 %v5277_v28, %v6294_v0  ;;  %v2588_v52 = vmul.f32 %v5479_v45, %v3552_v2  ;;  %v313_v0 = vld [vmem:[%s6067_s6 + $0x20] sm:$0xff]  ;;  %v312_v2 = vld [vmem:[%s6067_s6 + $0x18] sm:$0xff]  ;;  %v311_v28 = vld [vmem:[%s6067_s6 + $0x10] sm:$0xff] }
 0x5e2   : > { %2607 = vrot.lane.b32.xlu2 %v2599_v24, %s3293_s27  ;;  %2537 = vrot.lane.b32.xlu1 %v2522_v25, %s3292_s26  ;;  %v2595_v30 = vadd.f32 %v2587_v61, %v2579_v39  ;;  %v2598_v35 = vadd.f32 %v2590_v32, %v2582_v55  ;;  %v2505_v50 = vadd.f32 %v2497_v21, %v2489_v23  ;;  %v314_v36 = vld [vmem:[%s6067_s6 + $0x28] sm:$0xff]  ;;  %v5685_v32 = vpop.f32.mrf.mxu0  ;;  %v5688_v23 = vpop.f32.mrf.mxu1 }
 0x5e3   : > { %v2580_v12 = vadd.f32 %v2572_v26, %v2564_v41  ;;  %v6466_v41 = vld [vmem:[#allocation59_spill] sm:$0xff] }
 0x5e4   : > { %v2521_v11 = vadd.f32 %v2513_v54, %v2505_v50  ;;  %v6465_v50 = vld [vmem:[#allocation58_spill] sm:$0xff] }
 0x5e5   : > { %2535 = vrot.lane.b32.xlu0 %v2520_v60, %s3292_s26  ;;  %v2596_v51 = vadd.f32 %v2588_v52, %v2580_v12 }
 0x5ea   : > { %2617 = vrot.lane.b32.xlu2 %v2602_v57, %s3293_s27  ;;  %2609 = vrot.lane.b32.xlu1 %v2601_v46, %s3293_s27 }
 0x5ed   : > { %2615 = vrot.lane.b32.xlu0 %v2600_v31, %s3293_s27 }
 0x5f2   : > { %2603 = vrot.lane.b32.xlu2 %v2595_v30, %s3293_s27  ;;  %2613 = vrot.lane.b32.xlu1 %v2598_v35, %s3293_s27  ;;  %v3224_v30 = vld [vmem:[%s3363_s11 + $0xd8] sm:$0xff] }
 0x5f5   : > { %2529 = vrot.lane.b32.xlu0 %v2521_v11, %s3292_s26 }
 0x5fa   : > { %1064 = vperm.xlu2 %3132, %v310_v58   ;;  %1059 = vperm.xlu1 %3134, %v309_v19  }
 0x5fd   : > { %2611 = vrot.lane.b32.xlu0 %v2596_v51, %s3293_s27 }
 0x602   : > { %1079 = vperm.xlu2 %3132, %v313_v0   ;;  %1074 = vperm.xlu1 %3134, %v312_v2   ;;  %v6467_v0 = vld [vmem:[#allocation62_spill] sm:$0xff] }
 0x605   : > { %1069 = vperm.xlu0 %3133, %v311_v28   ;;  %v3225_v28 = vld [vmem:[%s3363_s11 + $0x40] sm:$0xff] }
 0x60d   : > { %1084 = vperm.xlu0 %3133, %v314_v36  }
 0x62c   : > { %v2532_v45 = vpop.permute.xlu2 %2531 }
 0x634   : > { %v2528_v29 = vpop.permute.xlu2 %2527 }
 0x63c   : > { %v5630_v6 = vpop.permute.xlu2 %2607 }
 0x644   : > { %v5632_v17 = vpop.permute.xlu2 %2617  ;;  %v2524_v24 = vpop.permute.xlu1 %2523 }
 0x645   : > { %v2539_v25 = vsel %vm835_vm8, %v2524_v24, %v2532_v45  ;;  %v2543_v4 = vsel %vm835_vm8, %v2532_v45, %v2524_v24  ;;  %v3226_v45 = vld [vmem:[%s3363_s11 + $0xa0] sm:$0xff] }
 0x646   : > { %v2547_v18 = vsel %vm502_vm10, %v2543_v4, 0.0  ;;  %v5641_v13 = vadd.f32 %v2539_v25, %v5514_v16  ;;  %v6463_v16 = vld [vmem:[#allocation40_spill] sm:$0xff]  ;;  %v3227_v25 = vld [vmem:[%s3363_s11 + $0x48] sm:$0xff] }
 0x647   : > { %v5644_v22 = vadd.f32 %v2547_v18, %v5519_v10  ;;  %v5646_v60 = vpop.permute.xlu0 %2525 }
 0x64c   : > { %v5648_v15 = vpop.permute.xlu2 %2603  ;;  %v5650_v53 = vpop.permute.xlu1 %2533 }
 0x64f   : > { %v5652_v62 = vpop.permute.xlu0 %2605 }
 0x654   : > { %v5654_v3 = vpop.permute.xlu2 %1064  ;;  %v5656_v40 = vpop.permute.xlu1 %2537 }
 0x655   : > { %v1127_v59 = vadd.f32 %v6463_v16, %v5654_v3  ;;  %v1668_v10 = vadd.f32 %v5209_v37, %v5654_v3  ;;  %v2210_v14 = vadd.f32 %v5253_v33, %v5654_v3  ;;  %v1162_v9 = vadd.f32 %v6464_v20, %v5654_v3  ;;  %v3219_v37 = vld [vmem:[%s3363_s11 + $0x10] sm:$0xff]  ;;  %v3229_v20 = vld [vmem:[%s3363_s11 + $0xa8] sm:$0xff] }
 0x656   : > { %v1703_v34 = vadd.f32 %v5211_v38, %v5654_v3  ;;  %v3220_v33 = vld [vmem:[%s3363_s11 + $0x70] sm:$0xff]  ;;  %v2245_v56 = vadd.f32 %v5255_v43, %v5654_v3  ;;  %v2544_v43 = vsel %vm835_vm8, %v5650_v53, %v5646_v60 }
 0x657   : > { %v2536_v8 = vpop.permute.xlu0 %2535  ;;  %v1178_v46 = vadd.f32 %v3219_v37, %v1127_v59  ;;  %v1719_v57 = vadd.f32 %v3220_v33, %v1668_v10  ;;  %v1179_v47 = vadd.f32 %v3221_v5, %v1162_v9  ;;  %v2261_v38 = vadd.f32 %v3222_v1, %v2210_v14  ;;  %v3228_v10 = vld [vmem:[%s3363_s11 + $0x100] sm:$0xff] }
 0x658   : > { %v2545_v31 = vsel %vm835_vm8, %v2536_v8, %v2528_v29  ;;  %v1720_v61 = vadd.f32 %v3223_v48, %v1703_v34  ;;  %v2541_v39 = vsel %vm835_vm8, %v2528_v29, %v2536_v8  ;;  %v2262_v35 = vadd.f32 %v3224_v30, %v2245_v56  ;;  %v6468_v29 = vld [vmem:[#allocation67_spill] sm:$0xff]  ;;  %v6471_v33 = vld [vmem:[#allocation2_spill] sm:$0xff] }
 0x659   : > { %1190 = vst [vmem:[%s5671_s29 + $0x10] sm:$0xff] %v1178_v46  ;;  %v2551_v55 = vsel %vm502_vm10, %v2545_v31, 0.0  ;;  %v2549_v19 = vsel %vm502_vm10, %v2544_v43, 0.0  ;;  %v2560_v2 = vadd.f32 %v2541_v39, %v6467_v0  ;;  %v2540_v34 = vsel %vm835_vm8, %v5646_v60, %v5650_v53  ;;  %v5746_v46 = vpop.f32.mrf.mxu0  ;;  %v3230_v56 = vld [vmem:[%s3363_s11 + $0x108] sm:$0xff]  ;;  %v5754_v60 = vpop.f32.mrf.mxu1 }
 0x65a   : > { %2963 = vst [vmem:[%s5671_s29 + $0x70] sm:$0xff] %v1719_v57  ;;  %v2559_v51 = vadd.f32 %v2551_v55, %v5435_v49  ;;  %v2557_v57 = vadd.f32 %v2549_v19, %v6471_v33  ;;  %v2558_v53 = vadd.f32 %v2540_v34, %v5531_v63  ;;  %v6473_v19 = vld [vmem:[#allocation3_spill] sm:$0xff]  ;;  %v6477_v34 = vld [vmem:[#allocation70_spill] sm:$0xff] }
 0x65b   : > { %3015 = vst [vmem:[%s5671_s29 + $0xd0] sm:$0xff] %v2261_v38 }
 0x65c   : > { %v5699_v21 = vpop.permute.xlu2 %1079  ;;  %v5701_v54 = vpop.permute.xlu1 %2609  ;;  %1191 = vst [vmem:[%s5671_s29 + $0x18] sm:$0xff] %v1179_v47 }
 0x65d   : > { %v1136_v11 = vadd.f32 %v6465_v50, %v5699_v21  ;;  %v1171_v26 = vadd.f32 %v6466_v41, %v5699_v21  ;;  %v1677_v52 = vadd.f32 %v5241_v42, %v5699_v21  ;;  %v1712_v58 = vadd.f32 %v5243_v44, %v5699_v21  ;;  %2964 = vst [vmem:[%s5671_s29 + $0x78] sm:$0xff] %v1720_v61  ;;  %v6472_v50 = vld [vmem:[#allocation34_spill] sm:$0xff] }
 0x65e   : > { %v2219_v12 = vadd.f32 %v5265_v7, %v5699_v21  ;;  %3016 = vst [vmem:[%s5671_s29 + $0xd8] sm:$0xff] %v2262_v35  ;;  %v2254_v24 = vadd.f32 %v6468_v29, %v5699_v21  ;;  %v2626_v63 = vsel %vm920_vm7, %v5632_v17, %v5701_v54 }
 0x65f   : > { %v2616_v42 = vpop.permute.xlu0 %2615  ;;  %v1184_v36 = vadd.f32 %v3225_v28, %v1136_v11  ;;  %v1725_v44 = vadd.f32 %v3226_v45, %v1677_v52  ;;  %v1185_v4 = vadd.f32 %v3227_v25, %v1171_v26  ;;  %v1726_v9 = vadd.f32 %v3229_v20, %v1712_v58 }
 0x660   : > { %v2621_v7 = vsel %vm920_vm7, %v5630_v6, %v2616_v42  ;;  %v2625_v49 = vsel %vm920_vm7, %v2616_v42, %v5630_v6  ;;  %v2267_v14 = vadd.f32 %v3228_v10, %v2219_v12  ;;  %v6470_v6 = vld [vmem:[#allocation47_spill] sm:$0xff]  ;;  %v2268_v31 = vadd.f32 %v3230_v56, %v2254_v24 }
 0x661   : > { %v2632_v16 = vsel %vm505_vm9, %v2625_v49, 0.0  ;;  %v2639_v59 = vadd.f32 %v2621_v7, %v2559_v51  ;;  %1196 = vst [vmem:[%s5671_s29 + $0x40] sm:$0xff] %v1184_v36  ;;  %v2634_v0 = vsel %vm505_vm9, %v2626_v63, 0.0  ;;  %v6474_v42 = vld [vmem:[#allocation63_spill] sm:$0xff]  ;;  %v2622_v36 = vsel %vm920_vm7, %v5701_v54, %v5632_v17  ;;  %v6476_v54 = vld [vmem:[#allocation36_spill] sm:$0xff] }
 0x662   : > { %v2640_v8 = vadd.f32 %v2632_v16, %v2560_v2  ;;  %2969 = vst [vmem:[%s5671_s29 + $0xa0] sm:$0xff] %v1725_v44 }
 0x663   : > { %v5743_v37 = vadd.f32 %v2639_v59, %v6470_v6  ;;  %3021 = vst [vmem:[%s5671_s29 + $0x100] sm:$0xff] %v2267_v14  ;;  %v2332_v14 = vpop.f32.mrf.mxu0 }
 0x664   : > { %v5750_v5 = vadd.f32 %v2640_v8, %v6470_v6  ;;  %v2614_v47 = vpop.permute.xlu1 %2613  ;;  %1197 = vst [vmem:[%s5671_s29 + $0x48] sm:$0xff] %v1185_v4  ;;  %v6475_v4 = vld [vmem:[#allocation20_spill] sm:$0xff]  ;;  %v2373_v6 = vpop.f32.mrf.mxu1 }
 0x665   : > { %v2655_v1 = vmul.f32 %v5743_v37, %v5743_v37  ;;  %v2620_v38 = vsel %vm920_vm7, %v5652_v62, %v2614_v47  ;;  %v2624_v48 = vsel %vm920_vm7, %v2614_v47, %v5652_v62  ;;  %2970 = vst [vmem:[%s5671_s29 + $0xa8] sm:$0xff] %v1726_v9 }
 0x666   : > { %v2656_v61 = vmul.f32 %v5750_v5, %v5750_v5  ;;  %v2630_v43 = vsel %vm505_vm9, %v2624_v48, 0.0  ;;  %v2637_v39 = vadd.f32 %v2620_v38, %v2557_v57  ;;  %3022 = vst [vmem:[%s5671_s29 + $0x108] sm:$0xff] %v2268_v31  ;;  %v3231_v31 = vld [vmem:[%s3363_s11] sm:$0xff] }
 0x667   : > { %v2663_v55 = vmul.f32 %v2655_v1, %v5743_v37  ;;  %v2638_v30 = vadd.f32 %v2630_v43, %v2558_v53  ;;  %v2530_v35 = vpop.permute.xlu0 %2529 }
 0x668   : > { %v5777_v62 = vadd.f32 %v2637_v39, %v6472_v50  ;;  %v2542_v11 = vsel %vm835_vm8, %v2530_v35, %v5656_v40  ;;  %v2546_v41 = vsel %vm835_vm8, %v5656_v40, %v2530_v35  ;;  %v2664_v26 = vmul.f32 %v2656_v61, %v5750_v5 }
 0x669   : > { %v5787_v52 = vadd.f32 %v2638_v30, %v6472_v50  ;;  %v2553_v58 = vsel %vm502_vm10, %v2546_v41, 0.0  ;;  %v2562_v12 = vadd.f32 %v2542_v11, %v6473_v19  ;;  %v2671_v51 = vmul.f32 0.044715, %v2663_v55  ;;  %v6478_v11 = vld [vmem:[#allocation10_spill] sm:$0xff] }
 0x66a   : > { %v2653_v2 = vmul.f32 %v5777_v62, %v5777_v62  ;;  %v2561_v28 = vadd.f32 %v2553_v58, %v6474_v42  ;;  %v2672_v40 = vmul.f32 0.044715, %v2664_v26  ;;  %v6479_v58 = vld [vmem:[#allocation65_spill] sm:$0xff] }
 0x66b   : > { %v2654_v45 = vmul.f32 %v5787_v52, %v5787_v52  ;;  %v2642_v44 = vadd.f32 %v2634_v0, %v2562_v12  ;;  %v2679_v29 = vadd.f32 %v2671_v51, %v5743_v37  ;;  %v6480_v0 = vld [vmem:[#allocation53_spill] sm:$0xff] }
 0x66c   : > { %v2661_v24 = vmul.f32 %v2653_v2, %v5777_v62  ;;  %v2641_v7 = vadd.f32 %v2622_v36, %v2561_v28  ;;  %v5805_v49 = vpop.permute.xlu1 %1059  ;;  %v2680_v25 = vadd.f32 %v2672_v40, %v5750_v5  ;;  %v5853_v2 = vadd.f32 %v5685_v32, %v6480_v0  ;;  %v6481_v28 = vld [vmem:[#allocation38_spill] sm:$0xff]  ;;  %v6482_v36 = vld [vmem:[#allocation52_spill] sm:$0xff] }
 0x66d   : > { %v5809_v16 = vadd.f32 %v2642_v44, %v6475_v4  ;;  %v2687_v59 = vmul.f32 0.7978846, %v2679_v29  ;;  %v2662_v17 = vmul.f32 %v2654_v45, %v5787_v52  ;;  %v1124_v10 = vadd.f32 %v6476_v54, %v5805_v49 }
 0x66e   : > { %v5815_v20 = vadd.f32 %v2641_v7, %v6475_v4  ;;  %v2669_v9 = vmul.f32 0.044715, %v2661_v24  ;;  %v1665_v8 = vadd.f32 %v6477_v34, %v5805_v49  ;;  %v2688_v47 = vmul.f32 0.7978846, %v2680_v25  ;;  %v2335_v7 = vpop.f32.mrf.mxu0  ;;  %v3233_v4 = vld [vmem:[%s3363_s11 + $0xc0] sm:$0xff] }
 0x66f   : > { %v2658_v33 = vmul.f32 %v5809_v16, %v5809_v16  ;;  %v2612_v57 = vpop.permute.xlu0 %2611  ;;  %v2670_v56 = vmul.f32 0.044715, %v2662_v17  ;;  %v1176_v53 = vadd.f32 %v3231_v31, %v1124_v10  ;;  %3183 = vtanh.f32 %v2687_v59  ;;  %v6483_v17 = vld [vmem:[#allocation51_spill] sm:$0xff]  ;;  %v2376_v10 = vpop.f32.mrf.mxu1  ;;  %v6484_v31 = vld [vmem:[#allocation50_spill] sm:$0xff] }
 0x670   : > { %v2657_v1 = vmul.f32 %v5815_v20, %v5815_v20  ;;  %v2619_v38 = vsel %vm920_vm7, %v5648_v15, %v2612_v57  ;;  %v2623_v48 = vsel %vm920_vm7, %v2612_v57, %v5648_v15  ;;  %v2677_v35 = vadd.f32 %v2669_v9, %v5777_v62 }
 0x671   : > { %v2666_v61 = vmul.f32 %v2658_v33, %v5809_v16  ;;  %v2628_v43 = vsel %vm505_vm9, %v2623_v48, 0.0  ;;  %v2635_v39 = vadd.f32 %v2619_v38, %v5644_v22  ;;  %v2678_v63 = vadd.f32 %v2670_v56, %v5787_v52  ;;  %1188 = vst [vmem:[%s5671_s29] sm:$0xff] %v1176_v53  ;;  %v6486_v38 = vld [vmem:[#allocation79_spill] sm:$0xff] }
 0x672   : > { %v2665_v55 = vmul.f32 %v2657_v1, %v5815_v20  ;;  %v2636_v30 = vadd.f32 %v2628_v43, %v5641_v13  ;;  %v1717_v15 = vadd.f32 %v3232_v27, %v1665_v8  ;;  %3185 = vtanh.f32 %v2688_v47  ;;  %v3234_v47 = vld [vmem:[%s3363_s11 + $0x8] sm:$0xff]  ;;  %v6485_v1 = vld [vmem:[#allocation73_spill] sm:$0xff]  ;;  %v6487_v27 = vld [vmem:[#allocation54_spill] sm:$0xff] }
 0x673   : > { %v2674_v50 = vmul.f32 0.044715, %v2666_v61  ;;  %v5841_v41 = vadd.f32 %v2635_v39, %v6478_v11  ;;  %v2686_v22 = vmul.f32 0.7978846, %v2678_v63  ;;  %v2207_v19 = vadd.f32 %v6479_v58, %v5805_v49  ;;  %v3236_v58 = vld [vmem:[%s3363_s11 + $0xc8] sm:$0xff] }
 0x674   : > { %v2673_v18 = vmul.f32 0.044715, %v2665_v55  ;;  %v5844_v26 = vadd.f32 %v2636_v30, %v6478_v11  ;;  %2961 = vst [vmem:[%s5671_s29 + $0x60] sm:$0xff] %v1717_v15  ;;  %v2685_v12 = vmul.f32 0.7978846, %v2677_v35  ;;  %v1159_v40 = vadd.f32 %v6481_v28, %v5805_v49  ;;  %v3235_v30 = vld [vmem:[%s3363_s11 + $0x68] sm:$0xff] }
 0x675   : > { %v2651_v13 = vmul.f32 %v5841_v41, %v5841_v41  ;;  %v3184_v51 = vpop.eup %3183  ;;  %v5861_v45 = vadd.f32 %v5746_v46, %v6482_v36  ;;  %v2682_v29 = vadd.f32 %v2674_v50, %v5809_v16  ;;  %v5868_v32 = vadd.f32 %v5754_v60, %v6482_v36  ;;  %v6488_v11 = vld [vmem:[#allocation56_spill] sm:$0xff] }
 0x676   : > { %v2652_v42 = vmul.f32 %v5844_v26, %v5844_v26  ;;  %v2681_v24 = vadd.f32 %v2673_v18, %v5815_v20  ;;  %3187 = vtanh.f32 %v2686_v22  ;;  %v2259_v59 = vadd.f32 %v3233_v4, %v2207_v19 }
 0x677   : > { %v2659_v44 = vmul.f32 %v2651_v13, %v5841_v41  ;;  %v5873_v54 = vadd.f32 %v2332_v14, %v6483_v17  ;;  %v2690_v9 = vmul.f32 0.7978846, %v2682_v29  ;;  %3189 = vtanh.f32 %v2685_v12  ;;  %v5878_v60 = vpop.permute.xlu0 %1069  ;;  %v5885_v14 = vpop.permute.xlu1 %1074  ;;  %v6489_v13 = vld [vmem:[#allocation71_spill] sm:$0xff] }
 0x678   : > { %v2660_v25 = vmul.f32 %v2652_v42, %v5844_v26  ;;  %v3186_v46 = vpop.eup %3185  ;;  %v2689_v34 = vmul.f32 0.7978846, %v2681_v24  ;;  %v5876_v8 = vadd.f32 %v2373_v6, %v6483_v17  ;;  %3013 = vst [vmem:[%s5671_s29 + $0xc0] sm:$0xff] %v2259_v59  ;;  %v1177_v56 = vadd.f32 %v3234_v47, %v1159_v40  ;;  %v3237_v40 = vld [vmem:[%s3363_s11 + $0x20] sm:$0xff]  ;;  %v6491_v24 = vld [vmem:[#allocation57_spill] sm:$0xff]  ;;  %v6494_v17 = vld [vmem:[#allocation55_spill] sm:$0xff] }
 0x679   : > { %v2667_v33 = vmul.f32 0.044715, %v2659_v44  ;;  %v5883_v53 = vadd.f32 %v2335_v7, %v6484_v31  ;;  %3191 = vtanh.f32 %v2690_v9  ;;  %v1700_v6 = vadd.f32 %v6485_v1, %v5805_v49  ;;  %v6490_v44 = vld [vmem:[#allocation80_spill] sm:$0xff]  ;;  %v6493_v59 = vld [vmem:[#allocation77_spill] sm:$0xff] }
 0x67a   : > { %v2668_v57 = vmul.f32 0.044715, %v2660_v25  ;;  %v2242_v48 = vadd.f32 %v6486_v38, %v5805_v49  ;;  %v5892_v61 = vadd.f32 %v2376_v10, %v6484_v31  ;;  %3193 = vtanh.f32 %v2689_v34  ;;  %1189 = vst [vmem:[%s5671_s29 + $0x8] sm:$0xff] %v1177_v56  ;;  %v6492_v25 = vld [vmem:[#allocation74_spill] sm:$0xff]  ;;  %v6495_v34 = vld [vmem:[#allocation76_spill] sm:$0xff] }
 0x67b   : > { %v2675_v43 = vadd.f32 %v2667_v33, %v5841_v41  ;;  %v2704_v63 = vadd.f32 1.0, %v3186_v46  ;;  %v2703_v55 = vadd.f32 1.0, %v3184_v51  ;;  %v1718_v35 = vadd.f32 %v3235_v30, %v1700_v6  ;;  %v3238_v38 = vld [vmem:[%s3363_s11 + $0x80] sm:$0xff] }
 0x67c   : > { %v2676_v39 = vadd.f32 %v2668_v57, %v5844_v26  ;;  %v1130_v15 = vadd.f32 %v6487_v27, %v5878_v60  ;;  %v3188_v50 = vpop.eup %3187  ;;  %v1133_v18 = vadd.f32 %v6488_v11, %v5885_v14  ;;  %v2260_v19 = vadd.f32 %v3236_v58, %v2242_v48  ;;  %v3239_v30 = vld [vmem:[%s3363_s11 + $0xe0] sm:$0xff]  ;;  %v3240_v27 = vld [vmem:[%s3363_s11 + $0x28] sm:$0xff] }
 0x67d   : > { %v2683_v22 = vmul.f32 0.7978846, %v2675_v43  ;;  %v1671_v12 = vadd.f32 %v6489_v13, %v5878_v60  ;;  %v3190_v42 = vpop.eup %3189  ;;  %v2702_v28 = vadd.f32 1.0, %v3188_v50  ;;  %2962 = vst [vmem:[%s5671_s29 + $0x68] sm:$0xff] %v1718_v35  ;;  %v2213_v29 = vadd.f32 %v6490_v44, %v5878_v60  ;;  %v6496_v50 = vld [vmem:[#allocation72_spill] sm:$0xff]  ;;  %v3242_v44 = vld [vmem:[%s3363_s11 + $0x88] sm:$0xff] }
 0x67e   : > { %v2684_v51 = vmul.f32 0.7978846, %v2676_v39  ;;  %v1180_v36 = vadd.f32 %v3237_v40, %v1130_v15  ;;  %v1168_v7 = vadd.f32 %v6491_v24, %v5885_v14  ;;  %v1674_v4 = vadd.f32 %v6492_v25, %v5885_v14  ;;  %3014 = vst [vmem:[%s5671_s29 + $0xc8] sm:$0xff] %v2260_v19  ;;  %v6498_v19 = vld [vmem:[#allocation66_spill] sm:$0xff]  ;;  %v3243_v24 = vld [vmem:[%s3363_s11 + $0x90] sm:$0xff] }
 0x67f   : > { %v1709_v46 = vadd.f32 %v6493_v59, %v5885_v14  ;;  %v1165_v10 = vadd.f32 %v6494_v17, %v5878_v60  ;;  %v3192_v9 = vpop.eup %3191  ;;  %v2216_v33 = vadd.f32 %v6495_v34, %v5885_v14  ;;  %v2712_v57 = vmul.f32 0.5, %v2704_v63  ;;  %v5923_v63 = vpop.permute.xlu0 %1084  ;;  %v6499_v59 = vld [vmem:[#allocation60_spill] sm:$0xff] }
 0x680   : > { %v2711_v47 = vmul.f32 0.5, %v2703_v55  ;;  %v2701_v56 = vadd.f32 1.0, %v3190_v42  ;;  %1192 = vst [vmem:[%s5671_s29 + $0x20] sm:$0xff] %v1180_v36  ;;  %v3194_v31 = vpop.eup %3193  ;;  %v2706_v1 = vadd.f32 1.0, %v3192_v9  ;;  %v2710_v6 = vmul.f32 0.5, %v2702_v28  ;;  %v3241_v28 = vld [vmem:[%s3363_s11 + $0x30] sm:$0xff] }
 0x681   : > { %3195 = vtanh.f32 %v2683_v22  ;;  %v1721_v48 = vadd.f32 %v3238_v38, %v1671_v12  ;;  %v2705_v43 = vadd.f32 1.0, %v3194_v31  ;;  %v2263_v35 = vadd.f32 %v3239_v30, %v2213_v29  ;;  %v6497_v22 = vld [vmem:[#allocation75_spill] sm:$0xff] }
 0x682   : > { %v2709_v39 = vmul.f32 0.5, %v2701_v56  ;;  %3197 = vtanh.f32 %v2684_v51  ;;  %v2714_v55 = vmul.f32 0.5, %v2706_v1  ;;  %v1181_v15 = vadd.f32 %v3240_v27, %v1165_v10 }
 0x683   : > { %2965 = vst [vmem:[%s5671_s29 + $0x80] sm:$0xff] %v1721_v48  ;;  %v1706_v11 = vadd.f32 %v6496_v50, %v5878_v60  ;;  %v2248_v58 = vadd.f32 %v6497_v22, %v5878_v60  ;;  %v2251_v13 = vadd.f32 %v6498_v19, %v5885_v14  ;;  %v2713_v12 = vmul.f32 0.5, %v2705_v43  ;;  %v3247_v43 = vld [vmem:[%s3363_s11 + $0x98] sm:$0xff] }
 0x684   : > { %v2720_v42 = vmul.f32 %v2712_v57, %v5750_v5  ;;  %3017 = vst [vmem:[%s5671_s29 + $0xe0] sm:$0xff] %v2263_v35  ;;  %v1182_v51 = vadd.f32 %v3241_v28, %v1133_v18  ;;  %v2722_v40 = vmul.f32 %v2714_v55, %v5809_v16  ;;  %v2719_v36 = vmul.f32 %v2711_v47, %v5743_v37  ;;  %v6500_v5 = vld [vmem:[#allocation78_spill] sm:$0xff]  ;;  %v3244_v16 = vld [vmem:[%s3363_s11 + $0xe8] sm:$0xff]  ;;  %v3245_v47 = vld [vmem:[%s3363_s11 + $0x38] sm:$0xff] }
 0x685   : > { %1193 = vst [vmem:[%s5671_s29 + $0x28] sm:$0xff] %v1181_v15  ;;  %v1722_v29 = vadd.f32 %v3242_v44, %v1706_v11  ;;  %v1723_v25 = vadd.f32 %v3243_v24, %v1674_v4  ;;  %v1139_v17 = vadd.f32 %v6499_v59, %v5923_v63  ;;  %v1680_v10 = vadd.f32 %v6500_v5, %v5923_v63  ;;  %v3248_v55 = vld [vmem:[%s3363_s11 + $0x50] sm:$0xff]  ;;  %v3249_v15 = vld [vmem:[%s3363_s11 + $0xf8] sm:$0xff]  ;;  %v3259_v59 = vld [vmem:[%s6066_s5 + $0x20] sm:$0xff] }
 0x686   : > { %v2721_v18 = vmul.f32 %v2713_v12, %v5815_v20  ;;  %v2264_v37 = vadd.f32 %v3244_v16, %v2248_v58  ;;  %1194 = vst [vmem:[%s5671_s29 + $0x30] sm:$0xff] %v1182_v51  ;;  %v2730_v34 = vmul.f32 %v2722_v40, %v5892_v61  ;;  %v2718_v57 = vmul.f32 %v2710_v6, %v5787_v52  ;;  %v3246_v20 = vld [vmem:[%s3363_s11 + $0xf0] sm:$0xff]  ;;  %v6501_v61 = vld [vmem:[#allocation61_spill] sm:$0xff] }
 0x687   : > { %v3196_v9 = vpop.eup %3195  ;;  %v2717_v4 = vmul.f32 %v2709_v39, %v5777_v62  ;;  %2966 = vst [vmem:[%s5671_s29 + $0x88] sm:$0xff] %v1722_v29  ;;  %v1183_v56 = vadd.f32 %v3245_v47, %v1168_v7  ;;  %v2265_v48 = vadd.f32 %v3246_v20, %v2216_v33  ;;  %v1724_v30 = vadd.f32 %v3247_v43, %v1709_v46  ;;  %v6502_v6 = vld [vmem:[#allocation64_spill] sm:$0xff]  ;;  %v3251_v28 = vld [vmem:[%s3363_s11 + $0x58] sm:$0xff]  ;;  %v3256_v29 = vld [vmem:[%s6066_s5 + $0x8] sm:$0xff] }
 0x688   : > { %v3198_v31 = vpop.eup %3197  ;;  %v2729_v1 = vmul.f32 %v2721_v18, %v5883_v53  ;;  %v2699_v38 = vadd.f32 1.0, %v3196_v9  ;;  %3018 = vst [vmem:[%s5671_s29 + $0xe8] sm:$0xff] %v2264_v37  ;;  %v1174_v52 = vadd.f32 %v6501_v61, %v5923_v63  ;;  %2778 = vmatpush.msrb.mxu3 %v2730_v34  ;;  %v2728_v62 = vmul.f32 %v2720_v42, %v5876_v8  ;;  %v6503_v33 = vld [vmem:[#allocation68_spill] sm:$0xff]  ;;  %v3261_v37 = vld [vmem:[%s3363_s11 + $0x120] sm:$0xff]  ;;  %v3262_v34 = vld [vmem:[%s3363_s11 + $0x128] sm:$0xff] }
 0x689   : > { %v2727_v7 = vmul.f32 %v2719_v36, %v5873_v54  ;;  %v2700_v53 = vadd.f32 1.0, %v3198_v31  ;;  %2967 = vst [vmem:[%s5671_s29 + $0x90] sm:$0xff] %v1723_v25  ;;  %v1715_v39 = vadd.f32 %v6502_v6, %v5923_v63  ;;  %v2222_v35 = vadd.f32 %v6503_v33, %v5923_v63  ;;  %v3250_v11 = vld [vmem:[%s3363_s11 + $0xb0] sm:$0xff]  ;;  %v3258_v25 = vld [vmem:[%s6066_s5 + $0x18] sm:$0xff] }
 0x68a   : > { %2743 = vmatpush.msrb.mxu2 %v2729_v1  ;;  %v2707_v46 = vmul.f32 0.5, %v2699_v38  ;;  %3019 = vst [vmem:[%s5671_s29 + $0xf0] sm:$0xff] %v2265_v48  ;;  %v1186_v27 = vadd.f32 %v3248_v55, %v1139_v17  ;;  %2779 = vmatpush.msrb.mxu3 %v2728_v62  ;;  %v2726_v8 = vmul.f32 %v2718_v57, %v5868_v32  ;;  %v6504_v32 = vld [vmem:[#allocation69_spill] sm:$0xff]  ;;  %v3257_v24 = vld [vmem:[%s6066_s5 + $0x10] sm:$0xff]  ;;  %v3260_v17 = vld [vmem:[%s6066_s5 + $0x28] sm:$0xff] }
 0x68b   : > { %v2708_v54 = vmul.f32 0.5, %v2700_v53  ;;  %1195 = vst [vmem:[%s5671_s29 + $0x38] sm:$0xff] %v1183_v56  ;;  %v2266_v50 = vadd.f32 %v3249_v15, %v2251_v13  ;;  %v1727_v22 = vadd.f32 %v3250_v11, %v1680_v10  ;;  %v2368_v58 = vadd.f32 %v5688_v23, %v6480_v0  ;;  %v3263_v1 = vld [vmem:[%s3363_s11 + $0x130] sm:$0xff] }
 0x68c   : > { %2744 = vmatpush.msrb.mxu2 %v2727_v7  ;;  %v2725_v19 = vmul.f32 %v2717_v4, %v5861_v45  ;;  %v2715_v12 = vmul.f32 %v2707_v46, %v5841_v41  ;;  %2968 = vst [vmem:[%s5671_s29 + $0x98] sm:$0xff] %v1724_v30  ;;  %v2257_v42 = vadd.f32 %v6504_v32, %v5923_v63  ;;  %v3252_v41 = vld [vmem:[%s3363_s11 + $0x110] sm:$0xff]  ;;  %v3253_v45 = vld [vmem:[%s3363_s11 + $0xb8] sm:$0xff] }
 0x68d   : > { %2780 = vmatpush.msrb.mxu3 %v2726_v8  ;;  %v2716_v13 = vmul.f32 %v2708_v54, %v5844_v26  ;;  %3020 = vst [vmem:[%s5671_s29 + $0xf8] sm:$0xff] %v2266_v50  ;;  %v1187_v51 = vadd.f32 %v3251_v28, %v1174_v52  ;;  %v2269_v0 = vadd.f32 %v3252_v41, %v2222_v35  ;;  %v3254_v26 = vld [vmem:[%s6066_s5] sm:$0xff]  ;;  %v3267_v35 = vld [vmem:[%s3363_s11 + $0x150] sm:$0xff]  ;;  %v3272_v28 = vld [vmem:[%s3363_s11 + $0x178] sm:$0xff] }
 0x68e   : > { %2745 = vmatpush.msrb.mxu2 %v2725_v19  ;;  %v2723_v23 = vmul.f32 %v2715_v12, %v5853_v2  ;;  %1198 = vst [vmem:[%s5671_s29 + $0x50] sm:$0xff] %v1186_v27  ;;  %v1728_v40 = vadd.f32 %v3253_v45, %v1715_v39  ;;  %v3255_v2 = vld [vmem:[%s3363_s11 + $0x118] sm:$0xff]  ;;  %v3265_v52 = vld [vmem:[%s3363_s11 + $0x140] sm:$0xff] }
 0x68f   : > { %v2724_v36 = vmul.f32 %v2716_v13, %v2368_v58  ;;  %2971 = vst [vmem:[%s5671_s29 + $0xb0] sm:$0xff] %v1727_v22  ;;  %v2270_v44 = vadd.f32 %v3255_v2, %v2257_v42  ;;  %v3269_v50 = vld [vmem:[%s3363_s11 + $0x160] sm:$0xff]  ;;  %v3271_v42 = vld [vmem:[%s3363_s11 + $0x170] sm:$0xff] }
 0x690   : > { %2746 = vmatpush.msrb.mxu2 %v2723_v23  ;;  %3023 = vst [vmem:[%s5671_s29 + $0x110] sm:$0xff] %v2269_v0 }
 0x691   : > { %2781 = vmatpush.msrb.mxu3 %v2724_v36  ;;  %3053 = vmatmul.msk.f32.vlgmr.msrb.gmra.mxu2 %vm1087_vm11, %v3254_v26  ;;  %1199 = vst [vmem:[%s5671_s29 + $0x58] sm:$0xff] %v1187_v51 }
 0x692   : > { %3059 = vmatmul.msk.f32.vlgmr.msrb.gmra.mxu3 %vm1087_vm11, %v3254_v26  ;;  %2972 = vst [vmem:[%s5671_s29 + $0xb8] sm:$0xff] %v1728_v40 }
 0x693   : > { %3024 = vst [vmem:[%s5671_s29 + $0x118] sm:$0xff] %v2270_v44 }
 0x699   : > { %3054 = vmatmul.msk.f32.gmra.mxu2 %vm1087_vm11, %v3256_v29 }
 0x69a   : > { %3060 = vmatmul.msk.f32.gmra.mxu3 %vm1087_vm11, %v3256_v29 }
 0x6a1   : > { %3055 = vmatmul.msk.f32.gmra.mxu2 %vm1087_vm11, %v3257_v24 }
 0x6a2   : > { %3061 = vmatmul.msk.f32.gmra.mxu3 %vm1087_vm11, %v3257_v24 }
 0x6a9   : > { %3056 = vmatmul.msk.f32.gmra.mxu2 %vm1087_vm11, %v3258_v25 }
 0x6aa   : > { %3062 = vmatmul.msk.f32.gmra.mxu3 %vm1087_vm11, %v3258_v25 }
 0x6b1   : > { %3057 = vmatmul.msk.f32.gmra.mxu2 %vm1087_vm11, %v3259_v59 }
 0x6b2   : > { %3063 = vmatmul.msk.f32.gmra.mxu3 %vm1087_vm11, %v3259_v59 }
 0x6b9   : > { %3058 = vmatmul.msk.f32.gmra.mxu2 %vm1087_vm11, %v3260_v17 }
 0x6ba   : > { %3064 = vmatmul.msk.f32.gmra.mxu3 %vm1087_vm11, %v3260_v17 }
 0x714   : > { %v2748_v5 = vpop.f32.mrf.mxu2 }
 0x715   : > { %v2749_v10 = vadd.f32 %v2748_v5, %v5805_v49  ;;  %v2783_v18 = vpop.f32.mrf.mxu3 }
 0x716   : > { %v2784_v16 = vadd.f32 %v2783_v18, %v5805_v49  ;;  %v3264_v49 = vld [vmem:[%s3363_s11 + $0x138] sm:$0xff] }
 0x717   : > { %v2801_v9 = vadd.f32 %v3261_v37, %v2749_v10 }
 0x718   : > { %v2802_v57 = vadd.f32 %v3262_v34, %v2784_v16 }
 0x719   : > { %3065 = vst [vmem:[%s5671_s29 + $0x120] sm:$0xff] %v2801_v9 }
 0x71a   : > { %3066 = vst [vmem:[%s5671_s29 + $0x128] sm:$0xff] %v2802_v57 }
 0x71c   : > { %v2751_v4 = vpop.f32.mrf.mxu2 }
 0x71d   : > { %v2752_v47 = vadd.f32 %v2751_v4, %v5654_v3  ;;  %v2786_v56 = vpop.f32.mrf.mxu3 }
 0x71e   : > { %v2787_v31 = vadd.f32 %v2786_v56, %v5654_v3  ;;  %v3266_v3 = vld [vmem:[%s3363_s11 + $0x148] sm:$0xff] }
 0x71f   : > { %v2803_v38 = vadd.f32 %v3263_v1, %v2752_v47 }
 0x720   : > { %v2804_v20 = vadd.f32 %v3264_v49, %v2787_v31 }
 0x721   : > { %3067 = vst [vmem:[%s5671_s29 + $0x130] sm:$0xff] %v2803_v38 }
 0x722   : > { %3068 = vst [vmem:[%s5671_s29 + $0x138] sm:$0xff] %v2804_v20 }
 0x724   : > { %v2754_v48 = vpop.f32.mrf.mxu2 }
 0x725   : > { %v2755_v43 = vadd.f32 %v2754_v48, %v5878_v60  ;;  %v2789_v30 = vpop.f32.mrf.mxu3 }
 0x726   : > { %v2790_v61 = vadd.f32 %v2789_v30, %v5878_v60  ;;  %v3268_v60 = vld [vmem:[%s3363_s11 + $0x158] sm:$0xff] }
 0x727   : > { %v2805_v62 = vadd.f32 %v3265_v52, %v2755_v43 }
 0x728   : > { %v2806_v7 = vadd.f32 %v3266_v3, %v2790_v61 }
 0x729   : > { %3069 = vst [vmem:[%s5671_s29 + $0x140] sm:$0xff] %v2805_v62 }
 0x72a   : > { %3070 = vst [vmem:[%s5671_s29 + $0x148] sm:$0xff] %v2806_v7 }
 0x72c   : > { %v2757_v53 = vpop.f32.mrf.mxu2 }
 0x72d   : > { %v2758_v6 = vadd.f32 %v2757_v53, %v5885_v14  ;;  %v2792_v39 = vpop.f32.mrf.mxu3 }
 0x72e   : > { %v2793_v33 = vadd.f32 %v2792_v39, %v5885_v14  ;;  %v3270_v14 = vld [vmem:[%s3363_s11 + $0x168] sm:$0xff] }
 0x72f   : > { %v2807_v46 = vadd.f32 %v3267_v35, %v2758_v6 }
 0x730   : > { %v2808_v55 = vadd.f32 %v3268_v60, %v2793_v33 }
 0x731   : > { %3071 = vst [vmem:[%s5671_s29 + $0x150] sm:$0xff] %v2807_v46 }
 0x732   : > { %3072 = vst [vmem:[%s5671_s29 + $0x158] sm:$0xff] %v2808_v55 }
 0x734   : > { %v2760_v27 = vpop.f32.mrf.mxu2 }
 0x735   : > { %v2761_v8 = vadd.f32 %v2760_v27, %v5699_v21  ;;  %v2795_v54 = vpop.f32.mrf.mxu3 }
 0x736   : > { %v2796_v15 = vadd.f32 %v2795_v54, %v5699_v21 }
 0x737   : > { %v2809_v11 = vadd.f32 %v3269_v50, %v2761_v8 }
 0x738   : > { %v2810_v22 = vadd.f32 %v3270_v14, %v2796_v15 }
 0x739   : > { %3073 = vst [vmem:[%s5671_s29 + $0x160] sm:$0xff] %v2809_v11 }
 0x73a   : > { %3074 = vst [vmem:[%s5671_s29 + $0x168] sm:$0xff] %v2810_v22 }
 0x73c   : > { %v2763_v58 = vpop.f32.mrf.mxu2 }
 0x73d   : > { %v2764_v19 = vadd.f32 %v2763_v58, %v5923_v63  ;;  %v2798_v12 = vpop.f32.mrf.mxu3 }
 0x73e   : > { %v2799_v32 = vadd.f32 %v2798_v12, %v5923_v63 }
 0x73f   : > { %v2811_v13 = vadd.f32 %v3271_v42, %v2764_v19 }
 0x740   : > { %v2812_v51 = vadd.f32 %v3272_v28, %v2799_v32 }
 0x741   : > { %3075 = vst [vmem:[%s5671_s29 + $0x170] sm:$0xff] %v2811_v13 }
 0x742   : > { %3076 = vst [vmem:[%s5671_s29 + $0x178] sm:$0xff] %v2812_v51 }
 0x743 PF: > { %s17_s24 = sadd.s32 1, %s3279_s24  }
 0x744   : > { %p14_p4 = scmp.ge.s32.totalorder %s17_s24, 4  }
 0x746   :  { %16 = sbr.rel (!%p14_p4) target bundleno = 1 (0x1), region = 84 }

</bundles_post_ra>
